<compile_context>
chip_gen: v5e
topology: v5e:2x2
jax: 0.10.0
libtpu: 0.0.40
codegen_flags: <defaults>
</compile_context>

<pallas_src>
import math

import jax
import jax.numpy as jnp
from jax.experimental import pallas as pl
from jax.experimental.pallas import tpu as pltpu

# ---- module hyper-parameters (from TransformerClassifier.__init__) ----
INPUT_DIM = 16
HIDDEN_DIM = 32
NUM_LAYERS = 2
OUTPUT_DIM = 5
NHEAD = 4
DIM_FF = 2048            # PyTorch TransformerEncoderLayer default dim_feedforward
LN_EPS = 1e-5
HEAD_DIM = HIDDEN_DIM // NHEAD

# ---- small example shapes ----
D0 = 4                   # dim 0 of the inputs (output "batch" of the classifier)
D1 = 8                   # dim 1 of the inputs (only index D1-1 reaches the output)

SLAB_LANES = 128         # lane width of the packed parameter slabs


def _ceil(x, m):
    return (x + m - 1) // m * m


def _w_layout():
    """bf16 weight slab layout: name -> (row_start, n_rows, n_cols)."""
    ofs, r = {}, 0

    def add(name, nrows, ncols):
        nonlocal r
        ofs[name] = (r, nrows, ncols)
        r += _ceil(nrows, 16)            # keep bf16 sublane-pair alignment

    add("emb_w", INPUT_DIM, HIDDEN_DIM)
    for l in range(NUM_LAYERS):
        add(f"inp_w{l}", HIDDEN_DIM, 3 * HIDDEN_DIM)
        add(f"outp_w{l}", HIDDEN_DIM, HIDDEN_DIM)
    add("fc_w1", HIDDEN_DIM, OUTPUT_DIM)
    add("fc_w2", HIDDEN_DIM, OUTPUT_DIM)
    return ofs, _ceil(r, 16)


def _b_layout(d0):
    """f32 bias / LayerNorm / pos-enc slab layout: name -> (row_start, n_rows, n_cols)."""
    ofs, r = {}, 0

    def add(name, nrows, ncols):
        nonlocal r
        ofs[name] = (r, nrows, ncols)
        r += nrows

    add("pe_bias", 2 * d0, HIDDEN_DIM)
    for l in range(NUM_LAYERS):
        add(f"inp_b{l}", 1, 3 * HIDDEN_DIM)
        add(f"outp_b{l}", 1, HIDDEN_DIM)
        add(f"ln1_w{l}", 1, HIDDEN_DIM)
        add(f"ln1_b{l}", 1, HIDDEN_DIM)
        add(f"ln2_w{l}", 1, HIDDEN_DIM)
        add(f"ln2_b{l}", 1, HIDDEN_DIM)
        add(f"ff2_b{l}", 1, HIDDEN_DIM)
    add("fc_b", 1, OUTPUT_DIM)
    return ofs, _ceil(r, 8)


def _layernorm(x, w, b):
    mu = jnp.mean(x, axis=-1, keepdims=True)
    xc = x - mu
    var = jnp.mean(xc * xc, axis=-1, keepdims=True)
    return xc * jax.lax.rsqrt(var + LN_EPS) * w + b


# ------------------------------- the kernel -------------------------------
def transformer_classifier_kernel(
    x_ref,                                  # (2*D0, INPUT_DIM) rows 0:D0 = x1, D0:2*D0 = x2
    w_ref,                                  # bf16 weight slab   (W_ROWS, 128)
    b_ref,                                  # f32 bias/LN/PE slab (B_ROWS, 128)
    ff1_b_ref,                              # (L, 1, DIM_FF) f32
    ff1_hbm,                                # (L, H, DIM_FF) bf16, memory_space=ANY (HBM)
    ff2_hbm,                                # (L, DIM_FF, H) bf16, memory_space=ANY (HBM)
    o_ref,                                  # (D0, OUTPUT_DIM) f32
    ff1_vmem, ff2_vmem, ff_sem,             # scratch: FF weight buffers + DMA sems
):
    R = x_ref.shape[0]
    d0 = R // 2
    scale = 1.0 / math.sqrt(HEAD_DIM)
    wl, _ = _w_layout()
    bl, _ = _b_layout(d0)

    # Kick off the FF-weight DMAs immediately: ~512 KiB of bf16 streams in behind
    # the embedding + layer-0 attention compute.
    cp_ff1 = pltpu.make_async_copy(ff1_hbm, ff1_vmem, ff_sem.at[0])
    cp_ff2 = pltpu.make_async_copy(ff2_hbm, ff2_vmem, ff_sem.at[1])
    cp_ff1.start()
    cp_ff2.start()

    def wslab(name):
        r0, n, c = wl[name]
        return w_ref[r0:r0 + n, :c]

    def bslab(name):
        r0, n, c = bl[name]
        return b_ref[r0:r0 + n, :c]

    # Block-diagonal attention mask: x1 rows attend only to x1 rows, x2 to x2.
    ri = jax.lax.broadcasted_iota(jnp.int32, (R, R), 0)
    ci = jax.lax.broadcasted_iota(jnp.int32, (R, R), 1)
    same_group = (ri < d0) == (ci < d0)
    neg_big = jnp.float32(-1e30)

    # embedding; pe_bias = positional encoding + embedding bias (folded at prep time)
    x = x_ref[...]
    h = jnp.dot(x.astype(jnp.bfloat16), wslab("emb_w"),
                preferred_element_type=jnp.float32) + bslab("pe_bias")   # (R, H) f32

    for l in range(NUM_LAYERS):
        # ---- self-attention block (post-norm) ----
        qkv = jnp.dot(h.astype(jnp.bfloat16), wslab(f"inp_w{l}"),
                      preferred_element_type=jnp.float32) + bslab(f"inp_b{l}")  # (R, 3H)
        o_r0, _, _ = wl[f"outp_w{l}"]
        sa = bslab(f"outp_b{l}")                                   # (1, H), broadcasts
        for hh in range(NHEAD):
            q = qkv[:, hh * HEAD_DIM:(hh + 1) * HEAD_DIM]
            k = qkv[:, HIDDEN_DIM + hh * HEAD_DIM:HIDDEN_DIM + (hh + 1) * HEAD_DIM]
            v = qkv[:, 2 * HIDDEN_DIM + hh * HEAD_DIM:2 * HIDDEN_DIM + (hh + 1) * HEAD_DIM]
            # q @ k^T without an explicit transpose: contract the last dims.
            s = jax.lax.dot_general(q, k, (((1,), (1,)), ((), ())),
                                    preferred_element_type=jnp.float32) * scale
            s = jnp.where(same_group, s, neg_big)                  # keep x1/x2 separate
            m = jnp.max(s, axis=-1, keepdims=True)                 # softmax in f32
            e = jnp.exp(s - m)
            denom = jnp.sum(e, axis=-1, keepdims=True)
            r = pl.reciprocal(denom, approx=True)                  # EUP slot
            r = r * (2.0 - denom * r)                              # one Newton step -> ~f32
            p = e * r
            o_h = jnp.dot(p, v, preferred_element_type=jnp.float32)        # (R, HD)
            # per-head output projection: sublane-contiguous weight slice, no scratch
            w_oh = w_ref[o_r0 + hh * HEAD_DIM:o_r0 + (hh + 1) * HEAD_DIM, :HIDDEN_DIM]
            sa = sa + jnp.dot(o_h.astype(jnp.bfloat16), w_oh,
                              preferred_element_type=jnp.float32)
        h = _layernorm(h + sa, bslab(f"ln1_w{l}"), bslab(f"ln1_b{l}"))

        # ---- feed-forward block (bf16 weights streamed in behind attention) ----
        if l == 0:
            cp_ff1.wait()
        f = jnp.dot(h.astype(jnp.bfloat16), ff1_vmem[l],
                    preferred_element_type=jnp.float32) + ff1_b_ref[l]
        f = jnp.maximum(f, 0.0)
        if l == 0:
            cp_ff2.wait()
        f = jnp.dot(f.astype(jnp.bfloat16), ff2_vmem[l],
                    preferred_element_type=jnp.float32) + bslab(f"ff2_b{l}")
        h = _layernorm(h + f, bslab(f"ln2_w{l}"), bslab(f"ln2_b{l}"))

    # final classifier: concat([f1, f2], -1) @ fc  ==  f1 @ fc_w1 + f2 @ fc_w2
    f1 = h[:d0, :].astype(jnp.bfloat16)
    f2 = h[d0:, :].astype(jnp.bfloat16)
    o_ref[...] = (jnp.dot(f1, wslab("fc_w1"), preferred_element_type=jnp.float32)
                  + jnp.dot(f2, wslab("fc_w2"), preferred_element_type=jnp.float32)
                  + bslab("fc_b"))


# ---------------------- one-time parameter preparation ----------------------
def make_pe(length, d_model):
    position = jnp.arange(length, dtype=jnp.float32)[:, None]
    div_term = jnp.exp(
        jnp.arange(0, d_model, 2, dtype=jnp.float32) * (-math.log(10000.0) / d_model)
    )
    ang = position * div_term
    return jnp.stack([jnp.sin(ang), jnp.cos(ang)], axis=-1).reshape(length, d_model)


def init_params(seed=0):
    key = jax.random.PRNGKey(seed)

    def lin(k, out_d, in_d):
        s = 1.0 / math.sqrt(in_d)
        kw, kb = jax.random.split(k)
        w = jax.random.uniform(kw, (out_d, in_d), jnp.float32, -s, s)   # PyTorch (out, in)
        b = jax.random.uniform(kb, (out_d,), jnp.float32, -s, s)
        return w, b

    keys = iter(jax.random.split(key, 4 * NUM_LAYERS + 4))
    emb_w, emb_b = lin(next(keys), HIDDEN_DIM, INPUT_DIM)
    L = {n: [] for n in ("inp_w", "inp_b", "outp_w", "outp_b", "ln1_w", "ln1_b",
                         "ln2_w", "ln2_b", "ff1_w", "ff1_b", "ff2_w", "ff2_b")}
    for _ in range(NUM_LAYERS):
        w, b = lin(next(keys), 3 * HIDDEN_DIM, HIDDEN_DIM)
        L["inp_w"].append(w); L["inp_b"].append(b)
        w, b = lin(next(keys), HIDDEN_DIM, HIDDEN_DIM)
        L["outp_w"].append(w); L["outp_b"].append(b)
        L["ln1_w"].append(jnp.ones((HIDDEN_DIM,), jnp.float32))
        L["ln1_b"].append(jnp.zeros((HIDDEN_DIM,), jnp.float32))
        L["ln2_w"].append(jnp.ones((HIDDEN_DIM,), jnp.float32))
        L["ln2_b"].append(jnp.zeros((HIDDEN_DIM,), jnp.float32))
        w, b = lin(next(keys), DIM_FF, HIDDEN_DIM)
        L["ff1_w"].append(w); L["ff1_b"].append(b)
        w, b = lin(next(keys), HIDDEN_DIM, DIM_FF)
        L["ff2_w"].append(w); L["ff2_b"].append(b)
    fc_w, fc_b = lin(next(keys), OUTPUT_DIM, 2 * HIDDEN_DIM)
    stacked = {k: jnp.stack(v, axis=0) for k, v in L.items()}
    return dict(emb_w=emb_w, emb_b=emb_b, fc_w=fc_w, fc_b=fc_b, **stacked)


def prepare_params(params, d0):
    """One-time prep: pack parameters into two slabs + two bf16 FF weight slabs.

    This work happens once, NOT per call -- the per-call wrapper only slices+stacks
    the tiny inputs.
    """
    pe = make_pe(d0, HIDDEN_DIM)
    pe_bias = jnp.concatenate([pe, pe], axis=0) + params["emb_b"][None, :]   # (2*d0, H)

    def put(slab, layout, name, mat):
        r0, n, c = layout[name]
        assert mat.shape == (n, c), (name, mat.shape, (n, c))
        return slab.at[r0:r0 + n, :c].set(mat.astype(slab.dtype))

    wl, w_rows = _w_layout()
    w_slab = jnp.zeros((w_rows, SLAB_LANES), jnp.bfloat16)
    w_slab = put(w_slab, wl, "emb_w", params["emb_w"].T)
    for l in range(NUM_LAYERS):
        w_slab = put(w_slab, wl, f"inp_w{l}", params["inp_w"][l].T)
        w_slab = put(w_slab, wl, f"outp_w{l}", params["outp_w"][l].T)
    w_slab = put(w_slab, wl, "fc_w1", params["fc_w"][:, :HIDDEN_DIM].T)
    w_slab = put(w_slab, wl, "fc_w2", params["fc_w"][:, HIDDEN_DIM:].T)

    bl, b_rows = _b_layout(d0)
    b_slab = jnp.zeros((b_rows, SLAB_LANES), jnp.float32)
    b_slab = put(b_slab, bl, "pe_bias", pe_bias)
    for l in range(NUM_LAYERS):
        b_slab = put(b_slab, bl, f"inp_b{l}", params["inp_b"][l][None, :])
        b_slab = put(b_slab, bl, f"outp_b{l}", params["outp_b"][l][None, :])
        b_slab = put(b_slab, bl, f"ln1_w{l}", params["ln1_w"][l][None, :])
        b_slab = put(b_slab, bl, f"ln1_b{l}", params["ln1_b"][l][None, :])
        b_slab = put(b_slab, bl, f"ln2_w{l}", params["ln2_w"][l][None, :])
        b_slab = put(b_slab, bl, f"ln2_b{l}", params["ln2_b"][l][None, :])
        b_slab = put(b_slab, bl, f"ff2_b{l}", params["ff2_b"][l][None, :])
    b_slab = put(b_slab, bl, "fc_b", params["fc_b"][None, :])

    prep = dict(
        d0=d0,
        w_slab=w_slab,                                                      # bf16
        b_slab=b_slab,                                                      # f32
        ff1_w=jnp.transpose(params["ff1_w"], (0, 2, 1)).astype(jnp.bfloat16),  # (L, H, F)
        ff2_w=jnp.transpose(params["ff2_w"], (0, 2, 1)).astype(jnp.bfloat16),  # (L, F, H)
        ff1_b=params["ff1_b"][:, None, :],                                  # (L, 1, F) f32
    )
    return {k: (jax.block_until_ready(v) if isinstance(v, jax.Array) else v)
            for k, v in prep.items()}


# ------------------------------ per-call wrapper ------------------------------
def transformer_classifier(x1, x2, prepped):
    d0 = x1.shape[0]
    assert prepped["d0"] == d0, "prepare_params built for a different length"
    # only dim-1 index D1-1 reaches the output; slice it outside the kernel and
    # stack the two inputs along rows so every matmul runs with M = 2*d0.
    x_in = jnp.concatenate([x1[:, -1, :], x2[:, -1, :]], axis=0)    # (2*d0, INPUT_DIM)

    return pl.pallas_call(
        transformer_classifier_kernel,
        out_shape=jax.ShapeDtypeStruct((d0, OUTPUT_DIM), jnp.float32),
        in_specs=[
            pl.BlockSpec(memory_space=pltpu.MemorySpace.VMEM),   # x_in
            pl.BlockSpec(memory_space=pltpu.MemorySpace.VMEM),   # bf16 weight slab
            pl.BlockSpec(memory_space=pltpu.MemorySpace.VMEM),   # f32 bias/LN/PE slab
            pl.BlockSpec(memory_space=pltpu.MemorySpace.VMEM),   # ff1_b
            pl.BlockSpec(memory_space=pl.ANY),                    # ff1_w (manual DMA)
            pl.BlockSpec(memory_space=pl.ANY),                    # ff2_w (manual DMA)
        ],
        out_specs=pl.BlockSpec(memory_space=pltpu.MemorySpace.VMEM),
        scratch_shapes=[
            pltpu.VMEM((NUM_LAYERS, HIDDEN_DIM, DIM_FF), jnp.bfloat16),
            pltpu.VMEM((NUM_LAYERS, DIM_FF, HIDDEN_DIM), jnp.bfloat16),
            pltpu.SemaphoreType.DMA((2,)),
        ],
        compiler_params=pltpu.CompilerParams(vmem_limit_bytes=16 * 1024 * 1024),
    )(x_in, prepped["w_slab"], prepped["b_slab"], prepped["ff1_b"],
      prepped["ff1_w"], prepped["ff2_w"])


# ------------------------- pure-JAX reference (full D1) -------------------------
def ref_forward(x1, x2, params):
    """Mirrors the kernel's deployment choice: all matmul weights bf16, f32 accumulation."""
    pe = make_pe(x1.shape[0], HIDDEN_DIM)
    bf = jnp.bfloat16
    hi = jax.lax.Precision.HIGHEST
    emb_w = params["emb_w"].astype(bf)
    inp_w = params["inp_w"].astype(bf)
    outp_w = params["outp_w"].astype(bf)
    ff1_w = params["ff1_w"].astype(bf)
    ff2_w = params["ff2_w"].astype(bf)
    fc_w = params["fc_w"].astype(bf)

    def feat(x):
        h = jnp.einsum("abi,hi->abh", x.astype(bf), emb_w,
                       preferred_element_type=jnp.float32) + params["emb_b"]
        h = h + pe[:, None, :]
        for l in range(NUM_LAYERS):
            qkv = jnp.einsum("abh,oh->abo", h.astype(bf), inp_w[l],
                             preferred_element_type=jnp.float32) + params["inp_b"][l]
            q, k, v = jnp.split(qkv, 3, axis=-1)
            a, n = h.shape[0], h.shape[1]
            qh = q.reshape(a, n, NHEAD, HEAD_DIM)
            kh = k.reshape(a, n, NHEAD, HEAD_DIM)
            vh = v.reshape(a, n, NHEAD, HEAD_DIM)
            s = jnp.einsum("anhd,bnhd->nhab", qh, kh, precision=hi,
                           preferred_element_type=jnp.float32) / math.sqrt(HEAD_DIM)
            p = jax.nn.softmax(s, axis=-1)
            o = jnp.einsum("nhab,bnhd->anhd", p, vh, precision=hi,
                           preferred_element_type=jnp.float32).reshape(a, n, HIDDEN_DIM)
            sa = jnp.einsum("abh,oh->abo", o.astype(bf), outp_w[l],
                            preferred_element_type=jnp.float32) + params["outp_b"][l]
            h = _layernorm(h + sa, params["ln1_w"][l], params["ln1_b"][l])
            f = jnp.einsum("abh,oh->abo", h.astype(bf), ff1_w[l],
                           preferred_element_type=jnp.float32) + params["ff1_b"][l]
            f = jax.nn.relu(f)
            f = jnp.einsum("abf,of->abo", f.astype(bf), ff2_w[l],
                           preferred_element_type=jnp.float32) + params["ff2_b"][l]
            h = _layernorm(h + f, params["ln2_w"][l], params["ln2_b"][l])
        return h[:, -1, :]

    out = jnp.concatenate([feat(x1), feat(x2)], axis=-1)
    return jnp.einsum("bh,oh->bo", out.astype(bf), fc_w,
                      preferred_element_type=jnp.float32) + params["fc_b"]


if __name__ == "__main__":
    key = jax.random.PRNGKey(0)
    k1, k2 = jax.random.split(key)
    x1 = jax.random.normal(k1, (D0, D1, INPUT_DIM), jnp.float32)
    x2 = jax.random.normal(k2, (D0, D1, INPUT_DIM), jnp.float32)
    params = init_params(0)
    prepped = prepare_params(params, D0)     # hoisted one-time prep (packing, casts, PE)

    out = jax.block_until_ready(transformer_classifier(x1, x2, prepped))
    ref = jax.block_until_ready(ref_forward(x1, x2, params))
    assert out.shape == (D0, OUTPUT_DIM), out.shape
    max_err = float(jnp.max(jnp.abs(out - ref)))
    # Tolerance covers the mirrored bf16 quantization boundary effects plus the
    # Newton-refined approx reciprocal in the softmax (both ~1e-3-level worst case).
    if max_err > 3e-3:
        raise AssertionError(f"mismatch vs reference, max abs err = {max_err}")
    print("KERNEL_OK")
</pallas_src>

<mosaic_0001>
module attributes {stable_mosaic.version = 11 : i64} {
  func.func @transformer_classifier_kernel(%arg0: memref<8x16xf32, #tpu.memory_space<vmem>>, %arg1: memref<208x128xbf16, #tpu.memory_space<vmem>>, %arg2: memref<24x128xf32, #tpu.memory_space<vmem>>, %arg3: memref<2x1x2048xf32, #tpu.memory_space<vmem>>, %arg4: memref<2x32x2048xbf16, #tpu.memory_space<any>>, %arg5: memref<2x2048x32xbf16, #tpu.memory_space<any>>, %arg6: memref<4x5xf32, #tpu.memory_space<vmem>>, %arg7: memref<2x32x2048xbf16, #tpu.memory_space<vmem>>, %arg8: memref<2x2048x32xbf16, #tpu.memory_space<vmem>>, %arg9: memref<2x!tpu.dma_semaphore, #tpu.memory_space<semaphore_mem>>) attributes {dimension_semantics = [], scalar_prefetch = 0 : i64, scratch_operands = 3 : i64, tpu.core_type = #tpu.core_type<tc>} {
    %c0_i32 = arith.constant 0 : i32
    %0 = tpu.memref_slice %arg9[%c0_i32] : memref<2x!tpu.dma_semaphore, #tpu.memory_space<semaphore_mem>> -> memref<1x!tpu.dma_semaphore, #tpu.memory_space<semaphore_mem>>
    %1 = tpu.memref_squeeze %0 : memref<1x!tpu.dma_semaphore, #tpu.memory_space<semaphore_mem>> -> memref<!tpu.dma_semaphore, #tpu.memory_space<semaphore_mem>>
    tpu.enqueue_dma source(%arg4 : memref<2x32x2048xbf16, #tpu.memory_space<any>>) target(%arg7 : memref<2x32x2048xbf16, #tpu.memory_space<vmem>>) target_semaphore(%1 : memref<!tpu.dma_semaphore, #tpu.memory_space<semaphore_mem>>)
    %c1_i32 = arith.constant 1 : i32
    %2 = tpu.memref_slice %arg9[%c1_i32] : memref<2x!tpu.dma_semaphore, #tpu.memory_space<semaphore_mem>> -> memref<1x!tpu.dma_semaphore, #tpu.memory_space<semaphore_mem>>
    %3 = tpu.memref_squeeze %2 : memref<1x!tpu.dma_semaphore, #tpu.memory_space<semaphore_mem>> -> memref<!tpu.dma_semaphore, #tpu.memory_space<semaphore_mem>>
    tpu.enqueue_dma source(%arg5 : memref<2x2048x32xbf16, #tpu.memory_space<any>>) target(%arg8 : memref<2x2048x32xbf16, #tpu.memory_space<vmem>>) target_semaphore(%3 : memref<!tpu.dma_semaphore, #tpu.memory_space<semaphore_mem>>)
    %4 = tpu.iota {dimensions = array<i32: 0>} : vector<8x8xi32>
    %5 = tpu.iota {dimensions = array<i32: 1>} : vector<8x8xi32>
    %c4_i32 = arith.constant 4 : i32
    %6 = vector.broadcast %c4_i32 : i32 to vector<8x8xi32>
    %7 = arith.cmpi slt, %4, %6 : vector<8x8xi32>
    %c4_i32_0 = arith.constant 4 : i32
    %8 = vector.broadcast %c4_i32_0 : i32 to vector<8x8xi32>
    %9 = arith.cmpi slt, %5, %8 : vector<8x8xi32>
    %10 = arith.xori %7, %9 : vector<8x8xi1>
    %cst = arith.constant dense<true> : vector<8x8xi1>
    %11 = arith.xori %10, %cst : vector<8x8xi1>
    %c0 = arith.constant 0 : index
    %c0_1 = arith.constant 0 : index
    %12 = vector.load %arg0[%c0, %c0_1] : memref<8x16xf32, #tpu.memory_space<vmem>>, vector<8x16xf32>
    %13 = arith.truncf %12 : vector<8x16xf32> to vector<8x16xbf16>
    %c0_2 = arith.constant 0 : index
    %c0_3 = arith.constant 0 : index
    %14 = vector.load %arg1[%c0_2, %c0_3] : memref<208x128xbf16, #tpu.memory_space<vmem>>, vector<16x32xbf16>
    %cst_4 = arith.constant dense<0.000000e+00> : vector<8x32xf32>
    %15 = tpu.matmul %13, %14, %cst_4 {dimension_numbers = #tpu.dot_dimension_numbers<[1], [0], [0], [1], [0, 0, 1, 1], [], []>} : vector<8x16xbf16>, vector<16x32xbf16>, vector<8x32xf32> -> vector<8x32xf32>
    %c0_5 = arith.constant 0 : index
    %c0_6 = arith.constant 0 : index
    %16 = vector.load %arg2[%c0_5, %c0_6] : memref<24x128xf32, #tpu.memory_space<vmem>>, vector<8x32xf32>
    %17 = arith.addf %15, %16 : vector<8x32xf32>
    %18 = arith.truncf %17 : vector<8x32xf32> to vector<8x32xbf16>
    %c16 = arith.constant 16 : index
    %c0_7 = arith.constant 0 : index
    %19 = vector.load %arg1[%c16, %c0_7] : memref<208x128xbf16, #tpu.memory_space<vmem>>, vector<32x96xbf16>
    %cst_8 = arith.constant dense<0.000000e+00> : vector<8x96xf32>
    %20 = tpu.matmul %18, %19, %cst_8 {dimension_numbers = #tpu.dot_dimension_numbers<[1], [0], [0], [1], [0, 0, 1, 1], [], []>} : vector<8x32xbf16>, vector<32x96xbf16>, vector<8x96xf32> -> vector<8x96xf32>
    %c8 = arith.constant 8 : index
    %c0_9 = arith.constant 0 : index
    %21 = vector.load %arg2[%c8, %c0_9] : memref<24x128xf32, #tpu.memory_space<vmem>>, vector<1x96xf32>
    %22 = vector.broadcast %21 : vector<1x96xf32> to vector<8x96xf32>
    %23 = arith.addf %20, %22 : vector<8x96xf32>
    %c9 = arith.constant 9 : index
    %c0_10 = arith.constant 0 : index
    %24 = vector.load %arg2[%c9, %c0_10] : memref<24x128xf32, #tpu.memory_space<vmem>>, vector<1x32xf32>
    %25 = vector.extract_strided_slice %23 {offsets = [0, 0], sizes = [8, 8], strides = [1, 1]} : vector<8x96xf32> to vector<8x8xf32>
    %26 = vector.extract_strided_slice %23 {offsets = [0, 32], sizes = [8, 8], strides = [1, 1]} : vector<8x96xf32> to vector<8x8xf32>
    %27 = vector.extract_strided_slice %23 {offsets = [0, 64], sizes = [8, 8], strides = [1, 1]} : vector<8x96xf32> to vector<8x8xf32>
    %cst_11 = arith.constant dense<0.000000e+00> : vector<8x8xf32>
    %28 = tpu.matmul %25, %26, %cst_11 {dimension_numbers = #tpu.dot_dimension_numbers<[1], [1], [0], [0], [0, 0, 1, 0], [], []>} : vector<8x8xf32>, vector<8x8xf32>, vector<8x8xf32> -> vector<8x8xf32>
    %cst_12 = arith.constant 0.353553385 : f32
    %29 = vector.broadcast %cst_12 : f32 to vector<8x8xf32>
    %30 = arith.mulf %28, %29 : vector<8x8xf32>
    %cst_13 = arith.constant -1.000000e+30 : f32
    %31 = vector.broadcast %cst_13 : f32 to vector<8x8xf32>
    %32 = arith.select %11, %30, %31 : vector<8x8xi1>, vector<8x8xf32>
    %cst_14 = arith.constant dense<0xFF800000> : vector<8xf32>
    %33 = vector.multi_reduction <maximumf>, %32, %cst_14 [1] : vector<8x8xf32> to vector<8xf32>
    %34 = vector.shape_cast %33 : vector<8xf32> to vector<8x1xf32>
    %35 = vector.broadcast %34 : vector<8x1xf32> to vector<8x8xf32>
    %36 = arith.subf %32, %35 : vector<8x8xf32>
    %37 = math.exp %36 : vector<8x8xf32>
    %cst_15 = arith.constant dense<0.000000e+00> : vector<8xf32>
    %38 = vector.multi_reduction <add>, %37, %cst_15 [1] : vector<8x8xf32> to vector<8xf32>
    %39 = vector.shape_cast %38 : vector<8xf32> to vector<8x1xf32>
    %40 = tpu.reciprocal %39 {approx = true} : vector<8x1xf32> -> vector<8x1xf32>
    %41 = arith.mulf %39, %40 : vector<8x1xf32>
    %cst_16 = arith.constant 2.000000e+00 : f32
    %42 = vector.broadcast %cst_16 : f32 to vector<8x1xf32>
    %43 = arith.subf %42, %41 : vector<8x1xf32>
    %44 = arith.mulf %40, %43 : vector<8x1xf32>
    %45 = vector.broadcast %44 : vector<8x1xf32> to vector<8x8xf32>
    %46 = arith.mulf %37, %45 : vector<8x8xf32>
    %cst_17 = arith.constant dense<0.000000e+00> : vector<8x8xf32>
    %47 = tpu.matmul %46, %27, %cst_17 {dimension_numbers = #tpu.dot_dimension_numbers<[1], [0], [0], [1], [0, 0, 1, 1], [], []>} : vector<8x8xf32>, vector<8x8xf32>, vector<8x8xf32> -> vector<8x8xf32>
    %c48 = arith.constant 48 : index
    %c0_18 = arith.constant 0 : index
    %48 = vector.load %arg1[%c48, %c0_18] : memref<208x128xbf16, #tpu.memory_space<vmem>>, vector<8x32xbf16>
    %49 = arith.truncf %47 : vector<8x8xf32> to vector<8x8xbf16>
    %cst_19 = arith.constant dense<0.000000e+00> : vector<8x32xf32>
    %50 = tpu.matmul %49, %48, %cst_19 {dimension_numbers = #tpu.dot_dimension_numbers<[1], [0], [0], [1], [0, 0, 1, 1], [], []>} : vector<8x8xbf16>, vector<8x32xbf16>, vector<8x32xf32> -> vector<8x32xf32>
    %51 = vector.broadcast %24 : vector<1x32xf32> to vector<8x32xf32>
    %52 = arith.addf %51, %50 : vector<8x32xf32>
    %53 = vector.extract_strided_slice %23 {offsets = [0, 8], sizes = [8, 8], strides = [1, 1]} : vector<8x96xf32> to vector<8x8xf32>
    %54 = vector.extract_strided_slice %23 {offsets = [0, 40], sizes = [8, 8], strides = [1, 1]} : vector<8x96xf32> to vector<8x8xf32>
    %55 = vector.extract_strided_slice %23 {offsets = [0, 72], sizes = [8, 8], strides = [1, 1]} : vector<8x96xf32> to vector<8x8xf32>
    %cst_20 = arith.constant dense<0.000000e+00> : vector<8x8xf32>
    %56 = tpu.matmul %53, %54, %cst_20 {dimension_numbers = #tpu.dot_dimension_numbers<[1], [1], [0], [0], [0, 0, 1, 0], [], []>} : vector<8x8xf32>, vector<8x8xf32>, vector<8x8xf32> -> vector<8x8xf32>
    %cst_21 = arith.constant 0.353553385 : f32
    %57 = vector.broadcast %cst_21 : f32 to vector<8x8xf32>
    %58 = arith.mulf %56, %57 : vector<8x8xf32>
    %cst_22 = arith.constant -1.000000e+30 : f32
    %59 = vector.broadcast %cst_22 : f32 to vector<8x8xf32>
    %60 = arith.select %11, %58, %59 : vector<8x8xi1>, vector<8x8xf32>
    %cst_23 = arith.constant dense<0xFF800000> : vector<8xf32>
    %61 = vector.multi_reduction <maximumf>, %60, %cst_23 [1] : vector<8x8xf32> to vector<8xf32>
    %62 = vector.shape_cast %61 : vector<8xf32> to vector<8x1xf32>
    %63 = vector.broadcast %62 : vector<8x1xf32> to vector<8x8xf32>
    %64 = arith.subf %60, %63 : vector<8x8xf32>
    %65 = math.exp %64 : vector<8x8xf32>
    %cst_24 = arith.constant dense<0.000000e+00> : vector<8xf32>
    %66 = vector.multi_reduction <add>, %65, %cst_24 [1] : vector<8x8xf32> to vector<8xf32>
    %67 = vector.shape_cast %66 : vector<8xf32> to vector<8x1xf32>
    %68 = tpu.reciprocal %67 {approx = true} : vector<8x1xf32> -> vector<8x1xf32>
    %69 = arith.mulf %67, %68 : vector<8x1xf32>
    %cst_25 = arith.constant 2.000000e+00 : f32
    %70 = vector.broadcast %cst_25 : f32 to vector<8x1xf32>
    %71 = arith.subf %70, %69 : vector<8x1xf32>
    %72 = arith.mulf %68, %71 : vector<8x1xf32>
    %73 = vector.broadcast %72 : vector<8x1xf32> to vector<8x8xf32>
    %74 = arith.mulf %65, %73 : vector<8x8xf32>
    %cst_26 = arith.constant dense<0.000000e+00> : vector<8x8xf32>
    %75 = tpu.matmul %74, %55, %cst_26 {dimension_numbers = #tpu.dot_dimension_numbers<[1], [0], [0], [1], [0, 0, 1, 1], [], []>} : vector<8x8xf32>, vector<8x8xf32>, vector<8x8xf32> -> vector<8x8xf32>
    %c56 = arith.constant 56 : index
    %c0_27 = arith.constant 0 : index
    %76 = vector.load %arg1[%c56, %c0_27] : memref<208x128xbf16, #tpu.memory_space<vmem>>, vector<8x32xbf16>
    %77 = arith.truncf %75 : vector<8x8xf32> to vector<8x8xbf16>
    %cst_28 = arith.constant dense<0.000000e+00> : vector<8x32xf32>
    %78 = tpu.matmul %77, %76, %cst_28 {dimension_numbers = #tpu.dot_dimension_numbers<[1], [0], [0], [1], [0, 0, 1, 1], [], []>} : vector<8x8xbf16>, vector<8x32xbf16>, vector<8x32xf32> -> vector<8x32xf32>
    %79 = arith.addf %52, %78 : vector<8x32xf32>
    %80 = vector.extract_strided_slice %23 {offsets = [0, 16], sizes = [8, 8], strides = [1, 1]} : vector<8x96xf32> to vector<8x8xf32>
    %81 = vector.extract_strided_slice %23 {offsets = [0, 48], sizes = [8, 8], strides = [1, 1]} : vector<8x96xf32> to vector<8x8xf32>
    %82 = vector.extract_strided_slice %23 {offsets = [0, 80], sizes = [8, 8], strides = [1, 1]} : vector<8x96xf32> to vector<8x8xf32>
    %cst_29 = arith.constant dense<0.000000e+00> : vector<8x8xf32>
    %83 = tpu.matmul %80, %81, %cst_29 {dimension_numbers = #tpu.dot_dimension_numbers<[1], [1], [0], [0], [0, 0, 1, 0], [], []>} : vector<8x8xf32>, vector<8x8xf32>, vector<8x8xf32> -> vector<8x8xf32>
    %cst_30 = arith.constant 0.353553385 : f32
    %84 = vector.broadcast %cst_30 : f32 to vector<8x8xf32>
    %85 = arith.mulf %83, %84 : vector<8x8xf32>
    %cst_31 = arith.constant -1.000000e+30 : f32
    %86 = vector.broadcast %cst_31 : f32 to vector<8x8xf32>
    %87 = arith.select %11, %85, %86 : vector<8x8xi1>, vector<8x8xf32>
    %cst_32 = arith.constant dense<0xFF800000> : vector<8xf32>
    %88 = vector.multi_reduction <maximumf>, %87, %cst_32 [1] : vector<8x8xf32> to vector<8xf32>
    %89 = vector.shape_cast %88 : vector<8xf32> to vector<8x1xf32>
    %90 = vector.broadcast %89 : vector<8x1xf32> to vector<8x8xf32>
    %91 = arith.subf %87, %90 : vector<8x8xf32>
    %92 = math.exp %91 : vector<8x8xf32>
    %cst_33 = arith.constant dense<0.000000e+00> : vector<8xf32>
    %93 = vector.multi_reduction <add>, %92, %cst_33 [1] : vector<8x8xf32> to vector<8xf32>
    %94 = vector.shape_cast %93 : vector<8xf32> to vector<8x1xf32>
    %95 = tpu.reciprocal %94 {approx = true} : vector<8x1xf32> -> vector<8x1xf32>
    %96 = arith.mulf %94, %95 : vector<8x1xf32>
    %cst_34 = arith.constant 2.000000e+00 : f32
    %97 = vector.broadcast %cst_34 : f32 to vector<8x1xf32>
    %98 = arith.subf %97, %96 : vector<8x1xf32>
    %99 = arith.mulf %95, %98 : vector<8x1xf32>
    %100 = vector.broadcast %99 : vector<8x1xf32> to vector<8x8xf32>
    %101 = arith.mulf %92, %100 : vector<8x8xf32>
    %cst_35 = arith.constant dense<0.000000e+00> : vector<8x8xf32>
    %102 = tpu.matmul %101, %82, %cst_35 {dimension_numbers = #tpu.dot_dimension_numbers<[1], [0], [0], [1], [0, 0, 1, 1], [], []>} : vector<8x8xf32>, vector<8x8xf32>, vector<8x8xf32> -> vector<8x8xf32>
    %c64 = arith.constant 64 : index
    %c0_36 = arith.constant 0 : index
    %103 = vector.load %arg1[%c64, %c0_36] : memref<208x128xbf16, #tpu.memory_space<vmem>>, vector<8x32xbf16>
    %104 = arith.truncf %102 : vector<8x8xf32> to vector<8x8xbf16>
    %cst_37 = arith.constant dense<0.000000e+00> : vector<8x32xf32>
    %105 = tpu.matmul %104, %103, %cst_37 {dimension_numbers = #tpu.dot_dimension_numbers<[1], [0], [0], [1], [0, 0, 1, 1], [], []>} : vector<8x8xbf16>, vector<8x32xbf16>, vector<8x32xf32> -> vector<8x32xf32>
    %106 = arith.addf %79, %105 : vector<8x32xf32>
    %107 = vector.extract_strided_slice %23 {offsets = [0, 24], sizes = [8, 8], strides = [1, 1]} : vector<8x96xf32> to vector<8x8xf32>
    %108 = vector.extract_strided_slice %23 {offsets = [0, 56], sizes = [8, 8], strides = [1, 1]} : vector<8x96xf32> to vector<8x8xf32>
    %109 = vector.extract_strided_slice %23 {offsets = [0, 88], sizes = [8, 8], strides = [1, 1]} : vector<8x96xf32> to vector<8x8xf32>
    %cst_38 = arith.constant dense<0.000000e+00> : vector<8x8xf32>
    %110 = tpu.matmul %107, %108, %cst_38 {dimension_numbers = #tpu.dot_dimension_numbers<[1], [1], [0], [0], [0, 0, 1, 0], [], []>} : vector<8x8xf32>, vector<8x8xf32>, vector<8x8xf32> -> vector<8x8xf32>
    %cst_39 = arith.constant 0.353553385 : f32
    %111 = vector.broadcast %cst_39 : f32 to vector<8x8xf32>
    %112 = arith.mulf %110, %111 : vector<8x8xf32>
    %cst_40 = arith.constant -1.000000e+30 : f32
    %113 = vector.broadcast %cst_40 : f32 to vector<8x8xf32>
    %114 = arith.select %11, %112, %113 : vector<8x8xi1>, vector<8x8xf32>
    %cst_41 = arith.constant dense<0xFF800000> : vector<8xf32>
    %115 = vector.multi_reduction <maximumf>, %114, %cst_41 [1] : vector<8x8xf32> to vector<8xf32>
    %116 = vector.shape_cast %115 : vector<8xf32> to vector<8x1xf32>
    %117 = vector.broadcast %116 : vector<8x1xf32> to vector<8x8xf32>
    %118 = arith.subf %114, %117 : vector<8x8xf32>
    %119 = math.exp %118 : vector<8x8xf32>
    %cst_42 = arith.constant dense<0.000000e+00> : vector<8xf32>
    %120 = vector.multi_reduction <add>, %119, %cst_42 [1] : vector<8x8xf32> to vector<8xf32>
    %121 = vector.shape_cast %120 : vector<8xf32> to vector<8x1xf32>
    %122 = tpu.reciprocal %121 {approx = true} : vector<8x1xf32> -> vector<8x1xf32>
    %123 = arith.mulf %121, %122 : vector<8x1xf32>
    %cst_43 = arith.constant 2.000000e+00 : f32
    %124 = vector.broadcast %cst_43 : f32 to vector<8x1xf32>
    %125 = arith.subf %124, %123 : vector<8x1xf32>
    %126 = arith.mulf %122, %125 : vector<8x1xf32>
    %127 = vector.broadcast %126 : vector<8x1xf32> to vector<8x8xf32>
    %128 = arith.mulf %119, %127 : vector<8x8xf32>
    %cst_44 = arith.constant dense<0.000000e+00> : vector<8x8xf32>
    %129 = tpu.matmul %128, %109, %cst_44 {dimension_numbers = #tpu.dot_dimension_numbers<[1], [0], [0], [1], [0, 0, 1, 1], [], []>} : vector<8x8xf32>, vector<8x8xf32>, vector<8x8xf32> -> vector<8x8xf32>
    %c72 = arith.constant 72 : index
    %c0_45 = arith.constant 0 : index
    %130 = vector.load %arg1[%c72, %c0_45] : memref<208x128xbf16, #tpu.memory_space<vmem>>, vector<8x32xbf16>
    %131 = arith.truncf %129 : vector<8x8xf32> to vector<8x8xbf16>
    %cst_46 = arith.constant dense<0.000000e+00> : vector<8x32xf32>
    %132 = tpu.matmul %131, %130, %cst_46 {dimension_numbers = #tpu.dot_dimension_numbers<[1], [0], [0], [1], [0, 0, 1, 1], [], []>} : vector<8x8xbf16>, vector<8x32xbf16>, vector<8x32xf32> -> vector<8x32xf32>
    %133 = arith.addf %106, %132 : vector<8x32xf32>
    %134 = arith.addf %17, %133 : vector<8x32xf32>
    %c10 = arith.constant 10 : index
    %c0_47 = arith.constant 0 : index
    %135 = vector.load %arg2[%c10, %c0_47] : memref<24x128xf32, #tpu.memory_space<vmem>>, vector<1x32xf32>
    %c11 = arith.constant 11 : index
    %c0_48 = arith.constant 0 : index
    %136 = vector.load %arg2[%c11, %c0_48] : memref<24x128xf32, #tpu.memory_space<vmem>>, vector<1x32xf32>
    %cst_49 = arith.constant dense<0.000000e+00> : vector<8xf32>
    %137 = vector.multi_reduction <add>, %134, %cst_49 [1] : vector<8x32xf32> to vector<8xf32>
    %138 = vector.shape_cast %137 : vector<8xf32> to vector<8x1xf32>
    %cst_50 = arith.constant 3.200000e+01 : f32
    %139 = vector.broadcast %cst_50 : f32 to vector<8x1xf32>
    %140 = arith.divf %138, %139 : vector<8x1xf32>
    %141 = vector.broadcast %140 : vector<8x1xf32> to vector<8x32xf32>
    %142 = arith.subf %134, %141 : vector<8x32xf32>
    %143 = arith.mulf %142, %142 : vector<8x32xf32>
    %cst_51 = arith.constant dense<0.000000e+00> : vector<8xf32>
    %144 = vector.multi_reduction <add>, %143, %cst_51 [1] : vector<8x32xf32> to vector<8xf32>
    %145 = vector.shape_cast %144 : vector<8xf32> to vector<8x1xf32>
    %cst_52 = arith.constant 3.200000e+01 : f32
    %146 = vector.broadcast %cst_52 : f32 to vector<8x1xf32>
    %147 = arith.divf %145, %146 : vector<8x1xf32>
    %cst_53 = arith.constant 9.99999974E-6 : f32
    %148 = vector.broadcast %cst_53 : f32 to vector<8x1xf32>
    %149 = arith.addf %147, %148 : vector<8x1xf32>
    %150 = math.rsqrt %149 : vector<8x1xf32>
    %151 = vector.broadcast %150 : vector<8x1xf32> to vector<8x32xf32>
    %152 = arith.mulf %142, %151 : vector<8x32xf32>
    %153 = vector.broadcast %135 : vector<1x32xf32> to vector<8x32xf32>
    %154 = arith.mulf %152, %153 : vector<8x32xf32>
    %155 = vector.broadcast %136 : vector<1x32xf32> to vector<8x32xf32>
    %156 = arith.addf %154, %155 : vector<8x32xf32>
    %c0_i32_54 = arith.constant 0 : i32
    %157 = tpu.memref_slice %arg9[%c0_i32_54] : memref<2x!tpu.dma_semaphore, #tpu.memory_space<semaphore_mem>> -> memref<1x!tpu.dma_semaphore, #tpu.memory_space<semaphore_mem>>
    %158 = tpu.memref_squeeze %157 : memref<1x!tpu.dma_semaphore, #tpu.memory_space<semaphore_mem>> -> memref<!tpu.dma_semaphore, #tpu.memory_space<semaphore_mem>>
    tpu.wait_dma2 semaphore(%158 : memref<!tpu.dma_semaphore, #tpu.memory_space<semaphore_mem>>) src(%arg4 : memref<2x32x2048xbf16, #tpu.memory_space<any>>) dst(%arg7 : memref<2x32x2048xbf16, #tpu.memory_space<vmem>>)
    %159 = arith.truncf %156 : vector<8x32xf32> to vector<8x32xbf16>
    %c0_55 = arith.constant 0 : index
    %c0_56 = arith.constant 0 : index
    %c0_57 = arith.constant 0 : index
    %160 = vector.load %arg7[%c0_55, %c0_56, %c0_57] : memref<2x32x2048xbf16, #tpu.memory_space<vmem>>, vector<1x32x2048xbf16>
    %161 = vector.shape_cast %160 : vector<1x32x2048xbf16> to vector<32x2048xbf16>
    %cst_58 = arith.constant dense<0.000000e+00> : vector<8x2048xf32>
    %162 = tpu.matmul %159, %161, %cst_58 {dimension_numbers = #tpu.dot_dimension_numbers<[1], [0], [0], [1], [0, 0, 1, 1], [], []>} : vector<8x32xbf16>, vector<32x2048xbf16>, vector<8x2048xf32> -> vector<8x2048xf32>
    %c0_59 = arith.constant 0 : index
    %c0_60 = arith.constant 0 : index
    %c0_61 = arith.constant 0 : index
    %163 = vector.load %arg3[%c0_59, %c0_60, %c0_61] : memref<2x1x2048xf32, #tpu.memory_space<vmem>>, vector<1x1x2048xf32>
    %164 = vector.shape_cast %163 : vector<1x1x2048xf32> to vector<1x2048xf32>
    %165 = vector.broadcast %164 : vector<1x2048xf32> to vector<8x2048xf32>
    %166 = arith.addf %162, %165 : vector<8x2048xf32>
    %cst_62 = arith.constant 0.000000e+00 : f32
    %167 = vector.broadcast %cst_62 : f32 to vector<8x2048xf32>
    %168 = arith.maximumf %166, %167 : vector<8x2048xf32>
    %c1_i32_63 = arith.constant 1 : i32
    %169 = tpu.memref_slice %arg9[%c1_i32_63] : memref<2x!tpu.dma_semaphore, #tpu.memory_space<semaphore_mem>> -> memref<1x!tpu.dma_semaphore, #tpu.memory_space<semaphore_mem>>
    %170 = tpu.memref_squeeze %169 : memref<1x!tpu.dma_semaphore, #tpu.memory_space<semaphore_mem>> -> memref<!tpu.dma_semaphore, #tpu.memory_space<semaphore_mem>>
    tpu.wait_dma2 semaphore(%170 : memref<!tpu.dma_semaphore, #tpu.memory_space<semaphore_mem>>) src(%arg5 : memref<2x2048x32xbf16, #tpu.memory_space<any>>) dst(%arg8 : memref<2x2048x32xbf16, #tpu.memory_space<vmem>>)
    %171 = arith.truncf %168 : vector<8x2048xf32> to vector<8x2048xbf16>
    %c0_64 = arith.constant 0 : index
    %c0_65 = arith.constant 0 : index
    %c0_66 = arith.constant 0 : index
    %172 = vector.load %arg8[%c0_64, %c0_65, %c0_66] : memref<2x2048x32xbf16, #tpu.memory_space<vmem>>, vector<1x2048x32xbf16>
    %173 = vector.shape_cast %172 : vector<1x2048x32xbf16> to vector<2048x32xbf16>
    %cst_67 = arith.constant dense<0.000000e+00> : vector<8x32xf32>
    %174 = tpu.matmul %171, %173, %cst_67 {dimension_numbers = #tpu.dot_dimension_numbers<[1], [0], [0], [1], [0, 0, 1, 1], [], []>} : vector<8x2048xbf16>, vector<2048x32xbf16>, vector<8x32xf32> -> vector<8x32xf32>
    %c14 = arith.constant 14 : index
    %c0_68 = arith.constant 0 : index
    %175 = vector.load %arg2[%c14, %c0_68] : memref<24x128xf32, #tpu.memory_space<vmem>>, vector<1x32xf32>
    %176 = vector.broadcast %175 : vector<1x32xf32> to vector<8x32xf32>
    %177 = arith.addf %174, %176 : vector<8x32xf32>
    %178 = arith.addf %156, %177 : vector<8x32xf32>
    %c12 = arith.constant 12 : index
    %c0_69 = arith.constant 0 : index
    %179 = vector.load %arg2[%c12, %c0_69] : memref<24x128xf32, #tpu.memory_space<vmem>>, vector<1x32xf32>
    %c13 = arith.constant 13 : index
    %c0_70 = arith.constant 0 : index
    %180 = vector.load %arg2[%c13, %c0_70] : memref<24x128xf32, #tpu.memory_space<vmem>>, vector<1x32xf32>
    %cst_71 = arith.constant dense<0.000000e+00> : vector<8xf32>
    %181 = vector.multi_reduction <add>, %178, %cst_71 [1] : vector<8x32xf32> to vector<8xf32>
    %182 = vector.shape_cast %181 : vector<8xf32> to vector<8x1xf32>
    %cst_72 = arith.constant 3.200000e+01 : f32
    %183 = vector.broadcast %cst_72 : f32 to vector<8x1xf32>
    %184 = arith.divf %182, %183 : vector<8x1xf32>
    %185 = vector.broadcast %184 : vector<8x1xf32> to vector<8x32xf32>
    %186 = arith.subf %178, %185 : vector<8x32xf32>
    %187 = arith.mulf %186, %186 : vector<8x32xf32>
    %cst_73 = arith.constant dense<0.000000e+00> : vector<8xf32>
    %188 = vector.multi_reduction <add>, %187, %cst_73 [1] : vector<8x32xf32> to vector<8xf32>
    %189 = vector.shape_cast %188 : vector<8xf32> to vector<8x1xf32>
    %cst_74 = arith.constant 3.200000e+01 : f32
    %190 = vector.broadcast %cst_74 : f32 to vector<8x1xf32>
    %191 = arith.divf %189, %190 : vector<8x1xf32>
    %cst_75 = arith.constant 9.99999974E-6 : f32
    %192 = vector.broadcast %cst_75 : f32 to vector<8x1xf32>
    %193 = arith.addf %191, %192 : vector<8x1xf32>
    %194 = math.rsqrt %193 : vector<8x1xf32>
    %195 = vector.broadcast %194 : vector<8x1xf32> to vector<8x32xf32>
    %196 = arith.mulf %186, %195 : vector<8x32xf32>
    %197 = vector.broadcast %179 : vector<1x32xf32> to vector<8x32xf32>
    %198 = arith.mulf %196, %197 : vector<8x32xf32>
    %199 = vector.broadcast %180 : vector<1x32xf32> to vector<8x32xf32>
    %200 = arith.addf %198, %199 : vector<8x32xf32>
    %201 = arith.truncf %200 : vector<8x32xf32> to vector<8x32xbf16>
    %c80 = arith.constant 80 : index
    %c0_76 = arith.constant 0 : index
    %202 = vector.load %arg1[%c80, %c0_76] : memref<208x128xbf16, #tpu.memory_space<vmem>>, vector<32x96xbf16>
    %cst_77 = arith.constant dense<0.000000e+00> : vector<8x96xf32>
    %203 = tpu.matmul %201, %202, %cst_77 {dimension_numbers = #tpu.dot_dimension_numbers<[1], [0], [0], [1], [0, 0, 1, 1], [], []>} : vector<8x32xbf16>, vector<32x96xbf16>, vector<8x96xf32> -> vector<8x96xf32>
    %c15 = arith.constant 15 : index
    %c0_78 = arith.constant 0 : index
    %204 = vector.load %arg2[%c15, %c0_78] : memref<24x128xf32, #tpu.memory_space<vmem>>, vector<1x96xf32>
    %205 = vector.broadcast %204 : vector<1x96xf32> to vector<8x96xf32>
    %206 = arith.addf %203, %205 : vector<8x96xf32>
    %c16_79 = arith.constant 16 : index
    %c0_80 = arith.constant 0 : index
    %207 = vector.load %arg2[%c16_79, %c0_80] : memref<24x128xf32, #tpu.memory_space<vmem>>, vector<1x32xf32>
    %208 = vector.extract_strided_slice %206 {offsets = [0, 0], sizes = [8, 8], strides = [1, 1]} : vector<8x96xf32> to vector<8x8xf32>
    %209 = vector.extract_strided_slice %206 {offsets = [0, 32], sizes = [8, 8], strides = [1, 1]} : vector<8x96xf32> to vector<8x8xf32>
    %210 = vector.extract_strided_slice %206 {offsets = [0, 64], sizes = [8, 8], strides = [1, 1]} : vector<8x96xf32> to vector<8x8xf32>
    %cst_81 = arith.constant dense<0.000000e+00> : vector<8x8xf32>
    %211 = tpu.matmul %208, %209, %cst_81 {dimension_numbers = #tpu.dot_dimension_numbers<[1], [1], [0], [0], [0, 0, 1, 0], [], []>} : vector<8x8xf32>, vector<8x8xf32>, vector<8x8xf32> -> vector<8x8xf32>
    %cst_82 = arith.constant 0.353553385 : f32
    %212 = vector.broadcast %cst_82 : f32 to vector<8x8xf32>
    %213 = arith.mulf %211, %212 : vector<8x8xf32>
    %cst_83 = arith.constant -1.000000e+30 : f32
    %214 = vector.broadcast %cst_83 : f32 to vector<8x8xf32>
    %215 = arith.select %11, %213, %214 : vector<8x8xi1>, vector<8x8xf32>
    %cst_84 = arith.constant dense<0xFF800000> : vector<8xf32>
    %216 = vector.multi_reduction <maximumf>, %215, %cst_84 [1] : vector<8x8xf32> to vector<8xf32>
    %217 = vector.shape_cast %216 : vector<8xf32> to vector<8x1xf32>
    %218 = vector.broadcast %217 : vector<8x1xf32> to vector<8x8xf32>
    %219 = arith.subf %215, %218 : vector<8x8xf32>
    %220 = math.exp %219 : vector<8x8xf32>
    %cst_85 = arith.constant dense<0.000000e+00> : vector<8xf32>
    %221 = vector.multi_reduction <add>, %220, %cst_85 [1] : vector<8x8xf32> to vector<8xf32>
    %222 = vector.shape_cast %221 : vector<8xf32> to vector<8x1xf32>
    %223 = tpu.reciprocal %222 {approx = true} : vector<8x1xf32> -> vector<8x1xf32>
    %224 = arith.mulf %222, %223 : vector<8x1xf32>
    %cst_86 = arith.constant 2.000000e+00 : f32
    %225 = vector.broadcast %cst_86 : f32 to vector<8x1xf32>
    %226 = arith.subf %225, %224 : vector<8x1xf32>
    %227 = arith.mulf %223, %226 : vector<8x1xf32>
    %228 = vector.broadcast %227 : vector<8x1xf32> to vector<8x8xf32>
    %229 = arith.mulf %220, %228 : vector<8x8xf32>
    %cst_87 = arith.constant dense<0.000000e+00> : vector<8x8xf32>
    %230 = tpu.matmul %229, %210, %cst_87 {dimension_numbers = #tpu.dot_dimension_numbers<[1], [0], [0], [1], [0, 0, 1, 1], [], []>} : vector<8x8xf32>, vector<8x8xf32>, vector<8x8xf32> -> vector<8x8xf32>
    %c112 = arith.constant 112 : index
    %c0_88 = arith.constant 0 : index
    %231 = vector.load %arg1[%c112, %c0_88] : memref<208x128xbf16, #tpu.memory_space<vmem>>, vector<8x32xbf16>
    %232 = arith.truncf %230 : vector<8x8xf32> to vector<8x8xbf16>
    %cst_89 = arith.constant dense<0.000000e+00> : vector<8x32xf32>
    %233 = tpu.matmul %232, %231, %cst_89 {dimension_numbers = #tpu.dot_dimension_numbers<[1], [0], [0], [1], [0, 0, 1, 1], [], []>} : vector<8x8xbf16>, vector<8x32xbf16>, vector<8x32xf32> -> vector<8x32xf32>
    %234 = vector.broadcast %207 : vector<1x32xf32> to vector<8x32xf32>
    %235 = arith.addf %234, %233 : vector<8x32xf32>
    %236 = vector.extract_strided_slice %206 {offsets = [0, 8], sizes = [8, 8], strides = [1, 1]} : vector<8x96xf32> to vector<8x8xf32>
    %237 = vector.extract_strided_slice %206 {offsets = [0, 40], sizes = [8, 8], strides = [1, 1]} : vector<8x96xf32> to vector<8x8xf32>
    %238 = vector.extract_strided_slice %206 {offsets = [0, 72], sizes = [8, 8], strides = [1, 1]} : vector<8x96xf32> to vector<8x8xf32>
    %cst_90 = arith.constant dense<0.000000e+00> : vector<8x8xf32>
    %239 = tpu.matmul %236, %237, %cst_90 {dimension_numbers = #tpu.dot_dimension_numbers<[1], [1], [0], [0], [0, 0, 1, 0], [], []>} : vector<8x8xf32>, vector<8x8xf32>, vector<8x8xf32> -> vector<8x8xf32>
    %cst_91 = arith.constant 0.353553385 : f32
    %240 = vector.broadcast %cst_91 : f32 to vector<8x8xf32>
    %241 = arith.mulf %239, %240 : vector<8x8xf32>
    %cst_92 = arith.constant -1.000000e+30 : f32
    %242 = vector.broadcast %cst_92 : f32 to vector<8x8xf32>
    %243 = arith.select %11, %241, %242 : vector<8x8xi1>, vector<8x8xf32>
    %cst_93 = arith.constant dense<0xFF800000> : vector<8xf32>
    %244 = vector.multi_reduction <maximumf>, %243, %cst_93 [1] : vector<8x8xf32> to vector<8xf32>
    %245 = vector.shape_cast %244 : vector<8xf32> to vector<8x1xf32>
    %246 = vector.broadcast %245 : vector<8x1xf32> to vector<8x8xf32>
    %247 = arith.subf %243, %246 : vector<8x8xf32>
    %248 = math.exp %247 : vector<8x8xf32>
    %cst_94 = arith.constant dense<0.000000e+00> : vector<8xf32>
    %249 = vector.multi_reduction <add>, %248, %cst_94 [1] : vector<8x8xf32> to vector<8xf32>
    %250 = vector.shape_cast %249 : vector<8xf32> to vector<8x1xf32>
    %251 = tpu.reciprocal %250 {approx = true} : vector<8x1xf32> -> vector<8x1xf32>
    %252 = arith.mulf %250, %251 : vector<8x1xf32>
    %cst_95 = arith.constant 2.000000e+00 : f32
    %253 = vector.broadcast %cst_95 : f32 to vector<8x1xf32>
    %254 = arith.subf %253, %252 : vector<8x1xf32>
    %255 = arith.mulf %251, %254 : vector<8x1xf32>
    %256 = vector.broadcast %255 : vector<8x1xf32> to vector<8x8xf32>
    %257 = arith.mulf %248, %256 : vector<8x8xf32>
    %cst_96 = arith.constant dense<0.000000e+00> : vector<8x8xf32>
    %258 = tpu.matmul %257, %238, %cst_96 {dimension_numbers = #tpu.dot_dimension_numbers<[1], [0], [0], [1], [0, 0, 1, 1], [], []>} : vector<8x8xf32>, vector<8x8xf32>, vector<8x8xf32> -> vector<8x8xf32>
    %c120 = arith.constant 120 : index
    %c0_97 = arith.constant 0 : index
    %259 = vector.load %arg1[%c120, %c0_97] : memref<208x128xbf16, #tpu.memory_space<vmem>>, vector<8x32xbf16>
    %260 = arith.truncf %258 : vector<8x8xf32> to vector<8x8xbf16>
    %cst_98 = arith.constant dense<0.000000e+00> : vector<8x32xf32>
    %261 = tpu.matmul %260, %259, %cst_98 {dimension_numbers = #tpu.dot_dimension_numbers<[1], [0], [0], [1], [0, 0, 1, 1], [], []>} : vector<8x8xbf16>, vector<8x32xbf16>, vector<8x32xf32> -> vector<8x32xf32>
    %262 = arith.addf %235, %261 : vector<8x32xf32>
    %263 = vector.extract_strided_slice %206 {offsets = [0, 16], sizes = [8, 8], strides = [1, 1]} : vector<8x96xf32> to vector<8x8xf32>
    %264 = vector.extract_strided_slice %206 {offsets = [0, 48], sizes = [8, 8], strides = [1, 1]} : vector<8x96xf32> to vector<8x8xf32>
    %265 = vector.extract_strided_slice %206 {offsets = [0, 80], sizes = [8, 8], strides = [1, 1]} : vector<8x96xf32> to vector<8x8xf32>
    %cst_99 = arith.constant dense<0.000000e+00> : vector<8x8xf32>
    %266 = tpu.matmul %263, %264, %cst_99 {dimension_numbers = #tpu.dot_dimension_numbers<[1], [1], [0], [0], [0, 0, 1, 0], [], []>} : vector<8x8xf32>, vector<8x8xf32>, vector<8x8xf32> -> vector<8x8xf32>
    %cst_100 = arith.constant 0.353553385 : f32
    %267 = vector.broadcast %cst_100 : f32 to vector<8x8xf32>
    %268 = arith.mulf %266, %267 : vector<8x8xf32>
    %cst_101 = arith.constant -1.000000e+30 : f32
    %269 = vector.broadcast %cst_101 : f32 to vector<8x8xf32>
    %270 = arith.select %11, %268, %269 : vector<8x8xi1>, vector<8x8xf32>
    %cst_102 = arith.constant dense<0xFF800000> : vector<8xf32>
    %271 = vector.multi_reduction <maximumf>, %270, %cst_102 [1] : vector<8x8xf32> to vector<8xf32>
    %272 = vector.shape_cast %271 : vector<8xf32> to vector<8x1xf32>
    %273 = vector.broadcast %272 : vector<8x1xf32> to vector<8x8xf32>
    %274 = arith.subf %270, %273 : vector<8x8xf32>
    %275 = math.exp %274 : vector<8x8xf32>
    %cst_103 = arith.constant dense<0.000000e+00> : vector<8xf32>
    %276 = vector.multi_reduction <add>, %275, %cst_103 [1] : vector<8x8xf32> to vector<8xf32>
    %277 = vector.shape_cast %276 : vector<8xf32> to vector<8x1xf32>
    %278 = tpu.reciprocal %277 {approx = true} : vector<8x1xf32> -> vector<8x1xf32>
    %279 = arith.mulf %277, %278 : vector<8x1xf32>
    %cst_104 = arith.constant 2.000000e+00 : f32
    %280 = vector.broadcast %cst_104 : f32 to vector<8x1xf32>
    %281 = arith.subf %280, %279 : vector<8x1xf32>
    %282 = arith.mulf %278, %281 : vector<8x1xf32>
    %283 = vector.broadcast %282 : vector<8x1xf32> to vector<8x8xf32>
    %284 = arith.mulf %275, %283 : vector<8x8xf32>
    %cst_105 = arith.constant dense<0.000000e+00> : vector<8x8xf32>
    %285 = tpu.matmul %284, %265, %cst_105 {dimension_numbers = #tpu.dot_dimension_numbers<[1], [0], [0], [1], [0, 0, 1, 1], [], []>} : vector<8x8xf32>, vector<8x8xf32>, vector<8x8xf32> -> vector<8x8xf32>
    %c128 = arith.constant 128 : index
    %c0_106 = arith.constant 0 : index
    %286 = vector.load %arg1[%c128, %c0_106] : memref<208x128xbf16, #tpu.memory_space<vmem>>, vector<8x32xbf16>
    %287 = arith.truncf %285 : vector<8x8xf32> to vector<8x8xbf16>
    %cst_107 = arith.constant dense<0.000000e+00> : vector<8x32xf32>
    %288 = tpu.matmul %287, %286, %cst_107 {dimension_numbers = #tpu.dot_dimension_numbers<[1], [0], [0], [1], [0, 0, 1, 1], [], []>} : vector<8x8xbf16>, vector<8x32xbf16>, vector<8x32xf32> -> vector<8x32xf32>
    %289 = arith.addf %262, %288 : vector<8x32xf32>
    %290 = vector.extract_strided_slice %206 {offsets = [0, 24], sizes = [8, 8], strides = [1, 1]} : vector<8x96xf32> to vector<8x8xf32>
    %291 = vector.extract_strided_slice %206 {offsets = [0, 56], sizes = [8, 8], strides = [1, 1]} : vector<8x96xf32> to vector<8x8xf32>
    %292 = vector.extract_strided_slice %206 {offsets = [0, 88], sizes = [8, 8], strides = [1, 1]} : vector<8x96xf32> to vector<8x8xf32>
    %cst_108 = arith.constant dense<0.000000e+00> : vector<8x8xf32>
    %293 = tpu.matmul %290, %291, %cst_108 {dimension_numbers = #tpu.dot_dimension_numbers<[1], [1], [0], [0], [0, 0, 1, 0], [], []>} : vector<8x8xf32>, vector<8x8xf32>, vector<8x8xf32> -> vector<8x8xf32>
    %cst_109 = arith.constant 0.353553385 : f32
    %294 = vector.broadcast %cst_109 : f32 to vector<8x8xf32>
    %295 = arith.mulf %293, %294 : vector<8x8xf32>
    %cst_110 = arith.constant -1.000000e+30 : f32
    %296 = vector.broadcast %cst_110 : f32 to vector<8x8xf32>
    %297 = arith.select %11, %295, %296 : vector<8x8xi1>, vector<8x8xf32>
    %cst_111 = arith.constant dense<0xFF800000> : vector<8xf32>
    %298 = vector.multi_reduction <maximumf>, %297, %cst_111 [1] : vector<8x8xf32> to vector<8xf32>
    %299 = vector.shape_cast %298 : vector<8xf32> to vector<8x1xf32>
    %300 = vector.broadcast %299 : vector<8x1xf32> to vector<8x8xf32>
    %301 = arith.subf %297, %300 : vector<8x8xf32>
    %302 = math.exp %301 : vector<8x8xf32>
    %cst_112 = arith.constant dense<0.000000e+00> : vector<8xf32>
    %303 = vector.multi_reduction <add>, %302, %cst_112 [1] : vector<8x8xf32> to vector<8xf32>
    %304 = vector.shape_cast %303 : vector<8xf32> to vector<8x1xf32>
    %305 = tpu.reciprocal %304 {approx = true} : vector<8x1xf32> -> vector<8x1xf32>
    %306 = arith.mulf %304, %305 : vector<8x1xf32>
    %cst_113 = arith.constant 2.000000e+00 : f32
    %307 = vector.broadcast %cst_113 : f32 to vector<8x1xf32>
    %308 = arith.subf %307, %306 : vector<8x1xf32>
    %309 = arith.mulf %305, %308 : vector<8x1xf32>
    %310 = vector.broadcast %309 : vector<8x1xf32> to vector<8x8xf32>
    %311 = arith.mulf %302, %310 : vector<8x8xf32>
    %cst_114 = arith.constant dense<0.000000e+00> : vector<8x8xf32>
    %312 = tpu.matmul %311, %292, %cst_114 {dimension_numbers = #tpu.dot_dimension_numbers<[1], [0], [0], [1], [0, 0, 1, 1], [], []>} : vector<8x8xf32>, vector<8x8xf32>, vector<8x8xf32> -> vector<8x8xf32>
    %c136 = arith.constant 136 : index
    %c0_115 = arith.constant 0 : index
    %313 = vector.load %arg1[%c136, %c0_115] : memref<208x128xbf16, #tpu.memory_space<vmem>>, vector<8x32xbf16>
    %314 = arith.truncf %312 : vector<8x8xf32> to vector<8x8xbf16>
    %cst_116 = arith.constant dense<0.000000e+00> : vector<8x32xf32>
    %315 = tpu.matmul %314, %313, %cst_116 {dimension_numbers = #tpu.dot_dimension_numbers<[1], [0], [0], [1], [0, 0, 1, 1], [], []>} : vector<8x8xbf16>, vector<8x32xbf16>, vector<8x32xf32> -> vector<8x32xf32>
    %316 = arith.addf %289, %315 : vector<8x32xf32>
    %317 = arith.addf %200, %316 : vector<8x32xf32>
    %c17 = arith.constant 17 : index
    %c0_117 = arith.constant 0 : index
    %318 = vector.load %arg2[%c17, %c0_117] : memref<24x128xf32, #tpu.memory_space<vmem>>, vector<1x32xf32>
    %c18 = arith.constant 18 : index
    %c0_118 = arith.constant 0 : index
    %319 = vector.load %arg2[%c18, %c0_118] : memref<24x128xf32, #tpu.memory_space<vmem>>, vector<1x32xf32>
    %cst_119 = arith.constant dense<0.000000e+00> : vector<8xf32>
    %320 = vector.multi_reduction <add>, %317, %cst_119 [1] : vector<8x32xf32> to vector<8xf32>
    %321 = vector.shape_cast %320 : vector<8xf32> to vector<8x1xf32>
    %cst_120 = arith.constant 3.200000e+01 : f32
    %322 = vector.broadcast %cst_120 : f32 to vector<8x1xf32>
    %323 = arith.divf %321, %322 : vector<8x1xf32>
    %324 = vector.broadcast %323 : vector<8x1xf32> to vector<8x32xf32>
    %325 = arith.subf %317, %324 : vector<8x32xf32>
    %326 = arith.mulf %325, %325 : vector<8x32xf32>
    %cst_121 = arith.constant dense<0.000000e+00> : vector<8xf32>
    %327 = vector.multi_reduction <add>, %326, %cst_121 [1] : vector<8x32xf32> to vector<8xf32>
    %328 = vector.shape_cast %327 : vector<8xf32> to vector<8x1xf32>
    %cst_122 = arith.constant 3.200000e+01 : f32
    %329 = vector.broadcast %cst_122 : f32 to vector<8x1xf32>
    %330 = arith.divf %328, %329 : vector<8x1xf32>
    %cst_123 = arith.constant 9.99999974E-6 : f32
    %331 = vector.broadcast %cst_123 : f32 to vector<8x1xf32>
    %332 = arith.addf %330, %331 : vector<8x1xf32>
    %333 = math.rsqrt %332 : vector<8x1xf32>
    %334 = vector.broadcast %333 : vector<8x1xf32> to vector<8x32xf32>
    %335 = arith.mulf %325, %334 : vector<8x32xf32>
    %336 = vector.broadcast %318 : vector<1x32xf32> to vector<8x32xf32>
    %337 = arith.mulf %335, %336 : vector<8x32xf32>
    %338 = vector.broadcast %319 : vector<1x32xf32> to vector<8x32xf32>
    %339 = arith.addf %337, %338 : vector<8x32xf32>
    %340 = arith.truncf %339 : vector<8x32xf32> to vector<8x32xbf16>
    %c1 = arith.constant 1 : index
    %c0_124 = arith.constant 0 : index
    %c0_125 = arith.constant 0 : index
    %341 = vector.load %arg7[%c1, %c0_124, %c0_125] : memref<2x32x2048xbf16, #tpu.memory_space<vmem>>, vector<1x32x2048xbf16>
    %342 = vector.shape_cast %341 : vector<1x32x2048xbf16> to vector<32x2048xbf16>
    %cst_126 = arith.constant dense<0.000000e+00> : vector<8x2048xf32>
    %343 = tpu.matmul %340, %342, %cst_126 {dimension_numbers = #tpu.dot_dimension_numbers<[1], [0], [0], [1], [0, 0, 1, 1], [], []>} : vector<8x32xbf16>, vector<32x2048xbf16>, vector<8x2048xf32> -> vector<8x2048xf32>
    %c1_127 = arith.constant 1 : index
    %c0_128 = arith.constant 0 : index
    %c0_129 = arith.constant 0 : index
    %344 = vector.load %arg3[%c1_127, %c0_128, %c0_129] : memref<2x1x2048xf32, #tpu.memory_space<vmem>>, vector<1x1x2048xf32>
    %345 = vector.shape_cast %344 : vector<1x1x2048xf32> to vector<1x2048xf32>
    %346 = vector.broadcast %345 : vector<1x2048xf32> to vector<8x2048xf32>
    %347 = arith.addf %343, %346 : vector<8x2048xf32>
    %cst_130 = arith.constant 0.000000e+00 : f32
    %348 = vector.broadcast %cst_130 : f32 to vector<8x2048xf32>
    %349 = arith.maximumf %347, %348 : vector<8x2048xf32>
    %350 = arith.truncf %349 : vector<8x2048xf32> to vector<8x2048xbf16>
    %c1_131 = arith.constant 1 : index
    %c0_132 = arith.constant 0 : index
    %c0_133 = arith.constant 0 : index
    %351 = vector.load %arg8[%c1_131, %c0_132, %c0_133] : memref<2x2048x32xbf16, #tpu.memory_space<vmem>>, vector<1x2048x32xbf16>
    %352 = vector.shape_cast %351 : vector<1x2048x32xbf16> to vector<2048x32xbf16>
    %cst_134 = arith.constant dense<0.000000e+00> : vector<8x32xf32>
    %353 = tpu.matmul %350, %352, %cst_134 {dimension_numbers = #tpu.dot_dimension_numbers<[1], [0], [0], [1], [0, 0, 1, 1], [], []>} : vector<8x2048xbf16>, vector<2048x32xbf16>, vector<8x32xf32> -> vector<8x32xf32>
    %c21 = arith.constant 21 : index
    %c0_135 = arith.constant 0 : index
    %354 = vector.load %arg2[%c21, %c0_135] : memref<24x128xf32, #tpu.memory_space<vmem>>, vector<1x32xf32>
    %355 = vector.broadcast %354 : vector<1x32xf32> to vector<8x32xf32>
    %356 = arith.addf %353, %355 : vector<8x32xf32>
    %357 = arith.addf %339, %356 : vector<8x32xf32>
    %c19 = arith.constant 19 : index
    %c0_136 = arith.constant 0 : index
    %358 = vector.load %arg2[%c19, %c0_136] : memref<24x128xf32, #tpu.memory_space<vmem>>, vector<1x32xf32>
    %c20 = arith.constant 20 : index
    %c0_137 = arith.constant 0 : index
    %359 = vector.load %arg2[%c20, %c0_137] : memref<24x128xf32, #tpu.memory_space<vmem>>, vector<1x32xf32>
    %cst_138 = arith.constant dense<0.000000e+00> : vector<8xf32>
    %360 = vector.multi_reduction <add>, %357, %cst_138 [1] : vector<8x32xf32> to vector<8xf32>
    %361 = vector.shape_cast %360 : vector<8xf32> to vector<8x1xf32>
    %cst_139 = arith.constant 3.200000e+01 : f32
    %362 = vector.broadcast %cst_139 : f32 to vector<8x1xf32>
    %363 = arith.divf %361, %362 : vector<8x1xf32>
    %364 = vector.broadcast %363 : vector<8x1xf32> to vector<8x32xf32>
    %365 = arith.subf %357, %364 : vector<8x32xf32>
    %366 = arith.mulf %365, %365 : vector<8x32xf32>
    %cst_140 = arith.constant dense<0.000000e+00> : vector<8xf32>
    %367 = vector.multi_reduction <add>, %366, %cst_140 [1] : vector<8x32xf32> to vector<8xf32>
    %368 = vector.shape_cast %367 : vector<8xf32> to vector<8x1xf32>
    %cst_141 = arith.constant 3.200000e+01 : f32
    %369 = vector.broadcast %cst_141 : f32 to vector<8x1xf32>
    %370 = arith.divf %368, %369 : vector<8x1xf32>
    %cst_142 = arith.constant 9.99999974E-6 : f32
    %371 = vector.broadcast %cst_142 : f32 to vector<8x1xf32>
    %372 = arith.addf %370, %371 : vector<8x1xf32>
    %373 = math.rsqrt %372 : vector<8x1xf32>
    %374 = vector.broadcast %373 : vector<8x1xf32> to vector<8x32xf32>
    %375 = arith.mulf %365, %374 : vector<8x32xf32>
    %376 = vector.broadcast %358 : vector<1x32xf32> to vector<8x32xf32>
    %377 = arith.mulf %375, %376 : vector<8x32xf32>
    %378 = vector.broadcast %359 : vector<1x32xf32> to vector<8x32xf32>
    %379 = arith.addf %377, %378 : vector<8x32xf32>
    %380 = vector.extract_strided_slice %379 {offsets = [0, 0], sizes = [4, 32], strides = [1, 1]} : vector<8x32xf32> to vector<4x32xf32>
    %381 = arith.truncf %380 : vector<4x32xf32> to vector<4x32xbf16>
    %382 = vector.extract_strided_slice %379 {offsets = [4, 0], sizes = [4, 32], strides = [1, 1]} : vector<8x32xf32> to vector<4x32xf32>
    %383 = arith.truncf %382 : vector<4x32xf32> to vector<4x32xbf16>
    %c144 = arith.constant 144 : index
    %c0_143 = arith.constant 0 : index
    %384 = vector.load %arg1[%c144, %c0_143] : memref<208x128xbf16, #tpu.memory_space<vmem>>, vector<32x5xbf16>
    %cst_144 = arith.constant dense<0.000000e+00> : vector<4x5xf32>
    %385 = tpu.matmul %381, %384, %cst_144 {dimension_numbers = #tpu.dot_dimension_numbers<[1], [0], [0], [1], [0, 0, 1, 1], [], []>} : vector<4x32xbf16>, vector<32x5xbf16>, vector<4x5xf32> -> vector<4x5xf32>
    %c176 = arith.constant 176 : index
    %c0_145 = arith.constant 0 : index
    %386 = vector.load %arg1[%c176, %c0_145] : memref<208x128xbf16, #tpu.memory_space<vmem>>, vector<32x5xbf16>
    %cst_146 = arith.constant dense<0.000000e+00> : vector<4x5xf32>
    %387 = tpu.matmul %383, %386, %cst_146 {dimension_numbers = #tpu.dot_dimension_numbers<[1], [0], [0], [1], [0, 0, 1, 1], [], []>} : vector<4x32xbf16>, vector<32x5xbf16>, vector<4x5xf32> -> vector<4x5xf32>
    %388 = arith.addf %385, %387 : vector<4x5xf32>
    %c22 = arith.constant 22 : index
    %c0_147 = arith.constant 0 : index
    %389 = vector.load %arg2[%c22, %c0_147] : memref<24x128xf32, #tpu.memory_space<vmem>>, vector<1x5xf32>
    %390 = vector.broadcast %389 : vector<1x5xf32> to vector<4x5xf32>
    %391 = arith.addf %388, %390 : vector<4x5xf32>
    %c0_148 = arith.constant 0 : index
    %c0_149 = arith.constant 0 : index
    %392 = vector.load %arg6[%c0_148, %c0_149] : memref<4x5xf32, #tpu.memory_space<vmem>>, vector<4x5xf32>
    tpu.vector_store %arg6[%c0_148, %c0_149], %391 {strides = array<i32>} : memref<4x5xf32, #tpu.memory_space<vmem>>, vector<4x5xf32>,
    return
  }
}

</mosaic_0001>

<bundles_post_ra>
// kernel: tpu_custom_call.1
= control target key start
LH: loop header
LB: loop body
LE: loop exit
PB: predicated region body
PF: predicated region fallthrough
CT: control target
= control target key end

     0   :  { %11 = vsyncpa [#allocation6], 0  ;;  %s8506_s0 = inlined_call_operand.vmem [shape: f32[8,16], index: 0, kind: input, shape index: {}]   ;;  %s8507_s1 = inlined_call_operand.vmem [shape: bf16[208,128], index: 1, kind: input, shape index: {}]   ;;  %s8508_s2 = inlined_call_operand.vmem [shape: f32[24,128], index: 2, kind: input, shape index: {}]   ;;  %s8509_s3 = inlined_call_operand.vmem [shape: f32[2,1,2048], index: 3, kind: input, shape index: {}]   ;;  %s8510_s4 = inlined_call_operand.vmem [shape: bf16[2,32,2048], index: 4, kind: input, shape index: {}]   ;;  %s8511_s5 = inlined_call_operand.vmem [shape: bf16[2,2048,32], index: 5, kind: input, shape index: {}]   ;;  %s8512_s6 = inlined_call_operand.hbm [shape: f32[4,5], index: 6, kind: output, shape index: {}]  }
   0x1   :  { %v31_v0 = vld [vmem:[%s8510_s4] sm:$0xff]  ;;  %v33_v1 = vld [vmem:[%s8510_s4 + $0x8] sm:$0xff]  ;;  %v35_v2 = vld [vmem:[%s8510_s4 + $0x10] sm:$0xff] }
   0x2   :  { %32 = vst [vmem:[#allocation2] sm:$0xff] %v31_v0  ;;  %v37_v3 = vld [vmem:[%s8510_s4 + $0x18] sm:$0xff]  ;;  %v39_v4 = vld [vmem:[%s8510_s4 + $0x20] sm:$0xff]  ;;  %v41_v5 = vld [vmem:[%s8510_s4 + $0x28] sm:$0xff] }
   0x3   :  { %34 = vst [vmem:[#allocation2 + $0x8] sm:$0xff] %v33_v1  ;;  %v43_v6 = vld [vmem:[%s8510_s4 + $0x30] sm:$0xff]  ;;  %v45_v7 = vld [vmem:[%s8510_s4 + $0x38] sm:$0xff]  ;;  %v47_v8 = vld [vmem:[%s8510_s4 + $0x40] sm:$0xff] }
   0x4   :  { %36 = vst [vmem:[#allocation2 + $0x10] sm:$0xff] %v35_v2  ;;  %v49_v9 = vld [vmem:[%s8510_s4 + $0x48] sm:$0xff]  ;;  %v51_v10 = vld [vmem:[%s8510_s4 + $0x50] sm:$0xff]  ;;  %v53_v11 = vld [vmem:[%s8510_s4 + $0x58] sm:$0xff] }
   0x5   :  { %38 = vst [vmem:[#allocation2 + $0x18] sm:$0xff] %v37_v3  ;;  %v55_v12 = vld [vmem:[%s8510_s4 + $0x60] sm:$0xff]  ;;  %v57_v13 = vld [vmem:[%s8510_s4 + $0x68] sm:$0xff]  ;;  %v59_v14 = vld [vmem:[%s8510_s4 + $0x70] sm:$0xff] }
   0x6   :  { %40 = vst [vmem:[#allocation2 + $0x20] sm:$0xff] %v39_v4  ;;  %v61_v15 = vld [vmem:[%s8510_s4 + $0x78] sm:$0xff]  ;;  %v63_v16 = vld [vmem:[%s8510_s4 + $0x80] sm:$0xff]  ;;  %v65_v17 = vld [vmem:[%s8510_s4 + $0x88] sm:$0xff] }
   0x7   :  { %42 = vst [vmem:[#allocation2 + $0x28] sm:$0xff] %v41_v5  ;;  %v67_v18 = vld [vmem:[%s8510_s4 + $0x90] sm:$0xff]  ;;  %v69_v19 = vld [vmem:[%s8510_s4 + $0x98] sm:$0xff]  ;;  %v71_v20 = vld [vmem:[%s8510_s4 + $0xa0] sm:$0xff] }
   0x8   :  { %44 = vst [vmem:[#allocation2 + $0x30] sm:$0xff] %v43_v6  ;;  %v73_v21 = vld [vmem:[%s8510_s4 + $0xa8] sm:$0xff]  ;;  %v75_v22 = vld [vmem:[%s8510_s4 + $0xb0] sm:$0xff]  ;;  %v77_v23 = vld [vmem:[%s8510_s4 + $0xb8] sm:$0xff] }
   0x9   :  { %46 = vst [vmem:[#allocation2 + $0x38] sm:$0xff] %v45_v7  ;;  %v79_v24 = vld [vmem:[%s8510_s4 + $0xc0] sm:$0xff]  ;;  %v81_v25 = vld [vmem:[%s8510_s4 + $0xc8] sm:$0xff]  ;;  %v83_v26 = vld [vmem:[%s8510_s4 + $0xd0] sm:$0xff] }
   0xa   :  { %48 = vst [vmem:[#allocation2 + $0x40] sm:$0xff] %v47_v8  ;;  %v85_v27 = vld [vmem:[%s8510_s4 + $0xd8] sm:$0xff]  ;;  %v87_v28 = vld [vmem:[%s8510_s4 + $0xe0] sm:$0xff]  ;;  %v89_v29 = vld [vmem:[%s8510_s4 + $0xe8] sm:$0xff] }
   0xb   :  { %50 = vst [vmem:[#allocation2 + $0x48] sm:$0xff] %v49_v9  ;;  %v91_v30 = vld [vmem:[%s8510_s4 + $0xf0] sm:$0xff]  ;;  %v93_v31 = vld [vmem:[%s8510_s4 + $0xf8] sm:$0xff]  ;;  %v95_v32 = vld [vmem:[%s8510_s4 + $0x100] sm:$0xff] }
   0xc   :  { %52 = vst [vmem:[#allocation2 + $0x50] sm:$0xff] %v51_v10  ;;  %v97_v33 = vld [vmem:[%s8510_s4 + $0x108] sm:$0xff]  ;;  %v99_v34 = vld [vmem:[%s8510_s4 + $0x110] sm:$0xff]  ;;  %v101_v35 = vld [vmem:[%s8510_s4 + $0x118] sm:$0xff] }
   0xd   :  { %54 = vst [vmem:[#allocation2 + $0x58] sm:$0xff] %v53_v11  ;;  %v103_v36 = vld [vmem:[%s8510_s4 + $0x120] sm:$0xff]  ;;  %v105_v37 = vld [vmem:[%s8510_s4 + $0x128] sm:$0xff]  ;;  %v107_v38 = vld [vmem:[%s8510_s4 + $0x130] sm:$0xff] }
   0xe   :  { %56 = vst [vmem:[#allocation2 + $0x60] sm:$0xff] %v55_v12  ;;  %v109_v39 = vld [vmem:[%s8510_s4 + $0x138] sm:$0xff]  ;;  %v111_v40 = vld [vmem:[%s8510_s4 + $0x140] sm:$0xff]  ;;  %v113_v41 = vld [vmem:[%s8510_s4 + $0x148] sm:$0xff] }
   0xf   :  { %58 = vst [vmem:[#allocation2 + $0x68] sm:$0xff] %v57_v13  ;;  %v115_v42 = vld [vmem:[%s8510_s4 + $0x150] sm:$0xff]  ;;  %v117_v43 = vld [vmem:[%s8510_s4 + $0x158] sm:$0xff]  ;;  %v119_v44 = vld [vmem:[%s8510_s4 + $0x160] sm:$0xff] }
  0x10   :  { %60 = vst [vmem:[#allocation2 + $0x70] sm:$0xff] %v59_v14  ;;  %v121_v45 = vld [vmem:[%s8510_s4 + $0x168] sm:$0xff]  ;;  %v123_v46 = vld [vmem:[%s8510_s4 + $0x170] sm:$0xff]  ;;  %v125_v47 = vld [vmem:[%s8510_s4 + $0x178] sm:$0xff] }
  0x11   :  { %62 = vst [vmem:[#allocation2 + $0x78] sm:$0xff] %v61_v15  ;;  %v127_v48 = vld [vmem:[%s8510_s4 + $0x180] sm:$0xff]  ;;  %v129_v49 = vld [vmem:[%s8510_s4 + $0x188] sm:$0xff]  ;;  %v131_v50 = vld [vmem:[%s8510_s4 + $0x190] sm:$0xff] }
  0x12   :  { %64 = vst [vmem:[#allocation2 + $0x80] sm:$0xff] %v63_v16  ;;  %v133_v51 = vld [vmem:[%s8510_s4 + $0x198] sm:$0xff]  ;;  %v135_v52 = vld [vmem:[%s8510_s4 + $0x1a0] sm:$0xff]  ;;  %v137_v53 = vld [vmem:[%s8510_s4 + $0x1a8] sm:$0xff] }
  0x13   :  { %66 = vst [vmem:[#allocation2 + $0x88] sm:$0xff] %v65_v17  ;;  %v139_v54 = vld [vmem:[%s8510_s4 + $0x1b0] sm:$0xff]  ;;  %v141_v55 = vld [vmem:[%s8510_s4 + $0x1b8] sm:$0xff]  ;;  %v143_v56 = vld [vmem:[%s8510_s4 + $0x1c0] sm:$0xff] }
  0x14   :  { %68 = vst [vmem:[#allocation2 + $0x90] sm:$0xff] %v67_v18  ;;  %v145_v57 = vld [vmem:[%s8510_s4 + $0x1c8] sm:$0xff]  ;;  %v147_v58 = vld [vmem:[%s8510_s4 + $0x1d0] sm:$0xff]  ;;  %v149_v59 = vld [vmem:[%s8510_s4 + $0x1d8] sm:$0xff] }
  0x15   :  { %70 = vst [vmem:[#allocation2 + $0x98] sm:$0xff] %v69_v19  ;;  %v151_v60 = vld [vmem:[%s8510_s4 + $0x1e0] sm:$0xff]  ;;  %v153_v61 = vld [vmem:[%s8510_s4 + $0x1e8] sm:$0xff]  ;;  %v155_v62 = vld [vmem:[%s8510_s4 + $0x1f0] sm:$0xff] }
  0x16   :  { %72 = vst [vmem:[#allocation2 + $0xa0] sm:$0xff] %v71_v20  ;;  %v157_v63 = vld [vmem:[%s8510_s4 + $0x1f8] sm:$0xff] }
  0x17   :  { %74 = vst [vmem:[#allocation2 + $0xa8] sm:$0xff] %v73_v21 }
  0x18   :  { %76 = vst [vmem:[#allocation2 + $0xb0] sm:$0xff] %v75_v22 }
  0x19   :  { %78 = vst [vmem:[#allocation2 + $0xb8] sm:$0xff] %v77_v23 }
  0x1a   :  { %80 = vst [vmem:[#allocation2 + $0xc0] sm:$0xff] %v79_v24 }
  0x1b   :  { %82 = vst [vmem:[#allocation2 + $0xc8] sm:$0xff] %v81_v25 }
  0x1c   :  { %84 = vst [vmem:[#allocation2 + $0xd0] sm:$0xff] %v83_v26 }
  0x1d   :  { %86 = vst [vmem:[#allocation2 + $0xd8] sm:$0xff] %v85_v27 }
  0x1e   :  { %88 = vst [vmem:[#allocation2 + $0xe0] sm:$0xff] %v87_v28 }
  0x1f   :  { %90 = vst [vmem:[#allocation2 + $0xe8] sm:$0xff] %v89_v29 }
  0x20   :  { %92 = vst [vmem:[#allocation2 + $0xf0] sm:$0xff] %v91_v30 }
  0x21   :  { %94 = vst [vmem:[#allocation2 + $0xf8] sm:$0xff] %v93_v31 }
  0x22   :  { %96 = vst [vmem:[#allocation2 + $0x100] sm:$0xff] %v95_v32 }
  0x23   :  { %98 = vst [vmem:[#allocation2 + $0x108] sm:$0xff] %v97_v33 }
  0x24   :  { %100 = vst [vmem:[#allocation2 + $0x110] sm:$0xff] %v99_v34 }
  0x25   :  { %102 = vst [vmem:[#allocation2 + $0x118] sm:$0xff] %v101_v35 }
  0x26   :  { %104 = vst [vmem:[#allocation2 + $0x120] sm:$0xff] %v103_v36 }
  0x27   :  { %106 = vst [vmem:[#allocation2 + $0x128] sm:$0xff] %v105_v37 }
  0x28   :  { %108 = vst [vmem:[#allocation2 + $0x130] sm:$0xff] %v107_v38 }
  0x29   :  { %110 = vst [vmem:[#allocation2 + $0x138] sm:$0xff] %v109_v39 }
  0x2a   :  { %112 = vst [vmem:[#allocation2 + $0x140] sm:$0xff] %v111_v40 }
  0x2b   :  { %114 = vst [vmem:[#allocation2 + $0x148] sm:$0xff] %v113_v41 }
  0x2c   :  { %116 = vst [vmem:[#allocation2 + $0x150] sm:$0xff] %v115_v42 }
  0x2d   :  { %118 = vst [vmem:[#allocation2 + $0x158] sm:$0xff] %v117_v43 }
  0x2e   :  { %120 = vst [vmem:[#allocation2 + $0x160] sm:$0xff] %v119_v44 }
  0x2f   :  { %122 = vst [vmem:[#allocation2 + $0x168] sm:$0xff] %v121_v45 }
  0x30   :  { %124 = vst [vmem:[#allocation2 + $0x170] sm:$0xff] %v123_v46 }
  0x31   :  { %126 = vst [vmem:[#allocation2 + $0x178] sm:$0xff] %v125_v47 }
  0x32   :  { %128 = vst [vmem:[#allocation2 + $0x180] sm:$0xff] %v127_v48 }
  0x33   :  { %130 = vst [vmem:[#allocation2 + $0x188] sm:$0xff] %v129_v49 }
  0x34   :  { %132 = vst [vmem:[#allocation2 + $0x190] sm:$0xff] %v131_v50 }
  0x35   :  { %134 = vst [vmem:[#allocation2 + $0x198] sm:$0xff] %v133_v51 }
  0x36   :  { %136 = vst [vmem:[#allocation2 + $0x1a0] sm:$0xff] %v135_v52 }
  0x37   :  { %138 = vst [vmem:[#allocation2 + $0x1a8] sm:$0xff] %v137_v53 }
  0x38   :  { %140 = vst [vmem:[#allocation2 + $0x1b0] sm:$0xff] %v139_v54 }
  0x39   :  { %142 = vst [vmem:[#allocation2 + $0x1b8] sm:$0xff] %v141_v55 }
  0x3a   :  { %144 = vst [vmem:[#allocation2 + $0x1c0] sm:$0xff] %v143_v56 }
  0x3b   :  { %146 = vst [vmem:[#allocation2 + $0x1c8] sm:$0xff] %v145_v57 }
  0x3c   :  { %148 = vst [vmem:[#allocation2 + $0x1d0] sm:$0xff] %v147_v58 }
  0x3d   :  { %150 = vst [vmem:[#allocation2 + $0x1d8] sm:$0xff] %v149_v59 }
  0x3e   :  { %152 = vst [vmem:[#allocation2 + $0x1e0] sm:$0xff] %v151_v60 }
  0x3f   :  { %154 = vst [vmem:[#allocation2 + $0x1e8] sm:$0xff] %v153_v61 }
  0x40   :  { %156 = vst [vmem:[#allocation2 + $0x1f0] sm:$0xff] %v155_v62 }
  0x41   :  { %158 = vst [vmem:[#allocation2 + $0x1f8] sm:$0xff] %v157_v63 }
  0x42   :  { %164 = vsyncadd [#allocation4], 8192  ;;  %v176_v0 = vld [vmem:[%s8511_s5] sm:$0xff]  ;;  %v178_v1 = vld [vmem:[%s8511_s5 + $0x8] sm:$0xff] }
  0x43   :  { %177 = vst [vmem:[#allocation3 + $0x2b0] sm:$0xff] %v176_v0  ;;  %v180_v2 = vld [vmem:[%s8511_s5 + $0x10] sm:$0xff]  ;;  %v182_v3 = vld [vmem:[%s8511_s5 + $0x18] sm:$0xff]  ;;  %v184_v4 = vld [vmem:[%s8511_s5 + $0x20] sm:$0xff] }
  0x44   :  { %179 = vst [vmem:[#allocation3 + $0x3b0] sm:$0xff] %v178_v1  ;;  %v186_v5 = vld [vmem:[%s8511_s5 + $0x28] sm:$0xff]  ;;  %v188_v6 = vld [vmem:[%s8511_s5 + $0x30] sm:$0xff]  ;;  %v190_v7 = vld [vmem:[%s8511_s5 + $0x38] sm:$0xff] }
  0x45   :  { %181 = vst [vmem:[#allocation3 + $0x4d8] sm:$0xff] %v180_v2  ;;  %v192_v8 = vld [vmem:[%s8511_s5 + $0x40] sm:$0xff]  ;;  %v194_v9 = vld [vmem:[%s8511_s5 + $0x48] sm:$0xff]  ;;  %v196_v10 = vld [vmem:[%s8511_s5 + $0x50] sm:$0xff] }
  0x46   :  { %183 = vst [vmem:[#allocation3 + $0x18] sm:$0xff] %v182_v3  ;;  %v198_v11 = vld [vmem:[%s8511_s5 + $0x58] sm:$0xff]  ;;  %v200_v12 = vld [vmem:[%s8511_s5 + $0x60] sm:$0xff]  ;;  %v202_v13 = vld [vmem:[%s8511_s5 + $0x68] sm:$0xff] }
  0x47   :  { %185 = vst [vmem:[#allocation3 + $0x450] sm:$0xff] %v184_v4  ;;  %v204_v14 = vld [vmem:[%s8511_s5 + $0x70] sm:$0xff]  ;;  %v206_v15 = vld [vmem:[%s8511_s5 + $0x78] sm:$0xff]  ;;  %v208_v16 = vld [vmem:[%s8511_s5 + $0x80] sm:$0xff] }
  0x48   :  { %187 = vst [vmem:[#allocation3 + $0x768] sm:$0xff] %v186_v5  ;;  %v210_v17 = vld [vmem:[%s8511_s5 + $0x88] sm:$0xff]  ;;  %v212_v18 = vld [vmem:[%s8511_s5 + $0x90] sm:$0xff]  ;;  %v214_v19 = vld [vmem:[%s8511_s5 + $0x98] sm:$0xff] }
  0x49   :  { %189 = vst [vmem:[#allocation3 + $0x330] sm:$0xff] %v188_v6  ;;  %v216_v20 = vld [vmem:[%s8511_s5 + $0xa0] sm:$0xff]  ;;  %v218_v21 = vld [vmem:[%s8511_s5 + $0xa8] sm:$0xff]  ;;  %v220_v22 = vld [vmem:[%s8511_s5 + $0xb0] sm:$0xff] }
  0x4a   :  { %191 = vst [vmem:[#allocation3 + $0x448] sm:$0xff] %v190_v7  ;;  %v222_v23 = vld [vmem:[%s8511_s5 + $0xb8] sm:$0xff]  ;;  %v224_v24 = vld [vmem:[%s8511_s5 + $0xc0] sm:$0xff]  ;;  %v226_v25 = vld [vmem:[%s8511_s5 + $0xc8] sm:$0xff] }
  0x4b   :  { %193 = vst [vmem:[#allocation3 + $0x380] sm:$0xff] %v192_v8  ;;  %v228_v26 = vld [vmem:[%s8511_s5 + $0xd0] sm:$0xff]  ;;  %v230_v27 = vld [vmem:[%s8511_s5 + $0xd8] sm:$0xff]  ;;  %v232_v28 = vld [vmem:[%s8511_s5 + $0xe0] sm:$0xff] }
  0x4c   :  { %195 = vst [vmem:[#allocation3 + $0x110] sm:$0xff] %v194_v9  ;;  %v234_v29 = vld [vmem:[%s8511_s5 + $0xe8] sm:$0xff]  ;;  %v236_v30 = vld [vmem:[%s8511_s5 + $0xf0] sm:$0xff]  ;;  %v238_v31 = vld [vmem:[%s8511_s5 + $0xf8] sm:$0xff] }
  0x4d   :  { %197 = vst [vmem:[#allocation3 + $0x518] sm:$0xff] %v196_v10  ;;  %v240_v32 = vld [vmem:[%s8511_s5 + $0x100] sm:$0xff]  ;;  %v242_v33 = vld [vmem:[%s8511_s5 + $0x108] sm:$0xff]  ;;  %v244_v34 = vld [vmem:[%s8511_s5 + $0x110] sm:$0xff] }
  0x4e   :  { %199 = vst [vmem:[#allocation3 + $0x498] sm:$0xff] %v198_v11  ;;  %v246_v35 = vld [vmem:[%s8511_s5 + $0x118] sm:$0xff]  ;;  %v248_v36 = vld [vmem:[%s8511_s5 + $0x120] sm:$0xff]  ;;  %v250_v37 = vld [vmem:[%s8511_s5 + $0x128] sm:$0xff] }
  0x4f   :  { %201 = vst [vmem:[#allocation3 + $0x320] sm:$0xff] %v200_v12  ;;  %v252_v38 = vld [vmem:[%s8511_s5 + $0x130] sm:$0xff]  ;;  %v254_v39 = vld [vmem:[%s8511_s5 + $0x138] sm:$0xff]  ;;  %v256_v40 = vld [vmem:[%s8511_s5 + $0x140] sm:$0xff] }
  0x50   :  { %203 = vst [vmem:[#allocation3 + $0x550] sm:$0xff] %v202_v13  ;;  %v258_v41 = vld [vmem:[%s8511_s5 + $0x148] sm:$0xff]  ;;  %v260_v42 = vld [vmem:[%s8511_s5 + $0x150] sm:$0xff]  ;;  %v262_v43 = vld [vmem:[%s8511_s5 + $0x158] sm:$0xff] }
  0x51   :  { %205 = vst [vmem:[#allocation3 + $0x508] sm:$0xff] %v204_v14  ;;  %v264_v44 = vld [vmem:[%s8511_s5 + $0x160] sm:$0xff]  ;;  %v266_v45 = vld [vmem:[%s8511_s5 + $0x168] sm:$0xff]  ;;  %v268_v46 = vld [vmem:[%s8511_s5 + $0x170] sm:$0xff] }
  0x52   :  { %207 = vst [vmem:[#allocation3 + $0x720] sm:$0xff] %v206_v15  ;;  %v270_v47 = vld [vmem:[%s8511_s5 + $0x178] sm:$0xff]  ;;  %v272_v48 = vld [vmem:[%s8511_s5 + $0x180] sm:$0xff]  ;;  %v274_v49 = vld [vmem:[%s8511_s5 + $0x188] sm:$0xff] }
  0x53   :  { %209 = vst [vmem:[#allocation3 + $0x6e0] sm:$0xff] %v208_v16  ;;  %v276_v50 = vld [vmem:[%s8511_s5 + $0x190] sm:$0xff]  ;;  %v278_v51 = vld [vmem:[%s8511_s5 + $0x198] sm:$0xff]  ;;  %v280_v52 = vld [vmem:[%s8511_s5 + $0x1a0] sm:$0xff] }
  0x54   :  { %211 = vst [vmem:[#allocation3 + $0x788] sm:$0xff] %v210_v17  ;;  %v282_v53 = vld [vmem:[%s8511_s5 + $0x1a8] sm:$0xff]  ;;  %v284_v54 = vld [vmem:[%s8511_s5 + $0x1b0] sm:$0xff]  ;;  %v286_v55 = vld [vmem:[%s8511_s5 + $0x1b8] sm:$0xff] }
  0x55   :  { %213 = vst [vmem:[#allocation3 + $0x338] sm:$0xff] %v212_v18  ;;  %v288_v56 = vld [vmem:[%s8511_s5 + $0x1c0] sm:$0xff]  ;;  %v290_v57 = vld [vmem:[%s8511_s5 + $0x1c8] sm:$0xff]  ;;  %v292_v58 = vld [vmem:[%s8511_s5 + $0x1d0] sm:$0xff] }
  0x56   :  { %215 = vst [vmem:[#allocation3 + $0x740] sm:$0xff] %v214_v19  ;;  %v294_v59 = vld [vmem:[%s8511_s5 + $0x1d8] sm:$0xff]  ;;  %v296_v60 = vld [vmem:[%s8511_s5 + $0x1e0] sm:$0xff]  ;;  %v298_v61 = vld [vmem:[%s8511_s5 + $0x1e8] sm:$0xff] }
  0x57   :  { %217 = vst [vmem:[#allocation3 + $0x2e0] sm:$0xff] %v216_v20  ;;  %v300_v62 = vld [vmem:[%s8511_s5 + $0x1f0] sm:$0xff]  ;;  %v302_v63 = vld [vmem:[%s8511_s5 + $0x1f8] sm:$0xff]  ;;  %v304_v0 = vld [vmem:[%s8511_s5 + $0x200] sm:$0xff] }
  0x58   :  { %219 = vst [vmem:[#allocation3 + $0x5a8] sm:$0xff] %v218_v21  ;;  %v306_v1 = vld [vmem:[%s8511_s5 + $0x208] sm:$0xff]  ;;  %v308_v2 = vld [vmem:[%s8511_s5 + $0x210] sm:$0xff]  ;;  %v310_v3 = vld [vmem:[%s8511_s5 + $0x218] sm:$0xff] }
  0x59   :  { %221 = vst [vmem:[#allocation3 + $0x5b8] sm:$0xff] %v220_v22  ;;  %v312_v4 = vld [vmem:[%s8511_s5 + $0x220] sm:$0xff]  ;;  %v314_v5 = vld [vmem:[%s8511_s5 + $0x228] sm:$0xff]  ;;  %v316_v6 = vld [vmem:[%s8511_s5 + $0x230] sm:$0xff] }
  0x5a   :  { %223 = vst [vmem:[#allocation3 + $0x568] sm:$0xff] %v222_v23  ;;  %v318_v7 = vld [vmem:[%s8511_s5 + $0x238] sm:$0xff]  ;;  %v320_v8 = vld [vmem:[%s8511_s5 + $0x240] sm:$0xff]  ;;  %v322_v9 = vld [vmem:[%s8511_s5 + $0x248] sm:$0xff] }
  0x5b   :  { %225 = vst [vmem:[#allocation3 + $0x3e8] sm:$0xff] %v224_v24  ;;  %v324_v10 = vld [vmem:[%s8511_s5 + $0x250] sm:$0xff]  ;;  %v326_v11 = vld [vmem:[%s8511_s5 + $0x258] sm:$0xff]  ;;  %v328_v12 = vld [vmem:[%s8511_s5 + $0x260] sm:$0xff] }
  0x5c   :  { %227 = vst [vmem:[#allocation3 + $0x6f8] sm:$0xff] %v226_v25  ;;  %v330_v13 = vld [vmem:[%s8511_s5 + $0x268] sm:$0xff]  ;;  %v332_v14 = vld [vmem:[%s8511_s5 + $0x270] sm:$0xff]  ;;  %v334_v15 = vld [vmem:[%s8511_s5 + $0x278] sm:$0xff] }
  0x5d   :  { %229 = vst [vmem:[#allocation3 + $0x690] sm:$0xff] %v228_v26  ;;  %v336_v16 = vld [vmem:[%s8511_s5 + $0x280] sm:$0xff]  ;;  %v338_v17 = vld [vmem:[%s8511_s5 + $0x288] sm:$0xff]  ;;  %v340_v18 = vld [vmem:[%s8511_s5 + $0x290] sm:$0xff] }
  0x5e   :  { %231 = vst [vmem:[#allocation3 + $0x368] sm:$0xff] %v230_v27  ;;  %v342_v19 = vld [vmem:[%s8511_s5 + $0x298] sm:$0xff]  ;;  %v344_v20 = vld [vmem:[%s8511_s5 + $0x2a0] sm:$0xff]  ;;  %v346_v21 = vld [vmem:[%s8511_s5 + $0x2a8] sm:$0xff] }
  0x5f   :  { %233 = vst [vmem:[#allocation3 + $0x138] sm:$0xff] %v232_v28  ;;  %v348_v22 = vld [vmem:[%s8511_s5 + $0x2b0] sm:$0xff]  ;;  %v350_v23 = vld [vmem:[%s8511_s5 + $0x2b8] sm:$0xff]  ;;  %v352_v24 = vld [vmem:[%s8511_s5 + $0x2c0] sm:$0xff] }
  0x60   :  { %235 = vst [vmem:[#allocation3 + $0xc0] sm:$0xff] %v234_v29  ;;  %v354_v25 = vld [vmem:[%s8511_s5 + $0x2c8] sm:$0xff]  ;;  %v356_v26 = vld [vmem:[%s8511_s5 + $0x2d0] sm:$0xff]  ;;  %v358_v27 = vld [vmem:[%s8511_s5 + $0x2d8] sm:$0xff] }
  0x61   :  { %237 = vst [vmem:[#allocation3 + $0x1c0] sm:$0xff] %v236_v30  ;;  %v360_v28 = vld [vmem:[%s8511_s5 + $0x2e0] sm:$0xff]  ;;  %v362_v29 = vld [vmem:[%s8511_s5 + $0x2e8] sm:$0xff]  ;;  %v364_v30 = vld [vmem:[%s8511_s5 + $0x2f0] sm:$0xff] }
  0x62   :  { %239 = vst [vmem:[#allocation3 + $0x280] sm:$0xff] %v238_v31  ;;  %v366_v31 = vld [vmem:[%s8511_s5 + $0x2f8] sm:$0xff] }
  0x63   :  { %241 = vst [vmem:[#allocation3 + $0x100] sm:$0xff] %v240_v32  ;;  %v368_v32 = vld [vmem:[%s8511_s5 + $0x300] sm:$0xff] }
  0x64   :  { %243 = vst [vmem:[#allocation3 + $0x3c0] sm:$0xff] %v242_v33  ;;  %v370_v33 = vld [vmem:[%s8511_s5 + $0x308] sm:$0xff] }
  0x65   :  { %245 = vst [vmem:[#allocation3 + $0x558] sm:$0xff] %v244_v34  ;;  %v372_v34 = vld [vmem:[%s8511_s5 + $0x310] sm:$0xff] }
  0x66   :  { %247 = vst [vmem:[#allocation3 + $0x3e0] sm:$0xff] %v246_v35  ;;  %v374_v35 = vld [vmem:[%s8511_s5 + $0x318] sm:$0xff] }
  0x67   :  { %249 = vst [vmem:[#allocation3 + $0x618] sm:$0xff] %v248_v36  ;;  %v376_v36 = vld [vmem:[%s8511_s5 + $0x320] sm:$0xff] }
  0x68   :  { %251 = vst [vmem:[#allocation3 + $0x4c0] sm:$0xff] %v250_v37  ;;  %v378_v37 = vld [vmem:[%s8511_s5 + $0x328] sm:$0xff] }
  0x69   :  { %253 = vst [vmem:[#allocation3 + $0x70] sm:$0xff] %v252_v38  ;;  %v380_v38 = vld [vmem:[%s8511_s5 + $0x330] sm:$0xff] }
  0x6a   :  { %255 = vst [vmem:[#allocation3 + $0x7b8] sm:$0xff] %v254_v39  ;;  %v382_v39 = vld [vmem:[%s8511_s5 + $0x338] sm:$0xff] }
  0x6b   :  { %257 = vst [vmem:[#allocation3 + $0x400] sm:$0xff] %v256_v40  ;;  %v384_v40 = vld [vmem:[%s8511_s5 + $0x340] sm:$0xff] }
  0x6c   :  { %259 = vst [vmem:[#allocation3 + $0x6a8] sm:$0xff] %v258_v41  ;;  %v386_v41 = vld [vmem:[%s8511_s5 + $0x348] sm:$0xff] }
  0x6d   :  { %261 = vst [vmem:[#allocation3 + $0x3f8] sm:$0xff] %v260_v42  ;;  %v388_v42 = vld [vmem:[%s8511_s5 + $0x350] sm:$0xff] }
  0x6e   :  { %263 = vst [vmem:[#allocation3 + $0x2e8] sm:$0xff] %v262_v43  ;;  %v390_v43 = vld [vmem:[%s8511_s5 + $0x358] sm:$0xff] }
  0x6f   :  { %265 = vst [vmem:[#allocation3 + $0x6c8] sm:$0xff] %v264_v44  ;;  %v392_v44 = vld [vmem:[%s8511_s5 + $0x360] sm:$0xff] }
  0x70   :  { %267 = vst [vmem:[#allocation3 + $0x5c0] sm:$0xff] %v266_v45  ;;  %v394_v45 = vld [vmem:[%s8511_s5 + $0x368] sm:$0xff] }
  0x71   :  { %269 = vst [vmem:[#allocation3 + $0x5e8] sm:$0xff] %v268_v46  ;;  %v396_v46 = vld [vmem:[%s8511_s5 + $0x370] sm:$0xff] }
  0x72   :  { %271 = vst [vmem:[#allocation3 + $0x5f8] sm:$0xff] %v270_v47  ;;  %v398_v47 = vld [vmem:[%s8511_s5 + $0x378] sm:$0xff] }
  0x73   :  { %273 = vst [vmem:[#allocation3 + $0x770] sm:$0xff] %v272_v48  ;;  %v400_v48 = vld [vmem:[%s8511_s5 + $0x380] sm:$0xff] }
  0x74   :  { %275 = vst [vmem:[#allocation3 + $0x520] sm:$0xff] %v274_v49  ;;  %v402_v49 = vld [vmem:[%s8511_s5 + $0x388] sm:$0xff] }
  0x75   :  { %277 = vst [vmem:[#allocation3 + $0x640] sm:$0xff] %v276_v50  ;;  %v404_v50 = vld [vmem:[%s8511_s5 + $0x390] sm:$0xff] }
  0x76   :  { %279 = vst [vmem:[#allocation3 + $0x250] sm:$0xff] %v278_v51  ;;  %v406_v51 = vld [vmem:[%s8511_s5 + $0x398] sm:$0xff] }
  0x77   :  { %281 = vst [vmem:[#allocation3 + $0x348] sm:$0xff] %v280_v52  ;;  %v408_v52 = vld [vmem:[%s8511_s5 + $0x3a0] sm:$0xff] }
  0x78   :  { %283 = vst [vmem:[#allocation3 + $0x420] sm:$0xff] %v282_v53  ;;  %v410_v53 = vld [vmem:[%s8511_s5 + $0x3a8] sm:$0xff] }
  0x79   :  { %285 = vst [vmem:[#allocation3 + $0xe0] sm:$0xff] %v284_v54  ;;  %v412_v54 = vld [vmem:[%s8511_s5 + $0x3b0] sm:$0xff] }
  0x7a   :  { %287 = vst [vmem:[#allocation3 + $0x620] sm:$0xff] %v286_v55  ;;  %v414_v55 = vld [vmem:[%s8511_s5 + $0x3b8] sm:$0xff] }
  0x7b   :  { %289 = vst [vmem:[#allocation3 + $0x148] sm:$0xff] %v288_v56  ;;  %v416_v56 = vld [vmem:[%s8511_s5 + $0x3c0] sm:$0xff] }
  0x7c   :  { %291 = vst [vmem:[#allocation3 + $0x3a0] sm:$0xff] %v290_v57  ;;  %v418_v57 = vld [vmem:[%s8511_s5 + $0x3c8] sm:$0xff] }
  0x7d   :  { %293 = vst [vmem:[#allocation3 + $0x4e8] sm:$0xff] %v292_v58  ;;  %v420_v58 = vld [vmem:[%s8511_s5 + $0x3d0] sm:$0xff] }
  0x7e   :  { %295 = vst [vmem:[#allocation3 + $0x310] sm:$0xff] %v294_v59  ;;  %v422_v59 = vld [vmem:[%s8511_s5 + $0x3d8] sm:$0xff] }
  0x7f   :  { %297 = vst [vmem:[#allocation3 + $0x38] sm:$0xff] %v296_v60  ;;  %v424_v60 = vld [vmem:[%s8511_s5 + $0x3e0] sm:$0xff] }
  0x80   :  { %299 = vst [vmem:[#allocation3 + $0x440] sm:$0xff] %v298_v61  ;;  %v426_v61 = vld [vmem:[%s8511_s5 + $0x3e8] sm:$0xff] }
  0x81   :  { %301 = vst [vmem:[#allocation3 + $0x50] sm:$0xff] %v300_v62  ;;  %v428_v62 = vld [vmem:[%s8511_s5 + $0x3f0] sm:$0xff] }
  0x82   :  { %303 = vst [vmem:[#allocation3 + $0x390] sm:$0xff] %v302_v63  ;;  %v430_v63 = vld [vmem:[%s8511_s5 + $0x3f8] sm:$0xff] }
  0x83   :  { %305 = vst [vmem:[#allocation3 + $0x538] sm:$0xff] %v304_v0  ;;  %v432_v0 = vld [vmem:[%s8511_s5 + $0x400] sm:$0xff] }
  0x84   :  { %307 = vst [vmem:[#allocation3 + $0xf0] sm:$0xff] %v306_v1  ;;  %v434_v1 = vld [vmem:[%s8511_s5 + $0x408] sm:$0xff] }
  0x85   :  { %309 = vst [vmem:[#allocation3 + $0x790] sm:$0xff] %v308_v2  ;;  %v436_v2 = vld [vmem:[%s8511_s5 + $0x410] sm:$0xff] }
  0x86   :  { %311 = vst [vmem:[#allocation3 + $0x680] sm:$0xff] %v310_v3  ;;  %v438_v3 = vld [vmem:[%s8511_s5 + $0x418] sm:$0xff] }
  0x87   :  { %313 = vst [vmem:[#allocation3 + $0xb8] sm:$0xff] %v312_v4  ;;  %v440_v4 = vld [vmem:[%s8511_s5 + $0x420] sm:$0xff] }
  0x88   :  { %315 = vst [vmem:[#allocation3 + $0x120] sm:$0xff] %v314_v5  ;;  %v442_v5 = vld [vmem:[%s8511_s5 + $0x428] sm:$0xff] }
  0x89   :  { %317 = vst [vmem:[#allocation3 + $0xd0] sm:$0xff] %v316_v6  ;;  %v444_v6 = vld [vmem:[%s8511_s5 + $0x430] sm:$0xff] }
  0x8a   :  { %319 = vst [vmem:[#allocation3 + $0x40] sm:$0xff] %v318_v7  ;;  %v446_v7 = vld [vmem:[%s8511_s5 + $0x438] sm:$0xff] }
  0x8b   :  { %321 = vst [vmem:[#allocation3 + $0x6f0] sm:$0xff] %v320_v8  ;;  %v448_v8 = vld [vmem:[%s8511_s5 + $0x440] sm:$0xff] }
  0x8c   :  { %323 = vst [vmem:[#allocation3 + $0x2f8] sm:$0xff] %v322_v9  ;;  %v450_v9 = vld [vmem:[%s8511_s5 + $0x448] sm:$0xff] }
  0x8d   :  { %325 = vst [vmem:[#allocation3 + $0x758] sm:$0xff] %v324_v10  ;;  %v452_v10 = vld [vmem:[%s8511_s5 + $0x450] sm:$0xff] }
  0x8e   :  { %327 = vst [vmem:[#allocation3 + $0x178] sm:$0xff] %v326_v11  ;;  %v454_v11 = vld [vmem:[%s8511_s5 + $0x458] sm:$0xff] }
  0x8f   :  { %329 = vst [vmem:[#allocation3 + $0x738] sm:$0xff] %v328_v12  ;;  %v456_v12 = vld [vmem:[%s8511_s5 + $0x460] sm:$0xff] }
  0x90   :  { %331 = vst [vmem:[#allocation3 + $0x598] sm:$0xff] %v330_v13  ;;  %v458_v13 = vld [vmem:[%s8511_s5 + $0x468] sm:$0xff] }
  0x91   :  { %333 = vst [vmem:[#allocation3 + $0x7d8] sm:$0xff] %v332_v14  ;;  %v460_v14 = vld [vmem:[%s8511_s5 + $0x470] sm:$0xff] }
  0x92   :  { %335 = vst [vmem:[#allocation3 + $0x6d8] sm:$0xff] %v334_v15  ;;  %v462_v15 = vld [vmem:[%s8511_s5 + $0x478] sm:$0xff] }
  0x93   :  { %337 = vst [vmem:[#allocation3 + $0x398] sm:$0xff] %v336_v16  ;;  %v464_v16 = vld [vmem:[%s8511_s5 + $0x480] sm:$0xff] }
  0x94   :  { %339 = vst [vmem:[#allocation3 + $0x1a8] sm:$0xff] %v338_v17  ;;  %v466_v17 = vld [vmem:[%s8511_s5 + $0x488] sm:$0xff] }
  0x95   :  { %341 = vst [vmem:[#allocation3 + $0x698] sm:$0xff] %v340_v18  ;;  %v468_v18 = vld [vmem:[%s8511_s5 + $0x490] sm:$0xff] }
  0x96   :  { %343 = vst [vmem:[#allocation3 + $0x3b8] sm:$0xff] %v342_v19  ;;  %v470_v19 = vld [vmem:[%s8511_s5 + $0x498] sm:$0xff] }
  0x97   :  { %345 = vst [vmem:[#allocation3 + $0x5d8] sm:$0xff] %v344_v20  ;;  %v472_v20 = vld [vmem:[%s8511_s5 + $0x4a0] sm:$0xff] }
  0x98   :  { %347 = vst [vmem:[#allocation3 + $0x610] sm:$0xff] %v346_v21  ;;  %v474_v21 = vld [vmem:[%s8511_s5 + $0x4a8] sm:$0xff] }
  0x99   :  { %349 = vst [vmem:[#allocation3 + $0x218] sm:$0xff] %v348_v22  ;;  %v476_v22 = vld [vmem:[%s8511_s5 + $0x4b0] sm:$0xff] }
  0x9a   :  { %351 = vst [vmem:[#allocation3 + $0x1d8] sm:$0xff] %v350_v23  ;;  %v478_v23 = vld [vmem:[%s8511_s5 + $0x4b8] sm:$0xff] }
  0x9b   :  { %353 = vst [vmem:[#allocation3 + $0x628] sm:$0xff] %v352_v24  ;;  %v480_v24 = vld [vmem:[%s8511_s5 + $0x4c0] sm:$0xff] }
  0x9c   :  { %355 = vst [vmem:[#allocation3 + $0x1f8] sm:$0xff] %v354_v25  ;;  %v482_v25 = vld [vmem:[%s8511_s5 + $0x4c8] sm:$0xff] }
  0x9d   :  { %357 = vst [vmem:[#allocation3 + $0x388] sm:$0xff] %v356_v26  ;;  %v484_v26 = vld [vmem:[%s8511_s5 + $0x4d0] sm:$0xff] }
  0x9e   :  { %359 = vst [vmem:[#allocation3 + $0x278] sm:$0xff] %v358_v27  ;;  %v486_v27 = vld [vmem:[%s8511_s5 + $0x4d8] sm:$0xff] }
  0x9f   :  { %361 = vst [vmem:[#allocation3 + $0x478] sm:$0xff] %v360_v28  ;;  %v488_v28 = vld [vmem:[%s8511_s5 + $0x4e0] sm:$0xff] }
  0xa0   :  { %363 = vst [vmem:[#allocation3 + $0x2c0] sm:$0xff] %v362_v29  ;;  %v490_v29 = vld [vmem:[%s8511_s5 + $0x4e8] sm:$0xff] }
  0xa1   :  { %365 = vst [vmem:[#allocation3 + $0x1c8] sm:$0xff] %v364_v30  ;;  %v492_v30 = vld [vmem:[%s8511_s5 + $0x4f0] sm:$0xff] }
  0xa2   :  { %367 = vst [vmem:[#allocation3 + $0x7c0] sm:$0xff] %v366_v31  ;;  %v494_v31 = vld [vmem:[%s8511_s5 + $0x4f8] sm:$0xff] }
  0xa3   :  { %369 = vst [vmem:[#allocation3 + $0x418] sm:$0xff] %v368_v32  ;;  %v496_v32 = vld [vmem:[%s8511_s5 + $0x500] sm:$0xff] }
  0xa4   :  { %371 = vst [vmem:[#allocation3 + $0x7f0] sm:$0xff] %v370_v33  ;;  %v498_v33 = vld [vmem:[%s8511_s5 + $0x508] sm:$0xff] }
  0xa5   :  { %373 = vst [vmem:[#allocation3 + $0x4b0] sm:$0xff] %v372_v34  ;;  %v500_v34 = vld [vmem:[%s8511_s5 + $0x510] sm:$0xff] }
  0xa6   :  { %375 = vst [vmem:[#allocation3 + $0x318] sm:$0xff] %v374_v35  ;;  %v502_v35 = vld [vmem:[%s8511_s5 + $0x518] sm:$0xff] }
  0xa7   :  { %377 = vst [vmem:[#allocation3 + $0x90] sm:$0xff] %v376_v36  ;;  %v504_v36 = vld [vmem:[%s8511_s5 + $0x520] sm:$0xff] }
  0xa8   :  { %379 = vst [vmem:[#allocation3 + $0x540] sm:$0xff] %v378_v37  ;;  %v506_v37 = vld [vmem:[%s8511_s5 + $0x528] sm:$0xff] }
  0xa9   :  { %381 = vst [vmem:[#allocation3 + $0x588] sm:$0xff] %v380_v38  ;;  %v508_v38 = vld [vmem:[%s8511_s5 + $0x530] sm:$0xff] }
  0xaa   :  { %383 = vst [vmem:[#allocation3 + $0x648] sm:$0xff] %v382_v39  ;;  %v510_v39 = vld [vmem:[%s8511_s5 + $0x538] sm:$0xff] }
  0xab   :  { %385 = vst [vmem:[#allocation3 + $0x58] sm:$0xff] %v384_v40  ;;  %v512_v40 = vld [vmem:[%s8511_s5 + $0x540] sm:$0xff] }
  0xac   :  { %387 = vst [vmem:[#allocation3 + $0x198] sm:$0xff] %v386_v41  ;;  %v514_v41 = vld [vmem:[%s8511_s5 + $0x548] sm:$0xff] }
  0xad   :  { %389 = vst [vmem:[#allocation3 + $0x68] sm:$0xff] %v388_v42  ;;  %v516_v42 = vld [vmem:[%s8511_s5 + $0x550] sm:$0xff] }
  0xae   :  { %391 = vst [vmem:[#allocation3 + $0x600] sm:$0xff] %v390_v43  ;;  %v518_v43 = vld [vmem:[%s8511_s5 + $0x558] sm:$0xff] }
  0xaf   :  { %393 = vst [vmem:[#allocation3 + $0x3a8] sm:$0xff] %v392_v44  ;;  %v520_v44 = vld [vmem:[%s8511_s5 + $0x560] sm:$0xff] }
  0xb0   :  { %395 = vst [vmem:[#allocation3 + $0xb0] sm:$0xff] %v394_v45  ;;  %v522_v45 = vld [vmem:[%s8511_s5 + $0x568] sm:$0xff] }
  0xb1   :  { %397 = vst [vmem:[#allocation3 + $0x630] sm:$0xff] %v396_v46  ;;  %v524_v46 = vld [vmem:[%s8511_s5 + $0x570] sm:$0xff] }
  0xb2   :  { %399 = vst [vmem:[#allocation3 + $0x158] sm:$0xff] %v398_v47  ;;  %v526_v47 = vld [vmem:[%s8511_s5 + $0x578] sm:$0xff] }
  0xb3   :  { %401 = vst [vmem:[#allocation3 + $0x370] sm:$0xff] %v400_v48  ;;  %v528_v48 = vld [vmem:[%s8511_s5 + $0x580] sm:$0xff] }
  0xb4   :  { %403 = vst [vmem:[#allocation3 + $0x1e0] sm:$0xff] %v402_v49  ;;  %v530_v49 = vld [vmem:[%s8511_s5 + $0x588] sm:$0xff] }
  0xb5   :  { %405 = vst [vmem:[#allocation3 + $0x7b0] sm:$0xff] %v404_v50  ;;  %v532_v50 = vld [vmem:[%s8511_s5 + $0x590] sm:$0xff] }
  0xb6   :  { %407 = vst [vmem:[#allocation3 + $0x6c0] sm:$0xff] %v406_v51  ;;  %v534_v51 = vld [vmem:[%s8511_s5 + $0x598] sm:$0xff] }
  0xb7   :  { %409 = vst [vmem:[#allocation3 + $0xd8] sm:$0xff] %v408_v52  ;;  %v536_v52 = vld [vmem:[%s8511_s5 + $0x5a0] sm:$0xff] }
  0xb8   :  { %411 = vst [vmem:[#allocation3 + $0x6b8] sm:$0xff] %v410_v53  ;;  %v538_v53 = vld [vmem:[%s8511_s5 + $0x5a8] sm:$0xff] }
  0xb9   :  { %413 = vst [vmem:[#allocation3 + $0x140] sm:$0xff] %v412_v54  ;;  %v540_v54 = vld [vmem:[%s8511_s5 + $0x5b0] sm:$0xff] }
  0xba   :  { %415 = vst [vmem:[#allocation3 + $0x5b0] sm:$0xff] %v414_v55  ;;  %v542_v55 = vld [vmem:[%s8511_s5 + $0x5b8] sm:$0xff] }
  0xbb   :  { %417 = vst [vmem:[#allocation3 + $0x30] sm:$0xff] %v416_v56  ;;  %v544_v56 = vld [vmem:[%s8511_s5 + $0x5c0] sm:$0xff] }
  0xbc   :  { %419 = vst [vmem:[#allocation3 + $0x128] sm:$0xff] %v418_v57  ;;  %v546_v57 = vld [vmem:[%s8511_s5 + $0x5c8] sm:$0xff] }
  0xbd   :  { %421 = vst [vmem:[#allocation3 + $0x1a0] sm:$0xff] %v420_v58  ;;  %v548_v58 = vld [vmem:[%s8511_s5 + $0x5d0] sm:$0xff] }
  0xbe   :  { %423 = vst [vmem:[#allocation3 + $0x5f0] sm:$0xff] %v422_v59  ;;  %v550_v59 = vld [vmem:[%s8511_s5 + $0x5d8] sm:$0xff] }
  0xbf   :  { %425 = vst [vmem:[#allocation3 + $0x670] sm:$0xff] %v424_v60  ;;  %v552_v60 = vld [vmem:[%s8511_s5 + $0x5e0] sm:$0xff] }
  0xc0   :  { %427 = vst [vmem:[#allocation3 + $0x240] sm:$0xff] %v426_v61  ;;  %v554_v61 = vld [vmem:[%s8511_s5 + $0x5e8] sm:$0xff] }
  0xc1   :  { %429 = vst [vmem:[#allocation3 + $0x118] sm:$0xff] %v428_v62  ;;  %v556_v62 = vld [vmem:[%s8511_s5 + $0x5f0] sm:$0xff] }
  0xc2   :  { %431 = vst [vmem:[#allocation3 + $0x268] sm:$0xff] %v430_v63  ;;  %v558_v63 = vld [vmem:[%s8511_s5 + $0x5f8] sm:$0xff] }
  0xc3   :  { %433 = vst [vmem:[#allocation3 + $0x4a8] sm:$0xff] %v432_v0  ;;  %v560_v0 = vld [vmem:[%s8511_s5 + $0x600] sm:$0xff] }
  0xc4   :  { %435 = vst [vmem:[#allocation3 + $0x5c8] sm:$0xff] %v434_v1  ;;  %v562_v1 = vld [vmem:[%s8511_s5 + $0x608] sm:$0xff] }
  0xc5   :  { %437 = vst [vmem:[#allocation3 + $0x438] sm:$0xff] %v436_v2  ;;  %v564_v2 = vld [vmem:[%s8511_s5 + $0x610] sm:$0xff] }
  0xc6   :  { %439 = vst [vmem:[#allocation3 + $0x350] sm:$0xff] %v438_v3  ;;  %v566_v3 = vld [vmem:[%s8511_s5 + $0x618] sm:$0xff] }
  0xc7   :  { %441 = vst [vmem:[#allocation3 + $0x2c8] sm:$0xff] %v440_v4  ;;  %v568_v4 = vld [vmem:[%s8511_s5 + $0x620] sm:$0xff] }
  0xc8   :  { %443 = vst [vmem:[#allocation3 + $0xf8] sm:$0xff] %v442_v5  ;;  %v570_v5 = vld [vmem:[%s8511_s5 + $0x628] sm:$0xff] }
  0xc9   :  { %445 = vst [vmem:[#allocation3 + $0x488] sm:$0xff] %v444_v6  ;;  %v572_v6 = vld [vmem:[%s8511_s5 + $0x630] sm:$0xff] }
  0xca   :  { %447 = vst [vmem:[#allocation3 + $0x6a0] sm:$0xff] %v446_v7  ;;  %v574_v7 = vld [vmem:[%s8511_s5 + $0x638] sm:$0xff] }
  0xcb   :  { %449 = vst [vmem:[#allocation3 + $0x3c8] sm:$0xff] %v448_v8  ;;  %v576_v8 = vld [vmem:[%s8511_s5 + $0x640] sm:$0xff] }
  0xcc   :  { %451 = vst [vmem:[#allocation3 + $0x1e8] sm:$0xff] %v450_v9  ;;  %v578_v9 = vld [vmem:[%s8511_s5 + $0x648] sm:$0xff] }
  0xcd   :  { %453 = vst [vmem:[#allocation3 + $0x6d0] sm:$0xff] %v452_v10  ;;  %v580_v10 = vld [vmem:[%s8511_s5 + $0x650] sm:$0xff] }
  0xce   :  { %455 = vst [vmem:[#allocation3 + $0x688] sm:$0xff] %v454_v11  ;;  %v582_v11 = vld [vmem:[%s8511_s5 + $0x658] sm:$0xff] }
  0xcf   :  { %457 = vst [vmem:[#allocation3 + $0x730] sm:$0xff] %v456_v12  ;;  %v584_v12 = vld [vmem:[%s8511_s5 + $0x660] sm:$0xff] }
  0xd0   :  { %459 = vst [vmem:[#allocation3 + $0x658] sm:$0xff] %v458_v13  ;;  %v586_v13 = vld [vmem:[%s8511_s5 + $0x668] sm:$0xff] }
  0xd1   :  { %461 = vst [vmem:[#allocation3 + $0x458] sm:$0xff] %v460_v14  ;;  %v588_v14 = vld [vmem:[%s8511_s5 + $0x670] sm:$0xff] }
  0xd2   :  { %463 = vst [vmem:[#allocation3 + $0x1b8] sm:$0xff] %v462_v15  ;;  %v590_v15 = vld [vmem:[%s8511_s5 + $0x678] sm:$0xff] }
  0xd3   :  { %465 = vst [vmem:[#allocation3 + $0x460] sm:$0xff] %v464_v16  ;;  %v592_v16 = vld [vmem:[%s8511_s5 + $0x680] sm:$0xff] }
  0xd4   :  { %467 = vst [vmem:[#allocation3 + $0x4f0] sm:$0xff] %v466_v17  ;;  %v594_v17 = vld [vmem:[%s8511_s5 + $0x688] sm:$0xff] }
  0xd5   :  { %469 = vst [vmem:[#allocation3 + $0x528] sm:$0xff] %v468_v18  ;;  %v596_v18 = vld [vmem:[%s8511_s5 + $0x690] sm:$0xff] }
  0xd6   :  { %471 = vst [vmem:[#allocation3 + $0x258] sm:$0xff] %v470_v19  ;;  %v598_v19 = vld [vmem:[%s8511_s5 + $0x698] sm:$0xff] }
  0xd7   :  { %473 = vst [vmem:[#allocation3 + $0x4d0] sm:$0xff] %v472_v20  ;;  %v600_v20 = vld [vmem:[%s8511_s5 + $0x6a0] sm:$0xff] }
  0xd8   :  { %475 = vst [vmem:[#allocation3 + $0x4f8] sm:$0xff] %v474_v21  ;;  %v602_v21 = vld [vmem:[%s8511_s5 + $0x6a8] sm:$0xff] }
  0xd9   :  { %477 = vst [vmem:[#allocation3 + $0x78] sm:$0xff] %v476_v22  ;;  %v604_v22 = vld [vmem:[%s8511_s5 + $0x6b0] sm:$0xff] }
  0xda   :  { %479 = vst [vmem:[#allocation3 + $0x2a0] sm:$0xff] %v478_v23  ;;  %v606_v23 = vld [vmem:[%s8511_s5 + $0x6b8] sm:$0xff] }
  0xdb   :  { %481 = vst [vmem:[#allocation3 + $0x10] sm:$0xff] %v480_v24  ;;  %v608_v24 = vld [vmem:[%s8511_s5 + $0x6c0] sm:$0xff] }
  0xdc   :  { %483 = vst [vmem:[#allocation3 + $0x778] sm:$0xff] %v482_v25  ;;  %v610_v25 = vld [vmem:[%s8511_s5 + $0x6c8] sm:$0xff] }
  0xdd   :  { %485 = vst [vmem:[#allocation3 + $0x7a8] sm:$0xff] %v484_v26  ;;  %v612_v26 = vld [vmem:[%s8511_s5 + $0x6d0] sm:$0xff] }
  0xde   :  { %487 = vst [vmem:[#allocation3 + $0x530] sm:$0xff] %v486_v27  ;;  %v614_v27 = vld [vmem:[%s8511_s5 + $0x6d8] sm:$0xff] }
  0xdf   :  { %489 = vst [vmem:[#allocation3 + $0x590] sm:$0xff] %v488_v28  ;;  %v616_v28 = vld [vmem:[%s8511_s5 + $0x6e0] sm:$0xff] }
  0xe0   :  { %491 = vst [vmem:[#allocation3 + $0x660] sm:$0xff] %v490_v29  ;;  %v618_v29 = vld [vmem:[%s8511_s5 + $0x6e8] sm:$0xff] }
  0xe1   :  { %493 = vst [vmem:[#allocation3 + $0x358] sm:$0xff] %v492_v30  ;;  %v620_v30 = vld [vmem:[%s8511_s5 + $0x6f0] sm:$0xff] }
  0xe2   :  { %495 = vst [vmem:[#allocation3 + $0x700] sm:$0xff] %v494_v31  ;;  %v622_v31 = vld [vmem:[%s8511_s5 + $0x6f8] sm:$0xff] }
  0xe3   :  { %497 = vst [vmem:[#allocation3 + $0x340] sm:$0xff] %v496_v32  ;;  %v624_v32 = vld [vmem:[%s8511_s5 + $0x700] sm:$0xff] }
  0xe4   :  { %499 = vst [vmem:[#allocation3 + $0x5a0] sm:$0xff] %v498_v33  ;;  %v626_v33 = vld [vmem:[%s8511_s5 + $0x708] sm:$0xff] }
  0xe5   :  { %501 = vst [vmem:[#allocation3 + $0x3d0] sm:$0xff] %v500_v34  ;;  %v628_v34 = vld [vmem:[%s8511_s5 + $0x710] sm:$0xff] }
  0xe6   :  { %503 = vst [vmem:[#allocation3 + $0x230] sm:$0xff] %v502_v35  ;;  %v630_v35 = vld [vmem:[%s8511_s5 + $0x718] sm:$0xff] }
  0xe7   :  { %505 = vst [vmem:[#allocation3 + $0x560] sm:$0xff] %v504_v36  ;;  %v632_v36 = vld [vmem:[%s8511_s5 + $0x720] sm:$0xff] }
  0xe8   :  { %507 = vst [vmem:[#allocation3 + $0x7f8] sm:$0xff] %v506_v37  ;;  %v634_v37 = vld [vmem:[%s8511_s5 + $0x728] sm:$0xff] }
  0xe9   :  { %509 = vst [vmem:[#allocation3 + $0x4e0] sm:$0xff] %v508_v38  ;;  %v636_v38 = vld [vmem:[%s8511_s5 + $0x730] sm:$0xff] }
  0xea   :  { %511 = vst [vmem:[#allocation3 + $0x200] sm:$0xff] %v510_v39  ;;  %v638_v39 = vld [vmem:[%s8511_s5 + $0x738] sm:$0xff] }
  0xeb   :  { %513 = vst [vmem:[#allocation3 + $0x468] sm:$0xff] %v512_v40  ;;  %v640_v40 = vld [vmem:[%s8511_s5 + $0x740] sm:$0xff] }
  0xec   :  { %515 = vst [vmem:[#allocation3 + $0x2a8] sm:$0xff] %v514_v41  ;;  %v642_v41 = vld [vmem:[%s8511_s5 + $0x748] sm:$0xff] }
  0xed   :  { %517 = vst [vmem:[#allocation3 + $0x1d0] sm:$0xff] %v516_v42  ;;  %v644_v42 = vld [vmem:[%s8511_s5 + $0x750] sm:$0xff] }
  0xee   :  { %519 = vst [vmem:[#allocation3 + $0x510] sm:$0xff] %v518_v43  ;;  %v646_v43 = vld [vmem:[%s8511_s5 + $0x758] sm:$0xff] }
  0xef   :  { %521 = vst [vmem:[#allocation3 + $0x750] sm:$0xff] %v520_v44  ;;  %v648_v44 = vld [vmem:[%s8511_s5 + $0x760] sm:$0xff] }
  0xf0   :  { %523 = vst [vmem:[#allocation3 + $0x130] sm:$0xff] %v522_v45  ;;  %v650_v45 = vld [vmem:[%s8511_s5 + $0x768] sm:$0xff] }
  0xf1   :  { %525 = vst [vmem:[#allocation3 + $0x28] sm:$0xff] %v524_v46  ;;  %v652_v46 = vld [vmem:[%s8511_s5 + $0x770] sm:$0xff] }
  0xf2   :  { %527 = vst [vmem:[#allocation3 + $0x760] sm:$0xff] %v526_v47  ;;  %v654_v47 = vld [vmem:[%s8511_s5 + $0x778] sm:$0xff] }
  0xf3   :  { %529 = vst [vmem:[#allocation3 + $0x5d0] sm:$0xff] %v528_v48  ;;  %v656_v48 = vld [vmem:[%s8511_s5 + $0x780] sm:$0xff] }
  0xf4   :  { %531 = vst [vmem:[#allocation3 + $0x228] sm:$0xff] %v530_v49  ;;  %v658_v49 = vld [vmem:[%s8511_s5 + $0x788] sm:$0xff] }
  0xf5   :  { %533 = vst [vmem:[#allocation3 + $0x208] sm:$0xff] %v532_v50  ;;  %v660_v50 = vld [vmem:[%s8511_s5 + $0x790] sm:$0xff] }
  0xf6   :  { %535 = vst [vmem:[#allocation3 + $0x290] sm:$0xff] %v534_v51  ;;  %v662_v51 = vld [vmem:[%s8511_s5 + $0x798] sm:$0xff] }
  0xf7   :  { %537 = vst [vmem:[#allocation3 + $0x7a0] sm:$0xff] %v536_v52  ;;  %v664_v52 = vld [vmem:[%s8511_s5 + $0x7a0] sm:$0xff] }
  0xf8   :  { %539 = vst [vmem:[#allocation3 + $0x80] sm:$0xff] %v538_v53  ;;  %v666_v53 = vld [vmem:[%s8511_s5 + $0x7a8] sm:$0xff] }
  0xf9   :  { %541 = vst [vmem:[#allocation3 + $0x4c8] sm:$0xff] %v540_v54  ;;  %v668_v54 = vld [vmem:[%s8511_s5 + $0x7b0] sm:$0xff] }
  0xfa   :  { %543 = vst [vmem:[#allocation3 + $0x3f0] sm:$0xff] %v542_v55  ;;  %v670_v55 = vld [vmem:[%s8511_s5 + $0x7b8] sm:$0xff] }
  0xfb   :  { %545 = vst [vmem:[#allocation3 + $0x798] sm:$0xff] %v544_v56  ;;  %v672_v56 = vld [vmem:[%s8511_s5 + $0x7c0] sm:$0xff] }
  0xfc   :  { %547 = vst [vmem:[#allocation3 + $0x378] sm:$0xff] %v546_v57  ;;  %v674_v57 = vld [vmem:[%s8511_s5 + $0x7c8] sm:$0xff] }
  0xfd   :  { %549 = vst [vmem:[#allocation3 + $0x160] sm:$0xff] %v548_v58  ;;  %v676_v58 = vld [vmem:[%s8511_s5 + $0x7d0] sm:$0xff] }
  0xfe   :  { %551 = vst [vmem:[#allocation3 + $0x260] sm:$0xff] %v550_v59  ;;  %v678_v59 = vld [vmem:[%s8511_s5 + $0x7d8] sm:$0xff] }
  0xff   :  { %553 = vst [vmem:[#allocation3 + $0x728] sm:$0xff] %v552_v60  ;;  %v680_v60 = vld [vmem:[%s8511_s5 + $0x7e0] sm:$0xff] }
 0x100   :  { %555 = vst [vmem:[#allocation3 + $0x288] sm:$0xff] %v554_v61  ;;  %v682_v61 = vld [vmem:[%s8511_s5 + $0x7e8] sm:$0xff] }
 0x101   :  { %557 = vst [vmem:[#allocation3 + $0x188] sm:$0xff] %v556_v62  ;;  %v684_v62 = vld [vmem:[%s8511_s5 + $0x7f0] sm:$0xff] }
 0x102   :  { %559 = vst [vmem:[#allocation3 + $0x408] sm:$0xff] %v558_v63  ;;  %v686_v63 = vld [vmem:[%s8511_s5 + $0x7f8] sm:$0xff] }
 0x103   :  { %561 = vst [vmem:[#allocation3 + $0x678] sm:$0xff] %v560_v0 }
 0x104   :  { %563 = vst [vmem:[#allocation3 + $0x98] sm:$0xff] %v562_v1 }
 0x105   :  { %565 = vst [vmem:[#allocation3 + $0x470] sm:$0xff] %v564_v2 }
 0x106   :  { %567 = vst [vmem:[#allocation3 + $0x410] sm:$0xff] %v566_v3 }
 0x107   :  { %569 = vst [vmem:[#allocation3 + $0x248] sm:$0xff] %v568_v4 }
 0x108   :  { %571 = vst [vmem:[#allocation3 + $0x548] sm:$0xff] %v570_v5 }
 0x109   :  { %573 = vst [vmem:[#allocation3 + $0x220] sm:$0xff] %v572_v6 }
 0x10a   :  { %575 = vst [vmem:[#allocation3 + $0x780] sm:$0xff] %v574_v7 }
 0x10b   :  { %577 = vst [vmem:[#allocation3 + $0x708] sm:$0xff] %v576_v8 }
 0x10c   :  { %579 = vst [vmem:[#allocation3 + $0x8] sm:$0xff] %v578_v9 }
 0x10d   :  { %581 = vst [vmem:[#allocation3 + $0x428] sm:$0xff] %v580_v10 }
 0x10e   :  { %583 = vst [vmem:[#allocation3 + $0x170] sm:$0xff] %v582_v11 }
 0x10f   :  { %585 = vst [vmem:[#allocation3 + $0x7e0] sm:$0xff] %v584_v12 }
 0x110   :  { %587 = vst [vmem:[#allocation3 + $0x20] sm:$0xff] %v586_v13 }
 0x111   :  { %589 = vst [vmem:[#allocation3 + $0x308] sm:$0xff] %v588_v14 }
 0x112   :  { %591 = vst [vmem:[#allocation3 + $0x88] sm:$0xff] %v590_v15 }
 0x113   :  { %593 = vst [vmem:[#allocation3 + $0x6e8] sm:$0xff] %v592_v16 }
 0x114   :  { %595 = vst [vmem:[#allocation3 + $0x6b0] sm:$0xff] %v594_v17 }
 0x115   :  { %597 = vst [vmem:[#allocation3 + $0x300] sm:$0xff] %v596_v18 }
 0x116   :  { %599 = vst [vmem:[#allocation3 + $0x108] sm:$0xff] %v598_v19 }
 0x117   :  { %601 = vst [vmem:[#allocation3 + $0x180] sm:$0xff] %v600_v20 }
 0x118   :  { %603 = vst [vmem:[#allocation3 + $0x490] sm:$0xff] %v602_v21 }
 0x119   :  { %605 = vst [vmem:[#allocation3 + $0x570] sm:$0xff] %v604_v22 }
 0x11a   :  { %607 = vst [vmem:[#allocation3 + $0x500] sm:$0xff] %v606_v23 }
 0x11b   :  { %609 = vst [vmem:[#allocation3 + $0xe8] sm:$0xff] %v608_v24 }
 0x11c   :  { %611 = vst [vmem:[#allocation3 + $0x2f0] sm:$0xff] %v610_v25 }
 0x11d   :  { %613 = vst [vmem:[#allocation3 + $0x7e8] sm:$0xff] %v612_v26 }
 0x11e   :  { %615 = vst [vmem:[#allocation3 + $0x360] sm:$0xff] %v614_v27 }
 0x11f   :  { %617 = vst [vmem:[#allocation3 + $0x60] sm:$0xff] %v616_v28 }
 0x120   :  { %619 = vst [vmem:[#allocation3 + $0x210] sm:$0xff] %v618_v29 }
 0x121   :  { %621 = vst [vmem:[#allocation3 + $0x4a0] sm:$0xff] %v620_v30 }
 0x122   :  { %623 = vst [vmem:[#allocation3 + $0x748] sm:$0xff] %v622_v31 }
 0x123   :  { %625 = vst [vmem:[#allocation3 + $0x168] sm:$0xff] %v624_v32 }
 0x124   :  { %627 = vst [vmem:[#allocation3 + $0x668] sm:$0xff] %v626_v33 }
 0x125   :  { %629 = vst [vmem:[#allocation3 + $0x270] sm:$0xff] %v628_v34 }
 0x126   :  { %631 = vst [vmem:[#allocation3 + $0x2d8] sm:$0xff] %v630_v35 }
 0x127   :  { %633 = vst [vmem:[#allocation3 + $0xc8] sm:$0xff] %v632_v36 }
 0x128   :  { %635 = vst [vmem:[#allocation3 + $0xa0] sm:$0xff] %v634_v37 }
 0x129   :  { %637 = vst [vmem:[#allocation3 + $0x48] sm:$0xff] %v636_v38 }
 0x12a   :  { %639 = vst [vmem:[#allocation3 + $0x328] sm:$0xff] %v638_v39 }
 0x12b   :  { %641 = vst [vmem:[#allocation3 + $0x7c8] sm:$0xff] %v640_v40 }
 0x12c   :  { %643 = vst [vmem:[#allocation3 + $0x430] sm:$0xff] %v642_v41 }
 0x12d   :  { %645 = vst [vmem:[#allocation3 + $0x578] sm:$0xff] %v644_v42 }
 0x12e   :  { %647 = vst [vmem:[#allocation3 + $0x608] sm:$0xff] %v646_v43 }
 0x12f   :  { %649 = vst [vmem:[#allocation3 + $0x638] sm:$0xff] %v648_v44 }
 0x130   :  { %651 = vst [vmem:[#allocation3 + $0x4b8] sm:$0xff] %v650_v45 }
 0x131   :  { %653 = vst [vmem:[#allocation3 + $0x298] sm:$0xff] %v652_v46 }
 0x132   :  { %655 = vst [vmem:[#allocation3 + $0x1f0] sm:$0xff] %v654_v47 }
 0x133   :  { %657 = vst [vmem:[#allocation3] sm:$0xff] %v656_v48 }
 0x134   :  { %659 = vst [vmem:[#allocation3 + $0x2d0] sm:$0xff] %v658_v49 }
 0x135   :  { %661 = vst [vmem:[#allocation3 + $0x650] sm:$0xff] %v660_v50 }
 0x136   :  { %663 = vst [vmem:[#allocation3 + $0x480] sm:$0xff] %v662_v51 }
 0x137   :  { %665 = vst [vmem:[#allocation3 + $0x3d8] sm:$0xff] %v664_v52 }
 0x138   :  { %667 = vst [vmem:[#allocation3 + $0x718] sm:$0xff] %v666_v53 }
 0x139   :  { %669 = vst [vmem:[#allocation3 + $0x7d0] sm:$0xff] %v668_v54 }
 0x13a   :  { %671 = vst [vmem:[#allocation3 + $0x190] sm:$0xff] %v670_v55 }
 0x13b   :  { %673 = vst [vmem:[#allocation3 + $0x710] sm:$0xff] %v672_v56 }
 0x13c   :  { %675 = vst [vmem:[#allocation3 + $0xa8] sm:$0xff] %v674_v57 }
 0x13d   :  { %677 = vst [vmem:[#allocation3 + $0x2b8] sm:$0xff] %v676_v58 }
 0x13e   :  { %679 = vst [vmem:[#allocation3 + $0x238] sm:$0xff] %v678_v59 }
 0x13f   :  { %681 = vst [vmem:[#allocation3 + $0x1b0] sm:$0xff] %v680_v60 }
 0x140   :  { %683 = vst [vmem:[#allocation3 + $0x5e0] sm:$0xff] %v682_v61 }
 0x141   :  { %685 = vst [vmem:[#allocation3 + $0x580] sm:$0xff] %v684_v62 }
 0x142   :  { %687 = vst [vmem:[#allocation3 + $0x150] sm:$0xff] %v686_v63 }
 0x143   :  { %693 = vsyncadd [#allocation4 + $0x1], 32768  ;;  %v6586_v0 = vld [vmem:[%s8507_s1] sm:$0xff]  ;;  %vm713_vm0 = vcmask 130048   ;;  %v6588_v3 = vld [vmem:[%s8507_s1 + $0x10] sm:$0xff]  ;;  %vm749_vm1 = vcmask 261120   ;;  %v694_v22 = vlaneseq }
 0x144   :  { %v702_v1 = vld [vmem:[%s8506_s0] sm:$0xff]  ;;  %724 = vmatpush.bf16.msra.mxu0 %v6586_v0  ;;  %759 = vmatpush.bf16.msra.mxu1 %v6588_v3  ;;  %v6587_v4 = vld [vmem:[%s8507_s1 + $0x8] sm:$0xff]  ;;  %s7016_s26 = smov 112   ;;  %s7017_s27 = smov 120   ;;  %vm770_vm2 = vcmask 64512   ;;  %vm7024_vm6 = vmmov 1  }
 0x145   :  { %v703_v2 = vpack.c.bf16 %v702_v1, %v702_v1  ;;  %v706_v5 = vld [vmem:[%s8508_s2] sm:$0xff]  ;;  %v6929_v10 = vld [vmem:[%s8508_s2 + $0x8] ss:$0 sm:$0xff]  ;;  %s7018_s28 = smov 96   ;;  %s7019_s29 = smov 72   ;;  %v695_v23 = vshrl.u32 %v694_v22, 7 }
 0x146   :  { %s7020_s30 = smov 80   ;;  %s7021_s7 = smov 88   ;;  %v697_v24 = vand.u32 127, %v694_v22  ;;  %v837_v57 = vld [vmem:[%s8507_s1 + $0x18] sm:$0xf]  ;;  %vm842_vm8 = vcmask 1043456  }
 0x147   :  { %5201 = vmatmul.msk.bf16.vlgmr.msra.gmra.mxu0 %vm713_vm0, %v703_v2  ;;  %s7022_s8 = smov 104   ;;  %s7023_s9 = smov 64   ;;  %vm698_vm3 = vcmp.lt.s32.totalorder %v695_v23, 4  ;;  %v844_v58 = vsel %vm842_vm8, %v837_v57, 0 }
 0x148   :  { %760 = vmatpush.bf16.msra.mxu1 %v6587_v4  ;;  %vm699_vm4 = vcmp.lt.s32.totalorder %v697_v24, 4  ;;  %s7025_s10 = smov 40   ;;  %s7026_s11 = smov 56  }
 0x149   :  { %vm700_vm5 = vmxor %vm698_vm3, %vm699_vm4  ;;  %s7027_s13 = smov 48  }
 0x14a   :  { %vm8075_vm7 = vmxor %vm700_vm5, %vm7024_vm6 }
 0x1c4   :  { %v726_v6 = vpop.f32.mrf.mxu0 }
 0x1c5   :  { %v8040_v7 = vadd.f32 %v726_v6, %v706_v5 }
 0x1c7   :  { %v730_v8 = vpack.c.bf16 %v8040_v7, %v8040_v7 }
 0x1c9   :  { %5210 = vmatmul.msk.bf16.vlgmr.msra.gmra.mxu1 %vm749_vm1, %v730_v8 }
 0x1cc   :  { %v728_v9 = vpop.f32.mrf.mxu0 }
 0x246   :  { %v762_v11 = vpop.f32.mrf.mxu1 }
 0x247   :  { %v8048_v12 = vadd.f32 %v6929_v10, %v762_v11 }
 0x249   :  { %953 = vrot.lane.b32.xlu2 %v8048_v12, %s7016_s26  ;;  %861 = vrot.lane.b32.xlu1 %v8048_v12, %s7017_s27 }
 0x24a   :  { %768 = vrot.lane.b32.xlu0 %v8048_v12, %s7018_s28 }
 0x24e   :  { %v764_v13 = vpop.f32.mrf.mxu1 }
 0x251   :  { %1047 = vrot.lane.b32.xlu2 %v8048_v12, %s7019_s29  ;;  %955 = vrot.lane.b32.xlu1 %v8048_v12, %s7020_s30 }
 0x252   :  { %863 = vrot.lane.b32.xlu0 %v8048_v12, %s7021_s7 }
 0x25a   :  { %1045 = vrot.lane.b32.xlu0 %v8048_v12, %s7022_s8 }
 0x262   :  { %811 = vrot.lane.b32.xlu0 %v8048_v12, %s7023_s9 }
 0x2a3   :  { %v954_v14 = vpop.permute.xlu2 %953 }
 0x2ab   :  { %v1048_v18 = vpop.permute.xlu2 %1047 }
 0x2bb   :  { %v862_v15 = vpop.permute.xlu1 %861 }
 0x2bc   :  { %v769_v16 = vpop.permute.xlu0 %768 }
 0x2bd   :  { %5211 = vmatpush.xpose.msk.msra.mxu2 %vm770_vm2, %v769_v16 }
 0x2c0   :  { %5212 = vmatmul.msk.f32.vlgmr.msra.gmra.mxu2 %vm770_vm2, %v8048_v12 }
 0x2c3   :  { %v956_v17 = vpop.permute.xlu1 %955 }
 0x2c4   :  { %v864_v19 = vpop.permute.xlu0 %863  ;;  %5219 = vmatpush.xpose.msk.msrb.mxu1 %vm770_vm2, %v956_v17 }
 0x2c5   :  { %5215 = vmatpush.xpose.msk.msrb.mxu2 %vm770_vm2, %v864_v19 }
 0x2c7   :  { %5220 = vmatmul.msk.f32.vlgmr.msrb.gmra.mxu1 %vm770_vm2, %v954_v14 }
 0x2c8   :  { %5223 = vmatpush.xpose.msk.msra.mxu1 %vm770_vm2, %v1048_v18  ;;  %5216 = vmatmul.msk.f32.vlgmr.msrb.gmra.mxu2 %vm770_vm2, %v862_v15 }
 0x2cc   :  { %v1046_v20 = vpop.permute.xlu0 %1045 }
 0x2cf   :  { %5224 = vmatmul.msk.f32.vlgmr.msra.gmra.mxu1 %vm770_vm2, %v1046_v20 }
 0x2d4   :  { %v812_v21 = vpop.permute.xlu0 %811 }
 0x2d5   :  { %832 = vmatpush.msra.mxu3 %v812_v21 }
 0x2d7   :  { %853 = vmatpush.bf16.msrb.mxu3 %v844_v58  ;;  %v7028_v58 = vmov 32.0  }
 0x343   :  { %v792_v25 = vpop.f32.mrf.mxu2 }
 0x344   :  { %v795_v27 = vmul.f32 0.35355338, %v792_v25  ;;  %v978_v28 = vpop.f32.mrf.mxu1 }
 0x345   :  { %v981_v29 = vmul.f32 0.35355338, %v978_v28 }
 0x346   :  { %v796_v30 = vsel %vm8075_vm7, %v795_v27, -1e+30 }
 0x347   :  { %v797_v31 = vsel %vm770_vm2, %v796_v30, -inf  ;;  %v982_v32 = vsel %vm8075_vm7, %v981_v29, -1e+30 }
 0x348   :  { %798 = vmax.xlane.f32.xlu1 %v797_v31  ;;  %v983_v53 = vsel %vm770_vm2, %v982_v32, -inf  ;;  %v931_v31 = vld [vmem:[%s8507_s1 + $0x1c] sm:$0xf] }
 0x34b   :  { %v886_v33 = vpop.f32.mrf.mxu2 }
 0x34c   :  { %v889_v34 = vmul.f32 0.35355338, %v886_v33  ;;  %v1070_v35 = vpop.f32.mrf.mxu1  ;;  %v1115_v33 = vld [vmem:[%s8507_s1 + $0x24] sm:$0xf] }
 0x34d   :  { %v1073_v36 = vmul.f32 0.35355338, %v1070_v35  ;;  %v1121_v35 = vsel %vm842_vm8, %v1115_v33, 0 }
 0x34e   :  { %v890_v37 = vsel %vm8075_vm7, %v889_v34, -1e+30  ;;  %v1023_v34 = vld [vmem:[%s8507_s1 + $0x20] sm:$0xf] }
 0x34f   :  { %v891_v38 = vsel %vm770_vm2, %v890_v37, -inf  ;;  %v1074_v39 = vsel %vm8075_vm7, %v1073_v36, -1e+30  ;;  %v1029_v36 = vsel %vm842_vm8, %v1023_v34, 0 }
 0x350   :  { %892 = vmax.xlane.f32.xlu0 %v891_v38  ;;  %v1075_v40 = vsel %vm770_vm2, %v1074_v39, -inf  ;;  %1038 = vmatpush.bf16.msrb.mxu0 %v1029_v36 }
 0x351   :  { %1076 = vmax.xlane.f32.xlu1 %v1075_v40 }
 0x3bb   :  { %v799_v41 = vpop.xlane.xlu1 %798 }
 0x3bc   :  { %v800_v42 = vsub.f32 %v796_v30, %v799_v41 }
 0x3be   :  { %v801_v43 = vmul.f32 1.442695, %v800_v42 }
 0x3c0   :  { %6933 = vpow2.f32 %v801_v43 }
 0x3c3   :  { %v893_v44 = vpop.xlane.xlu0 %892 }
 0x3c4   :  { %v1077_v45 = vpop.xlane.xlu1 %1076  ;;  %v894_v48 = vsub.f32 %v890_v37, %v893_v44 }
 0x3c5   :  { %v1078_v46 = vsub.f32 %v1074_v39, %v1077_v45 }
 0x3c6   :  { %v6934_v47 = vpop.eup %6933  ;;  %v895_v51 = vmul.f32 1.442695, %v894_v48 }
 0x3c7   :  { %v1079_v49 = vmul.f32 1.442695, %v1078_v46  ;;  %v803_v50 = vsel %vm770_vm2, %v6934_v47, 0.0 }
 0x3c8   :  { %804 = vadd.xlane.f32.xlu2 %v803_v50 }
 0x3c9   :  { %6935 = vpow2.f32 %v1079_v49 }
 0x3ca   :  { %6937 = vpow2.f32 %v895_v51 }
 0x3cf   :  { %v8091_v52 = vpop.eup %6935 }
 0x3d0   :  { %984 = vmax.xlane.f32.xlu2 %v983_v53  ;;  %v1081_v54 = vsel %vm770_vm2, %v8091_v52, 0.0  ;;  %v6938_v55 = vpop.eup %6937 }
 0x3d1   :  { %1082 = vadd.xlane.f32.xlu0 %v1081_v54  ;;  %v897_v56 = vsel %vm770_vm2, %v6938_v55, 0.0 }
 0x3d8   :  { %898 = vadd.xlane.f32.xlu2 %v897_v56 }
 0x3e5   :  { %1089 = vrot.lane.b32.xlu0 %v8048_v12, %s7025_s10 }
 0x3f0   :  { %905 = vrot.lane.b32.xlu2 %v8048_v12, %s7026_s11 }
 0x43b   :  { %v805_v59 = vpop.xlane.xlu2 %804 }
 0x43c   :  { %6939 = vrcp.f32 %v805_v59 }
 0x442   :  { %v6940_v60 = vpop.eup %6939 }
 0x443   :  { %v807_v61 = vmul.f32 %v6940_v60, %v805_v59  ;;  %v985_v62 = vpop.xlane.xlu2 %984 }
 0x444   :  { %v986_v63 = vsub.f32 %v982_v32, %v985_v62  ;;  %v1083_v15 = vpop.xlane.xlu0 %1082  ;;  %v937_v32 = vsel %vm842_vm8, %v931_v31, 0 }
 0x445   :  { %v808_v0 = vsub.f32 2.0, %v807_v61  ;;  %946 = vmatpush.bf16.msra.mxu2 %v937_v32 }
 0x446   :  { %v987_v1 = vmul.f32 1.442695, %v986_v63 }
 0x447   :  { %v809_v2 = vmul.f32 %v6940_v60, %v808_v0 }
 0x448   :  { %6941 = vpow2.f32 %v987_v1 }
 0x449   :  { %v810_v3 = vmul.f32 %v6934_v47, %v809_v2  ;;  %1130 = vmatpush.bf16.msrb.mxu2 %v1121_v35  ;;  %v6930_v47 = vld [vmem:[%s8508_s2 + $0x9] ss:$0 sm:$0xff] }
 0x44b   :  { %5213 = vmatmul.msk.f32.vlgmr.msra.gmra.mxu3 %vm770_vm2, %v810_v3  ;;  %v899_v4 = vpop.xlane.xlu2 %898 }
 0x44c   :  { %6943 = vrcp.f32 %v899_v4 }
 0x44e   :  { %v6942_v5 = vpop.eup %6941 }
 0x44f   :  { %v989_v6 = vsel %vm770_vm2, %v6942_v5, 0.0 }
 0x450   :  { %990 = vadd.xlane.f32.xlu1 %v989_v6 }
 0x452   :  { %v6944_v13 = vpop.eup %6943 }
 0x453   :  { %v906_v8 = vpop.permute.xlu2 %905  ;;  %v901_v14 = vmul.f32 %v6944_v13, %v899_v4 }
 0x454   :  { %926 = vmatpush.msra.mxu3 %v906_v8 }
 0x455   :  { %v902_v16 = vsub.f32 2.0, %v901_v14 }
 0x457   :  { %v903_v18 = vmul.f32 %v6944_v13, %v902_v16  ;;  %v1090_v23 = vpop.permute.xlu0 %1089  ;;  %v6931_v16 = vld [vmem:[%s8508_s2 + $0xa] ss:$0 sm:$0xff] }
 0x459   :  { %v904_v21 = vmul.f32 %v6938_v55, %v903_v18  ;;  %v6932_v18 = vld [vmem:[%s8508_s2 + $0xb] ss:$0 sm:$0xff] }
 0x469   :  { %997 = vrot.lane.b32.xlu1 %v8048_v12, %s7027_s13 }
 0x4c3   :  { %v991_v10 = vpop.xlane.xlu1 %990 }
 0x4c4   :  { %6945 = vrcp.f32 %v991_v10 }
 0x4c5   :  { %6947 = vrcp.f32 %v1083_v15 }
 0x4c6   :  { %6949 = vrcp.f32 %v7028_v58 }
 0x4ca   :  { %v6946_v17 = vpop.eup %6945 }
 0x4cb   :  { %v993_v19 = vmul.f32 %v6946_v17, %v991_v10  ;;  %v6948_v12 = vpop.eup %6947 }
 0x4cc   :  { %v1085_v24 = vmul.f32 %v6948_v12, %v1083_v15  ;;  %v6950_v59 = vpop.eup %6949 }
 0x4cd   :  { %v994_v22 = vsub.f32 2.0, %v993_v19  ;;  %v1144_v60 = vmul.f32 32.0, %v6950_v59  ;;  %vm1148_vm9 = vweird.f32 %v6950_v59 }
 0x4ce   :  { %v834_v9 = vpop.f32.mrf.mxu3  ;;  %v1086_v27 = vsub.f32 2.0, %v1085_v24 }
 0x4cf   :  { %v838_v11 = vpack.c.bf16 %v834_v9, %v834_v9  ;;  %v995_v25 = vmul.f32 %v6946_v17, %v994_v22  ;;  %v1145_v61 = vsub.f32 1.0, %v1144_v60 }
 0x4d0   :  { %v1087_v29 = vmul.f32 %v6948_v12, %v1086_v27 }
 0x4d1   :  { %5214 = vmatmul.msk.bf16.vlgmr.msrb.gmra.mxu3 %vm770_vm2, %v838_v11  ;;  %v996_v28 = vmul.f32 %v6942_v5, %v995_v25  ;;  %v1146_v62 = vmul.f32 %v6950_v59, %v1145_v61 }
 0x4d2   :  { %v1088_v30 = vmul.f32 %v8091_v52, %v1087_v29 }
 0x4d3   :  { %v1147_v63 = vadd.f32 %v6950_v59, %v1146_v62 }
 0x4d5   :  { %v8134_v0 = vsel %vm1148_vm9, %v6950_v59, %v1147_v63 }
 0x4db   :  { %v998_v20 = vpop.permute.xlu1 %997 }
 0x4dc   :  { %1018 = vmatpush.msrb.mxu3 %v998_v20 }
 0x4e1   :  { %5217 = vmatmul.msk.f32.vlgmr.msra.gmra.mxu3 %vm770_vm2, %v904_v21 }
 0x4e2   :  { %1110 = vmatpush.msra.mxu3 %v1090_v23 }
 0x4e9   :  { %5221 = vmatmul.msk.f32.vlgmr.msrb.gmra.mxu3 %vm770_vm2, %v996_v28 }
 0x4f1   :  { %5225 = vmatmul.msk.f32.vlgmr.msra.gmra.mxu3 %vm770_vm2, %v1088_v30 }
 0x554   :  { %v855_v37 = vpop.f32.mrf.mxu3 }
 0x555   :  { %v860_v49 = vadd.f32 %v6930_v47, %v855_v37 }
 0x55c   :  { %v857_v38 = vpop.f32.mrf.mxu3 }
 0x564   :  { %v928_v39 = vpop.f32.mrf.mxu3 }
 0x565   :  { %v932_v40 = vpack.c.bf16 %v928_v39, %v928_v39 }
 0x567   :  { %5218 = vmatmul.msk.bf16.vlgmr.msra.gmra.mxu2 %vm770_vm2, %v932_v40 }
 0x56c   :  { %v1020_v41 = vpop.f32.mrf.mxu3 }
 0x56d   :  { %v1024_v42 = vpack.c.bf16 %v1020_v41, %v1020_v41 }
 0x56f   :  { %5222 = vmatmul.msk.bf16.vlgmr.msrb.gmra.mxu0 %vm770_vm2, %v1024_v42 }
 0x574   :  { %v1112_v43 = vpop.f32.mrf.mxu3 }
 0x575   :  { %v1116_v44 = vpack.c.bf16 %v1112_v43, %v1112_v43 }
 0x577   :  { %5226 = vmatmul.msk.bf16.vlgmr.msrb.gmra.mxu2 %vm770_vm2, %v1116_v44 }
 0x5ea   :  { %v948_v45 = vpop.f32.mrf.mxu2 }
 0x5eb   :  { %v952_v51 = vadd.f32 %v948_v45, %v860_v49 }
 0x5ec   :  { %v1040_v46 = vpop.f32.mrf.mxu0 }
 0x5ed   :  { %v1044_v52 = vadd.f32 %v1040_v46, %v952_v51 }
 0x5f2   :  { %v950_v48 = vpop.f32.mrf.mxu2 }
 0x5f4   :  { %v1042_v50 = vpop.f32.mrf.mxu0 }
 0x5fa   :  { %v1132_v53 = vpop.f32.mrf.mxu2 }
 0x5fb   :  { %v1136_v54 = vadd.f32 %v1132_v53, %v1044_v52 }
 0x5fd   :  { %v1137_v55 = vadd.f32 %v1136_v54, %v8040_v7 }
 0x5ff   :  { %v1140_v56 = vsel %vm749_vm1, %v1137_v55, 0.0 }
 0x600   :  { %1141 = vadd.xlane.f32.xlu2 %v1140_v56 }
 0x602   :  { %v1134_v57 = vpop.f32.mrf.mxu2 }
 0x673   :  { %v1142_v1 = vpop.xlane.xlu2 %1141 }
 0x674   :  { %v1150_v2 = vmul.f32 %v8134_v0, %v1142_v1 }
 0x676   :  { %v1151_v3 = vsub.f32 %v1137_v55, %v1150_v2 }
 0x678   :  { %v1152_v4 = vmul.f32 %v1151_v3, %v1151_v3 }
 0x67a   :  { %v1153_v7 = vsel %vm749_vm1, %v1152_v4, 0.0 }
 0x67b   :  { %1154 = vadd.xlane.f32.xlu1 %v1153_v7 }
 0x6ee   :  { %v1155_v5 = vpop.xlane.xlu1 %1154 }
 0x6ef   :  { %v1156_v6 = vmul.f32 %v1155_v5, %v8134_v0 }
 0x6f1   :  { %v1157_v8 = vadd.f32 1e-05, %v1156_v6 }
 0x6f3   :  { %6951 = vrsqrt.f32 %v1157_v8  ;;  %vm1164_vm11 = vweird.f32 %v1157_v8 }
 0x6f9   :  { %v6952_v9 = vpop.eup %6951 }
 0x6fa   :  { %v1159_v10 = vmul.f32 %v6952_v9, %v1157_v8  ;;  %vm1165_vm10 = vweird.f32 %v6952_v9 }
 0x6fb   :  { %vm1166_vm12 = vmor %vm1164_vm11, %vm1165_vm10 }
 0x6fc   :  { %v1160_v11 = vmul.f32 %v6952_v9, %v1159_v10 }
 0x6fe   :  { %v1161_v13 = vmul.f32 0.5, %v1160_v11 }
 0x700   :  { %v1162_v14 = vsub.f32 1.5, %v1161_v13 }
 0x702   :  { %v1163_v15 = vmul.f32 %v6952_v9, %v1162_v14 }
 0x704   :  { %v1167_v17 = vsel %vm1166_vm12, %v6952_v9, %v1163_v15 }
 0x705   :  { %v1168_v19 = vmul.f32 %v1167_v17, %v1151_v3 }
 0x707   :  { %v1170_v20 = vmul.f32 %v6931_v16, %v1168_v19 }
 0x709   :  { %v8145_v21 = vadd.f32 %v6932_v18, %v1170_v20 }
 0x70a   :  { %7010 = dma.done.wait [#allocation4], 8192 }
 0x70b   :  { %7011 = vsyncadd [#allocation4], 4294959104  ;;  %v5293_v22 = vld [vmem:[#allocation2 + $0x80] sm:$0xf]  ;;  %v6605_v23 = vld [vmem:[#allocation2 + $0x84] sm:$0xf]  ;;  %v8149_v48 = vpack.c.bf16 %v8145_v21, %v8145_v21 }
 0x70c   :  { %v6613_v12 = vld [vmem:[#allocation2 + $0xbc] sm:$0xf0]  ;;  %v5295_v25 = vld [vmem:[#allocation2 + $0xc0] sm:$0xf0]  ;;  %v5301_v27 = vld [vmem:[#allocation2 + $0x88] sm:$0xf] }
 0x70d   :  { %v5294_v24 = vor.u32 %v6613_v12, %v5293_v22  ;;  %v6614_v28 = vld [vmem:[#allocation2 + $0xc4] sm:$0xf0]  ;;  %v5298_v29 = vor.u32 %v6605_v23, %v5295_v25  ;;  %v6606_v31 = vld [vmem:[#allocation2 + $0x8c] sm:$0xf]  ;;  %v5229_v33 = vld [vmem:[#allocation2] sm:$0xf] }
 0x70e   :  { %v5302_v30 = vor.u32 %v6614_v28, %v5301_v27  ;;  %v5303_v32 = vld [vmem:[#allocation2 + $0xc8] sm:$0xf0]  ;;  %v6597_v35 = vld [vmem:[#allocation2 + $0x3c] sm:$0xf0]  ;;  %v6589_v36 = vld [vmem:[#allocation2 + $0x4] sm:$0xf] }
 0x70f   :  { %1416 = vmatpush.bf16.msrb.mxu1 %v5294_v24  ;;  %v5306_v34 = vor.u32 %v6606_v31, %v5303_v32  ;;  %v5231_v37 = vld [vmem:[#allocation2 + $0x40] sm:$0xf0]  ;;  %1429 = vmatpush.bf16.msrb.mxu3 %v5298_v29  ;;  %v5230_v38 = vor.u32 %v6597_v35, %v5229_v33  ;;  %v5237_v40 = vld [vmem:[#allocation2 + $0x8] sm:$0xf]  ;;  %v6590_v42 = vld [vmem:[#allocation2 + $0xc] sm:$0xf] }
 0x710   :  { %1442 = vmatpush.bf16.msra.mxu0 %v5302_v30  ;;  %v5234_v39 = vor.u32 %v6589_v36, %v5231_v37  ;;  %v6598_v41 = vld [vmem:[#allocation2 + $0x44] sm:$0xf0]  ;;  %v5239_v44 = vld [vmem:[#allocation2 + $0x48] sm:$0xf0]  ;;  %v6607_v45 = vld [vmem:[#allocation2 + $0x94] sm:$0xf] }
 0x711   :  { %1455 = vmatpush.bf16.msra.mxu2 %v5306_v34  ;;  %v5238_v43 = vor.u32 %v6598_v41, %v5237_v40  ;;  %v5311_v46 = vld [vmem:[#allocation2 + $0xd0] sm:$0xf0]  ;;  %v5242_v47 = vor.u32 %v6590_v42, %v5239_v44  ;;  %v6608_v50 = vld [vmem:[#allocation2 + $0x9c] sm:$0xf]  ;;  %v5309_v52 = vld [vmem:[#allocation2 + $0x90] sm:$0xf] }
 0x712   :  { %v5314_v49 = vor.u32 %v6607_v45, %v5311_v46  ;;  %v5319_v51 = vld [vmem:[#allocation2 + $0xd8] sm:$0xf0]  ;;  %v6615_v54 = vld [vmem:[#allocation2 + $0xcc] sm:$0xf0]  ;;  %v5317_v55 = vld [vmem:[#allocation2 + $0x98] sm:$0xf] }
 0x713   :  { %1417 = vmatpush.bf16.msrb.mxu1 %v5230_v38  ;;  %v5322_v53 = vor.u32 %v6608_v50, %v5319_v51  ;;  %v6616_v56 = vld [vmem:[#allocation2 + $0xd4] sm:$0xf0]  ;;  %1430 = vmatpush.bf16.msrb.mxu3 %v5234_v39  ;;  %v5310_v57 = vor.u32 %v6615_v54, %v5309_v52  ;;  %v6591_v58 = vld [vmem:[#allocation2 + $0x14] sm:$0xf]  ;;  %v6592_v60 = vld [vmem:[#allocation2 + $0x1c] sm:$0xf] }
 0x714   :  { %1443 = vmatpush.bf16.msra.mxu0 %v5238_v43  ;;  %v5247_v59 = vld [vmem:[#allocation2 + $0x50] sm:$0xf0]  ;;  %v5318_v61 = vor.u32 %v6616_v56, %v5317_v55  ;;  %v5255_v63 = vld [vmem:[#allocation2 + $0x58] sm:$0xf0]  ;;  %v5245_v1 = vld [vmem:[#allocation2 + $0x10] sm:$0xf] }
 0x715   :  { %1456 = vmatpush.bf16.msra.mxu2 %v5242_v47  ;;  %v5250_v62 = vor.u32 %v6591_v58, %v5247_v59  ;;  %v6599_v2 = vld [vmem:[#allocation2 + $0x4c] sm:$0xf0]  ;;  %v5258_v3 = vor.u32 %v6592_v60, %v5255_v63  ;;  %v5253_v4 = vld [vmem:[#allocation2 + $0x18] sm:$0xf]  ;;  %v6609_v5 = vld [vmem:[#allocation2 + $0xa4] sm:$0xf] }
 0x716   :  { %5355 = vmatmul.msk.bf16.vlgmr.msrb.gmra.mxu1 %vm749_vm1, %v8149_v48  ;;  %v6600_v7 = vld [vmem:[#allocation2 + $0x54] sm:$0xf0]  ;;  %5356 = vmatmul.msk.bf16.vlgmr.msrb.gmra.mxu3 %vm749_vm1, %v8149_v48  ;;  %v5327_v6 = vld [vmem:[#allocation2 + $0xe0] sm:$0xf0]  ;;  %v6610_v8 = vld [vmem:[#allocation2 + $0xac] sm:$0xf]  ;;  %v5246_v10 = vor.u32 %v6599_v2, %v5245_v1 }
 0x717   :  { %1481 = vmatpush.bf16.msra.mxu3 %v5314_v49  ;;  %5357 = vmatmul.msk.bf16.vlgmr.msra.gmra.mxu0 %vm749_vm1, %v8149_v48  ;;  %v5335_v9 = vld [vmem:[#allocation2 + $0xe8] sm:$0xf0]  ;;  %v5330_v11 = vor.u32 %v6609_v5, %v5327_v6  ;;  %v5325_v14 = vld [vmem:[#allocation2 + $0xa0] sm:$0xf]  ;;  %v5333_v16 = vld [vmem:[#allocation2 + $0xa8] sm:$0xf]  ;;  %v5254_v17 = vor.u32 %v6600_v7, %v5253_v4 }
 0x718   :  { %5358 = vmatmul.msk.bf16.vlgmr.msra.gmra.mxu2 %vm749_vm1, %v8149_v48  ;;  %1468 = vmatpush.bf16.msra.mxu1 %v5310_v57  ;;  %v5338_v13 = vor.u32 %v6610_v8, %v5335_v9  ;;  %v6617_v15 = vld [vmem:[#allocation2 + $0xdc] sm:$0xf0]  ;;  %v6618_v19 = vld [vmem:[#allocation2 + $0xe4] sm:$0xf0]  ;;  %v6593_v20 = vld [vmem:[#allocation2 + $0x24] sm:$0xf] }
 0x719   :  { %1507 = vmatpush.bf16.msrb.mxu2 %v5322_v53  ;;  %1494 = vmatpush.bf16.msrb.mxu0 %v5318_v61  ;;  %v5326_v18 = vor.u32 %v6617_v15, %v5325_v14  ;;  %v5263_v22 = vld [vmem:[#allocation2 + $0x60] sm:$0xf0]  ;;  %v5334_v12 = vor.u32 %v6618_v19, %v5333_v16  ;;  %v6594_v24 = vld [vmem:[#allocation2 + $0x2c] sm:$0xf]  ;;  %v5261_v27 = vld [vmem:[#allocation2 + $0x20] sm:$0xf] }
 0x71a   :  { %v5266_v23 = vor.u32 %v6593_v20, %v5263_v22  ;;  %v5271_v25 = vld [vmem:[#allocation2 + $0x68] sm:$0xf0]  ;;  %v6601_v29 = vld [vmem:[#allocation2 + $0x5c] sm:$0xf0]  ;;  %v5269_v30 = vld [vmem:[#allocation2 + $0x28] sm:$0xf] }
 0x71b   :  { %1482 = vmatpush.bf16.msra.mxu3 %v5250_v62  ;;  %v5274_v28 = vor.u32 %v6594_v24, %v5271_v25  ;;  %v6602_v31 = vld [vmem:[#allocation2 + $0x64] sm:$0xf0]  ;;  %v5262_v32 = vor.u32 %v6601_v29, %v5261_v27  ;;  %v6611_v34 = vld [vmem:[#allocation2 + $0xb4] sm:$0xf]  ;;  %v6612_v36 = vld [vmem:[#allocation2 + $0xbc] sm:$0xf] }
 0x71c   :  { %1469 = vmatpush.bf16.msra.mxu1 %v5246_v10  ;;  %v5270_v33 = vor.u32 %v6602_v31, %v5269_v30  ;;  %v5343_v35 = vld [vmem:[#allocation2 + $0xf0] sm:$0xf0]  ;;  %v5351_v37 = vld [vmem:[#allocation2 + $0xf8] sm:$0xf0]  ;;  %v5341_v38 = vld [vmem:[#allocation2 + $0xb0] sm:$0xf] }
 0x71d   :  { %1508 = vmatpush.bf16.msrb.mxu2 %v5258_v3  ;;  %1495 = vmatpush.bf16.msrb.mxu0 %v5254_v17  ;;  %v6619_v39 = vld [vmem:[#allocation2 + $0xec] sm:$0xf0]  ;;  %v5349_v40 = vld [vmem:[#allocation2 + $0xb8] sm:$0xf]  ;;  %v5346_v42 = vor.u32 %v6611_v34, %v5343_v35  ;;  %v5354_v43 = vor.u32 %v6612_v36, %v5351_v37  ;;  %v6595_v45 = vld [vmem:[#allocation2 + $0x34] sm:$0xf] }
 0x71e   :  { %v6620_v41 = vld [vmem:[#allocation2 + $0xf4] sm:$0xf0]  ;;  %v5342_v44 = vor.u32 %v6619_v39, %v5341_v38  ;;  %v5279_v46 = vld [vmem:[#allocation2 + $0x70] sm:$0xf0]  ;;  %v6596_v47 = vld [vmem:[#allocation2 + $0x3c] sm:$0xf] }
 0x71f   :  { %1533 = vmatpush.bf16.msrb.mxu3 %v5330_v11  ;;  %v5350_v49 = vor.u32 %v6620_v41, %v5349_v40  ;;  %v5287_v50 = vld [vmem:[#allocation2 + $0x78] sm:$0xf0]  ;;  %v5277_v51 = vld [vmem:[#allocation2 + $0x30] sm:$0xf]  ;;  %v5285_v53 = vld [vmem:[#allocation2 + $0x38] sm:$0xf]  ;;  %v5282_v55 = vor.u32 %v6595_v45, %v5279_v46 }
 0x720   :  { %1520 = vmatpush.bf16.msrb.mxu1 %v5326_v18  ;;  %v6603_v52 = vld [vmem:[#allocation2 + $0x6c] sm:$0xf0]  ;;  %v6604_v54 = vld [vmem:[#allocation2 + $0x74] sm:$0xf0]  ;;  %v5290_v56 = vor.u32 %v6596_v47, %v5287_v50  ;;  %v1211_v59 = vld [vmem:[%s8509_s3] sm:$0xff] }
 0x721   :  { %1559 = vmatpush.bf16.msra.mxu2 %v5338_v13  ;;  %1546 = vmatpush.bf16.msra.mxu0 %v5334_v12  ;;  %v5278_v57 = vor.u32 %v6603_v52, %v5277_v51  ;;  %v5286_v58 = vor.u32 %v6604_v54, %v5285_v53  ;;  %v1215_v60 = vperm.slane %v1211_v59, 0  ;;  %v1217_v61 = vperm.slane %v1211_v59, 2  ;;  %v1212_v35 = vld [vmem:[%s8509_s3 + $0x8] sm:$0xff] }
 0x722   :  { %v1216_v7 = vperm.slane %v1211_v59, 1  ;;  %v1218_v5 = vperm.slane %v1211_v59, 3  ;;  %v1219_v15 = vperm.slane %v1211_v59, 4  ;;  %v1221_v16 = vperm.slane %v1211_v59, 6 }
 0x723   :  { %1534 = vmatpush.bf16.msrb.mxu3 %v5266_v23  ;;  %v1220_v25 = vperm.slane %v1211_v59, 5  ;;  %v1222_v27 = vperm.slane %v1211_v59, 7  ;;  %v1223_v37 = vperm.slane %v1212_v35, 0  ;;  %v1225_v38 = vperm.slane %v1212_v35, 2 }
 0x724   :  { %1521 = vmatpush.bf16.msrb.mxu1 %v5262_v32  ;;  %v1224_v47 = vperm.slane %v1212_v35, 1  ;;  %v1229_v59 = vperm.slane %v1212_v35, 6 }
 0x725   :  { %1560 = vmatpush.bf16.msra.mxu2 %v5274_v28  ;;  %1547 = vmatpush.bf16.msra.mxu0 %v5270_v33 }
 0x726   :  { %5359 = vmatmul.msk.bf16.vlgmr.msra.gmra.mxu1 %vm749_vm1, %v8149_v48  ;;  %5360 = vmatmul.msk.bf16.vlgmr.msra.gmra.mxu3 %vm749_vm1, %v8149_v48 }
 0x727   :  { %5361 = vmatmul.msk.bf16.vlgmr.msrb.gmra.mxu0 %vm749_vm1, %v8149_v48  ;;  %1585 = vmatpush.bf16.msra.mxu3 %v5346_v42 }
 0x728   :  { %5362 = vmatmul.msk.bf16.vlgmr.msrb.gmra.mxu2 %vm749_vm1, %v8149_v48  ;;  %1572 = vmatpush.bf16.msra.mxu1 %v5342_v44 }
 0x729   :  { %1611 = vmatpush.bf16.msrb.mxu2 %v5354_v43  ;;  %1598 = vmatpush.bf16.msrb.mxu0 %v5350_v49  ;;  %v1226_v49 = vperm.slane %v1212_v35, 3 }
 0x72b   :  { %1586 = vmatpush.bf16.msra.mxu3 %v5282_v55 }
 0x72c   :  { %1573 = vmatpush.bf16.msra.mxu1 %v5278_v57 }
 0x72d   :  { %1612 = vmatpush.bf16.msrb.mxu2 %v5290_v56  ;;  %1599 = vmatpush.bf16.msrb.mxu0 %v5286_v58  ;;  %v1227_v58 = vperm.slane %v1212_v35, 4 }
 0x736   :  { %5363 = vmatmul.msk.bf16.vlgmr.msrb.gmra.mxu1 %vm749_vm1, %v8149_v48  ;;  %5364 = vmatmul.msk.bf16.vlgmr.msrb.gmra.mxu3 %vm749_vm1, %v8149_v48 }
 0x737   :  { %5365 = vmatmul.msk.bf16.vlgmr.msra.gmra.mxu0 %vm749_vm1, %v8149_v48 }
 0x738   :  { %5366 = vmatmul.msk.bf16.vlgmr.msra.gmra.mxu2 %vm749_vm1, %v8149_v48 }
 0x746   :  { %5367 = vmatmul.msk.bf16.vlgmr.msra.gmra.mxu1 %vm749_vm1, %v8149_v48  ;;  %5368 = vmatmul.msk.bf16.vlgmr.msra.gmra.mxu3 %vm749_vm1, %v8149_v48 }
 0x747   :  { %5369 = vmatmul.msk.bf16.vlgmr.msrb.gmra.mxu0 %vm749_vm1, %v8149_v48 }
 0x748   :  { %5370 = vmatmul.msk.bf16.vlgmr.msrb.gmra.mxu2 %vm749_vm1, %v8149_v48 }
 0x793   :  { %v1419_v62 = vpop.f32.mrf.mxu1 }
 0x794   :  { %v8186_v63 = vadd.f32 %v1419_v62, %v1215_v60  ;;  %v1445_v1 = vpop.f32.mrf.mxu0 }
 0x795   :  { %v8188_v2 = vadd.f32 %v1445_v1, %v1217_v61 }
 0x796   :  { %v1618_v3 = vmax.f32 %v8186_v63, 0.0 }
 0x797   :  { %v1620_v4 = vmax.f32 %v8188_v2, 0.0 }
 0x799   :  { %v1432_v6 = vpop.f32.mrf.mxu3 }
 0x79a   :  { %v8192_v48 = vadd.f32 %v1432_v6, %v1216_v7 }
 0x79b   :  { %v1458_v8 = vpop.f32.mrf.mxu2  ;;  %v1421_v9 = vpop.f32.mrf.mxu1 }
 0x79c   :  { %v8194_v10 = vadd.f32 %v1458_v8, %v1218_v5  ;;  %v1447_v11 = vpop.f32.mrf.mxu0  ;;  %v1619_v13 = vmax.f32 %v8192_v48, 0.0  ;;  %v1228_v9 = vperm.slane %v1212_v35, 5 }
 0x79d   :  { %v1230_v11 = vperm.slane %v1212_v35, 7 }
 0x79e   :  { %v1621_v14 = vmax.f32 %v8194_v10, 0.0 }
 0x7a1   :  { %v1434_v17 = vpop.f32.mrf.mxu3 }
 0x7a3   :  { %v1460_v18 = vpop.f32.mrf.mxu2  ;;  %v1471_v19 = vpop.f32.mrf.mxu1 }
 0x7a4   :  { %v8198_v20 = vadd.f32 %v1471_v19, %v1219_v15  ;;  %v1497_v22 = vpop.f32.mrf.mxu0 }
 0x7a5   :  { %v8200_v12 = vadd.f32 %v1497_v22, %v1221_v16 }
 0x7a6   :  { %v1622_v23 = vmax.f32 %v8198_v20, 0.0 }
 0x7a7   :  { %v1624_v24 = vmax.f32 %v8200_v12, 0.0 }
 0x7a9   :  { %v1484_v28 = vpop.f32.mrf.mxu3 }
 0x7aa   :  { %v8204_v29 = vadd.f32 %v1484_v28, %v1220_v25 }
 0x7ab   :  { %v1510_v30 = vpop.f32.mrf.mxu2  ;;  %v1473_v31 = vpop.f32.mrf.mxu1 }
 0x7ac   :  { %v8206_v32 = vadd.f32 %v1510_v30, %v1222_v27  ;;  %v1499_v33 = vpop.f32.mrf.mxu0  ;;  %v1623_v34 = vmax.f32 %v8204_v29, 0.0 }
 0x7ae   :  { %v1625_v36 = vmax.f32 %v8206_v32, 0.0 }
 0x7b1   :  { %v1486_v39 = vpop.f32.mrf.mxu3 }
 0x7b3   :  { %v1512_v40 = vpop.f32.mrf.mxu2  ;;  %v1523_v41 = vpop.f32.mrf.mxu1 }
 0x7b4   :  { %v8213_v42 = vadd.f32 %v1523_v41, %v1223_v37  ;;  %v1549_v43 = vpop.f32.mrf.mxu0 }
 0x7b5   :  { %v8215_v44 = vadd.f32 %v1549_v43, %v1225_v38 }
 0x7b6   :  { %v1626_v45 = vmax.f32 %v8213_v42, 0.0 }
 0x7b7   :  { %v1628_v46 = vmax.f32 %v8215_v44, 0.0 }
 0x7b9   :  { %v1536_v50 = vpop.f32.mrf.mxu3 }
 0x7ba   :  { %v8219_v51 = vadd.f32 %v1536_v50, %v1224_v47 }
 0x7bb   :  { %v1562_v52 = vpop.f32.mrf.mxu2  ;;  %v1525_v53 = vpop.f32.mrf.mxu1 }
 0x7bc   :  { %v8221_v54 = vadd.f32 %v1562_v52, %v1226_v49  ;;  %v1551_v55 = vpop.f32.mrf.mxu0  ;;  %v1627_v56 = vmax.f32 %v8219_v51, 0.0 }
 0x7be   :  { %v1629_v57 = vmax.f32 %v8221_v54, 0.0 }
 0x7c1   :  { %v1538_v60 = vpop.f32.mrf.mxu3 }
 0x7c3   :  { %v1564_v61 = vpop.f32.mrf.mxu2  ;;  %v1575_v62 = vpop.f32.mrf.mxu1 }
 0x7c4   :  { %v8225_v1 = vadd.f32 %v1575_v62, %v1227_v58  ;;  %v1601_v7 = vpop.f32.mrf.mxu0 }
 0x7c5   :  { %v8227_v5 = vadd.f32 %v1601_v7, %v1229_v59 }
 0x7c6   :  { %v1630_v6 = vmax.f32 %v8225_v1, 0.0 }
 0x7c7   :  { %v1632_v8 = vmax.f32 %v8227_v5, 0.0 }
 0x7c9   :  { %v1588_v15 = vpop.f32.mrf.mxu3 }
 0x7ca   :  { %v8231_v16 = vadd.f32 %v1588_v15, %v1228_v9 }
 0x7cb   :  { %v1614_v17 = vpop.f32.mrf.mxu2  ;;  %v1577_v18 = vpop.f32.mrf.mxu1 }
 0x7cc   :  { %v8233_v19 = vadd.f32 %v1614_v17, %v1230_v11  ;;  %v1603_v22 = vpop.f32.mrf.mxu0  ;;  %v1631_v25 = vmax.f32 %v8231_v16, 0.0 }
 0x7ce   :  { %v1633_v27 = vmax.f32 %v8233_v19, 0.0 }
 0x7d1   :  { %v1590_v28 = vpop.f32.mrf.mxu3 }
 0x7d3   :  { %v1616_v30 = vpop.f32.mrf.mxu2 }
 0x7d4   :  { %7012 = dma.done.wait [#allocation4 + $0x1], 32768 }
 0x7d5   :  { %7013 = vsyncadd [#allocation4 + $0x1], 4294934528  ;;  %v6628_v31 = vld [vmem:[#allocation3 + $0x448] sm:$0xff]  ;;  %v6636_v33 = vld [vmem:[#allocation3 + $0x720] sm:$0xff] }
 0x7d6   :  { %v6644_v37 = vld [vmem:[#allocation3 + $0x568] sm:$0xff]  ;;  %v6652_v35 = vld [vmem:[#allocation3 + $0x280] sm:$0xff]  ;;  %2680 = vmatpush.bf16.msrb.mxu1 %v6628_v31  ;;  %2693 = vmatpush.bf16.msrb.mxu3 %v6636_v33  ;;  %v6627_v38 = vld [vmem:[#allocation3 + $0x330] sm:$0xff] }
 0x7d7   :  { %v6635_v39 = vld [vmem:[#allocation3 + $0x508] sm:$0xff]  ;;  %2706 = vmatpush.bf16.msra.mxu0 %v6644_v37  ;;  %2719 = vmatpush.bf16.msra.mxu2 %v6652_v35  ;;  %v6643_v40 = vld [vmem:[#allocation3 + $0x5b8] sm:$0xff]  ;;  %v6651_v41 = vld [vmem:[#allocation3 + $0x1c0] sm:$0xff] }
 0x7d8   :  { %v6626_v43 = vld [vmem:[#allocation3 + $0x768] sm:$0xff]  ;;  %v6634_v47 = vld [vmem:[#allocation3 + $0x550] sm:$0xff]  ;;  %v6650_v50 = vld [vmem:[#allocation3 + $0xc0] sm:$0xff] }
 0x7d9   :  { %v6642_v49 = vld [vmem:[#allocation3 + $0x5a8] sm:$0xff]  ;;  %v6625_v52 = vld [vmem:[#allocation3 + $0x450] sm:$0xff]  ;;  %v6633_v53 = vld [vmem:[#allocation3 + $0x320] sm:$0xff] }
 0x7da   :  { %2681 = vmatpush.bf16.msrb.mxu1 %v6627_v38  ;;  %2694 = vmatpush.bf16.msrb.mxu3 %v6635_v39  ;;  %v6641_v55 = vld [vmem:[#allocation3 + $0x2e0] sm:$0xff]  ;;  %v6649_v58 = vld [vmem:[#allocation3 + $0x138] sm:$0xff]  ;;  %v6648_v62 = vld [vmem:[#allocation3 + $0x368] sm:$0xff] }
 0x7db   :  { %2707 = vmatpush.bf16.msra.mxu0 %v6643_v40  ;;  %2720 = vmatpush.bf16.msra.mxu2 %v6651_v41  ;;  %v6624_v59 = vld [vmem:[#allocation3 + $0x18] sm:$0xff]  ;;  %v6640_v61 = vld [vmem:[#allocation3 + $0x740] sm:$0xff]  ;;  %v6647_v15 = vld [vmem:[#allocation3 + $0x690] sm:$0xff]  ;;  %v1639_v41 = vpack.c.bf16 %v1619_v13, %v1619_v13 }
 0x7dc   :  { %v6632_v60 = vld [vmem:[#allocation3 + $0x498] sm:$0xff]  ;;  %v6622_v17 = vld [vmem:[#allocation3 + $0x3b0] sm:$0xff]  ;;  %v6638_v22 = vld [vmem:[#allocation3 + $0x788] sm:$0xff] }
 0x7dd   :  { %v6623_v7 = vld [vmem:[#allocation3 + $0x4d8] sm:$0xff]  ;;  %v6630_v18 = vld [vmem:[#allocation3 + $0x110] sm:$0xff]  ;;  %v6629_v31 = vld [vmem:[#allocation3 + $0x380] sm:$0xff] }
 0x7de   :  { %2682 = vmatpush.bf16.msrb.mxu1 %v6626_v43  ;;  %2695 = vmatpush.bf16.msrb.mxu3 %v6634_v47  ;;  %v6631_v9 = vld [vmem:[#allocation3 + $0x518] sm:$0xff]  ;;  %v6621_v30 = vld [vmem:[#allocation3 + $0x2b0] sm:$0xff]  ;;  %v6637_v33 = vld [vmem:[#allocation3 + $0x6e0] sm:$0xff]  ;;  %v1638_v43 = vpack.c.bf16 %v1618_v3, %v1618_v3  ;;  %v1641_v47 = vpack.c.bf16 %v1621_v14, %v1621_v14 }
 0x7df   :  { %2708 = vmatpush.bf16.msra.mxu0 %v6642_v49  ;;  %2721 = vmatpush.bf16.msra.mxu2 %v6650_v50  ;;  %v6639_v11 = vld [vmem:[#allocation3 + $0x338] sm:$0xff]  ;;  %v6645_v37 = vld [vmem:[#allocation3 + $0x3e8] sm:$0xff]  ;;  %v6676_v39 = vld [vmem:[#allocation3 + $0x620] sm:$0xff]  ;;  %v1640_v49 = vpack.c.bf16 %v1620_v4, %v1620_v4 }
 0x7e0   :  { %v6646_v28 = vld [vmem:[#allocation3 + $0x6f8] sm:$0xff]  ;;  %v6684_v40 = vld [vmem:[#allocation3 + $0x390] sm:$0xff]  ;;  %v6667_v48 = vld [vmem:[#allocation3 + $0x5e8] sm:$0xff] }
 0x7e1   :  { %v6660_v35 = vld [vmem:[#allocation3 + $0x7b8] sm:$0xff]  ;;  %v6659_v50 = vld [vmem:[#allocation3 + $0x70] sm:$0xff]  ;;  %v6675_v13 = vld [vmem:[#allocation3 + $0xe0] sm:$0xff] }
 0x7e2   :  { %2683 = vmatpush.bf16.msrb.mxu1 %v6625_v52  ;;  %2696 = vmatpush.bf16.msrb.mxu3 %v6633_v53  ;;  %v6668_v38 = vld [vmem:[#allocation3 + $0x5f8] sm:$0xff]  ;;  %v6683_v63 = vld [vmem:[#allocation3 + $0x50] sm:$0xff]  ;;  %v6658_v3 = vld [vmem:[#allocation3 + $0x4c0] sm:$0xff] }
 0x7e3   :  { %2709 = vmatpush.bf16.msra.mxu0 %v6641_v55  ;;  %2722 = vmatpush.bf16.msra.mxu2 %v6649_v58  ;;  %v6666_v10 = vld [vmem:[#allocation3 + $0x5c0] sm:$0xff]  ;;  %v6657_v14 = vld [vmem:[#allocation3 + $0x618] sm:$0xff]  ;;  %v6665_v52 = vld [vmem:[#allocation3 + $0x6c8] sm:$0xff] }
 0x7e4   :  { %v6674_v2 = vld [vmem:[#allocation3 + $0x420] sm:$0xff]  ;;  %v6673_v53 = vld [vmem:[#allocation3 + $0x348] sm:$0xff]  ;;  %v6681_v55 = vld [vmem:[#allocation3 + $0x38] sm:$0xff] }
 0x7e5   :  { %v6682_v4 = vld [vmem:[#allocation3 + $0x440] sm:$0xff]  ;;  %v6699_v29 = vld [vmem:[#allocation3 + $0x7d8] sm:$0xff]  ;;  %v6715_v20 = vld [vmem:[#allocation3 + $0x1c8] sm:$0xff] }
 0x7e6   :  { %2684 = vmatpush.bf16.msrb.mxu1 %v6624_v59  ;;  %2697 = vmatpush.bf16.msrb.mxu3 %v6632_v60  ;;  %v6656_v58 = vld [vmem:[#allocation3 + $0x3e0] sm:$0xff]  ;;  %v6664_v59 = vld [vmem:[#allocation3 + $0x2e8] sm:$0xff]  ;;  %v6672_v60 = vld [vmem:[#allocation3 + $0x250] sm:$0xff] }
 0x7e7   :  { %2710 = vmatpush.bf16.msra.mxu0 %v6640_v61  ;;  %2723 = vmatpush.bf16.msra.mxu2 %v6648_v62  ;;  %v6680_v61 = vld [vmem:[#allocation3 + $0x310] sm:$0xff]  ;;  %v6655_v62 = vld [vmem:[#allocation3 + $0x558] sm:$0xff]  ;;  %v6722_v54 = vld [vmem:[#allocation3 + $0x540] sm:$0xff] }
 0x7e8   :  { %v6698_v32 = vld [vmem:[#allocation3 + $0x598] sm:$0xff]  ;;  %v6706_v12 = vld [vmem:[#allocation3 + $0x610] sm:$0xff]  ;;  %v6953_v1 = vld [vmem:[%s8508_s2 + $0xe] ss:$0 sm:$0xff] }
 0x7e9   :  { %v6731_v42 = vld [vmem:[#allocation3 + $0x630] sm:$0xff]  ;;  %v6747_v51 = vld [vmem:[#allocation3 + $0x118] sm:$0xff] }
 0x7ea   :  { %2685 = vmatpush.bf16.msrb.mxu1 %v6623_v7  ;;  %2698 = vmatpush.bf16.msrb.mxu3 %v6631_v9  ;;  %v6663_v7 = vld [vmem:[#allocation3 + $0x3f8] sm:$0xff]  ;;  %v6671_v9 = vld [vmem:[#allocation3 + $0x640] sm:$0xff] }
 0x7eb   :  { %2711 = vmatpush.bf16.msra.mxu0 %v6639_v11  ;;  %2724 = vmatpush.bf16.msra.mxu2 %v6647_v15  ;;  %v6679_v11 = vld [vmem:[#allocation3 + $0x4e8] sm:$0xff]  ;;  %v6654_v15 = vld [vmem:[#allocation3 + $0x3c0] sm:$0xff]  ;;  %v6738_v44 = vld [vmem:[#allocation3 + $0x6b8] sm:$0xff] }
 0x7ee   :  { %2686 = vmatpush.bf16.msrb.mxu1 %v6622_v17  ;;  %2699 = vmatpush.bf16.msrb.mxu3 %v6630_v18  ;;  %v6662_v17 = vld [vmem:[#allocation3 + $0x6a8] sm:$0xff]  ;;  %v6670_v18 = vld [vmem:[#allocation3 + $0x520] sm:$0xff] }
 0x7ef   :  { %2712 = vmatpush.bf16.msra.mxu0 %v6638_v22  ;;  %2725 = vmatpush.bf16.msra.mxu2 %v6646_v28  ;;  %v6678_v22 = vld [vmem:[#allocation3 + $0x3a0] sm:$0xff] }
 0x7f0   :  { %v6653_v28 = vld [vmem:[#allocation3 + $0x100] sm:$0xff] }
 0x7f2   :  { %2687 = vmatpush.bf16.msrb.mxu1 %v6621_v30  ;;  %2700 = vmatpush.bf16.msrb.mxu3 %v6629_v31  ;;  %v6661_v30 = vld [vmem:[#allocation3 + $0x400] sm:$0xff]  ;;  %v6669_v31 = vld [vmem:[#allocation3 + $0x770] sm:$0xff] }
 0x7f3   :  { %2713 = vmatpush.bf16.msra.mxu0 %v6637_v33  ;;  %2726 = vmatpush.bf16.msra.mxu2 %v6645_v37  ;;  %v6677_v33 = vld [vmem:[#allocation3 + $0x148] sm:$0xff]  ;;  %v6692_v37 = vld [vmem:[#allocation3 + $0x40] sm:$0xff] }
 0x7f5   :  { %2701 = vmatmul.bf16.vlgmr.msrb.gmra.mxu3 %v1639_v41  ;;  %2688 = vmatmul.bf16.vlgmr.msrb.gmra.mxu1 %v1638_v43  ;;  %v1642_v41 = vpack.c.bf16 %v1622_v23, %v1622_v23  ;;  %v1645_v43 = vpack.c.bf16 %v1625_v36, %v1625_v36  ;;  %v6690_v23 = vld [vmem:[#allocation3 + $0x120] sm:$0xff]  ;;  %v6689_v36 = vld [vmem:[#allocation3 + $0xb8] sm:$0xff] }
 0x7f6   :  { %2732 = vmatpush.bf16.msra.mxu1 %v6660_v35  ;;  %2745 = vmatpush.bf16.msra.mxu3 %v6668_v38  ;;  %v6700_v35 = vld [vmem:[#allocation3 + $0x6d8] sm:$0xff] }
 0x7f7   :  { %2758 = vmatpush.bf16.msrb.mxu0 %v6676_v39  ;;  %2771 = vmatpush.bf16.msrb.mxu2 %v6684_v40  ;;  %v6708_v38 = vld [vmem:[#allocation3 + $0x1d8] sm:$0xff]  ;;  %v6716_v39 = vld [vmem:[#allocation3 + $0x7c0] sm:$0xff]  ;;  %v1643_v40 = vpack.c.bf16 %v1623_v34, %v1623_v34 }
 0x7f8   :  { %2727 = vmatmul.bf16.vlgmr.msra.gmra.mxu2 %v1641_v47  ;;  %2714 = vmatmul.bf16.vlgmr.msra.gmra.mxu0 %v1640_v49  ;;  %v1644_v47 = vpack.c.bf16 %v1624_v24, %v1624_v24  ;;  %v6691_v49 = vld [vmem:[#allocation3 + $0xd0] sm:$0xff]  ;;  %v6707_v34 = vld [vmem:[#allocation3 + $0x218] sm:$0xff]  ;;  %v6714_v24 = vld [vmem:[#allocation3 + $0x2c0] sm:$0xff] }
 0x7fa   :  { %2733 = vmatpush.bf16.msra.mxu1 %v6659_v50  ;;  %2746 = vmatpush.bf16.msra.mxu3 %v6667_v48  ;;  %v6697_v50 = vld [vmem:[#allocation3 + $0x738] sm:$0xff] }
 0x7fb   :  { %2759 = vmatpush.bf16.msrb.mxu0 %v6675_v13  ;;  %2772 = vmatpush.bf16.msrb.mxu2 %v6683_v63  ;;  %v6705_v48 = vld [vmem:[#allocation3 + $0x5d8] sm:$0xff]  ;;  %v6688_v63 = vld [vmem:[#allocation3 + $0x680] sm:$0xff] }
 0x7fc   :  { %v6713_v13 = vld [vmem:[#allocation3 + $0x478] sm:$0xff] }
 0x7fe   :  { %2734 = vmatpush.bf16.msra.mxu1 %v6658_v3  ;;  %2747 = vmatpush.bf16.msra.mxu3 %v6666_v10  ;;  %v6696_v3 = vld [vmem:[#allocation3 + $0x178] sm:$0xff] }
 0x7ff   :  { %2760 = vmatpush.bf16.msrb.mxu0 %v6674_v2  ;;  %2773 = vmatpush.bf16.msrb.mxu2 %v6682_v4  ;;  %v6704_v10 = vld [vmem:[#allocation3 + $0x3b8] sm:$0xff]  ;;  %v6687_v4 = vld [vmem:[#allocation3 + $0x790] sm:$0xff] }
 0x800   :  { %v6712_v2 = vld [vmem:[#allocation3 + $0x278] sm:$0xff] }
 0x802   :  { %2735 = vmatpush.bf16.msra.mxu1 %v6657_v14  ;;  %2748 = vmatpush.bf16.msra.mxu3 %v6665_v52  ;;  %v6695_v14 = vld [vmem:[#allocation3 + $0x758] sm:$0xff] }
 0x803   :  { %2761 = vmatpush.bf16.msrb.mxu0 %v6673_v53  ;;  %2774 = vmatpush.bf16.msrb.mxu2 %v6681_v55  ;;  %v6703_v52 = vld [vmem:[#allocation3 + $0x698] sm:$0xff]  ;;  %v6711_v53 = vld [vmem:[#allocation3 + $0x388] sm:$0xff]  ;;  %v6686_v55 = vld [vmem:[#allocation3 + $0xf0] sm:$0xff] }
 0x806   :  { %2736 = vmatpush.bf16.msra.mxu1 %v6656_v58  ;;  %2749 = vmatpush.bf16.msra.mxu3 %v6664_v59  ;;  %v6694_v58 = vld [vmem:[#allocation3 + $0x2f8] sm:$0xff]  ;;  %v6702_v59 = vld [vmem:[#allocation3 + $0x1a8] sm:$0xff] }
 0x807   :  { %2762 = vmatpush.bf16.msrb.mxu0 %v6672_v60  ;;  %2775 = vmatpush.bf16.msrb.mxu2 %v6680_v61  ;;  %v6710_v60 = vld [vmem:[#allocation3 + $0x1f8] sm:$0xff] }
 0x808   :  { %v6685_v61 = vld [vmem:[#allocation3 + $0x538] sm:$0xff] }
 0x80a   :  { %2737 = vmatpush.bf16.msra.mxu1 %v6655_v62  ;;  %2750 = vmatpush.bf16.msra.mxu3 %v6663_v7  ;;  %v6693_v62 = vld [vmem:[#allocation3 + $0x6f0] sm:$0xff]  ;;  %v6701_v7 = vld [vmem:[#allocation3 + $0x398] sm:$0xff] }
 0x80b   :  { %2763 = vmatpush.bf16.msrb.mxu0 %v6671_v9  ;;  %2776 = vmatpush.bf16.msrb.mxu2 %v6679_v11  ;;  %v6709_v9 = vld [vmem:[#allocation3 + $0x628] sm:$0xff] }
 0x80c   :  { %v6724_v11 = vld [vmem:[#allocation3 + $0x648] sm:$0xff] }
 0x80e   :  { %2738 = vmatpush.bf16.msra.mxu1 %v6654_v15  ;;  %2751 = vmatpush.bf16.msra.mxu3 %v6662_v17  ;;  %v6732_v15 = vld [vmem:[#allocation3 + $0x158] sm:$0xff]  ;;  %v6740_v17 = vld [vmem:[#allocation3 + $0x5b0] sm:$0xff] }
 0x80f   :  { %2764 = vmatpush.bf16.msrb.mxu0 %v6670_v18  ;;  %2777 = vmatpush.bf16.msrb.mxu2 %v6678_v22  ;;  %v6748_v18 = vld [vmem:[#allocation3 + $0x268] sm:$0xff]  ;;  %v1646_v22 = vpack.c.bf16 %v1626_v45, %v1626_v45  ;;  %v6739_v45 = vld [vmem:[#allocation3 + $0x140] sm:$0xff] }
 0x812   :  { %2739 = vmatpush.bf16.msra.mxu1 %v6653_v28  ;;  %2752 = vmatpush.bf16.msra.mxu3 %v6661_v30  ;;  %v1647_v28 = vpack.c.bf16 %v1627_v56, %v1627_v56  ;;  %v1649_v30 = vpack.c.bf16 %v1629_v57, %v1629_v57  ;;  %v6730_v56 = vld [vmem:[#allocation3 + $0xb0] sm:$0xff] }
 0x813   :  { %2765 = vmatpush.bf16.msrb.mxu0 %v6669_v31  ;;  %2778 = vmatpush.bf16.msrb.mxu2 %v6677_v33  ;;  %v1648_v31 = vpack.c.bf16 %v1628_v46, %v1628_v46  ;;  %v6723_v33 = vld [vmem:[#allocation3 + $0x588] sm:$0xff]  ;;  %v6746_v46 = vld [vmem:[#allocation3 + $0x240] sm:$0xff]  ;;  %v6721_v57 = vld [vmem:[#allocation3 + $0x90] sm:$0xff] }
 0x815   :  { %2753 = vmatmul.bf16.vlgmr.msra.gmra.mxu3 %v1643_v40  ;;  %2740 = vmatmul.bf16.vlgmr.msra.gmra.mxu1 %v1642_v41  ;;  %v6728_v40 = vld [vmem:[#allocation3 + $0x600] sm:$0xff] }
 0x816   :  { %2784 = vmatpush.bf16.msrb.mxu1 %v6692_v37  ;;  %2797 = vmatpush.bf16.msrb.mxu3 %v6700_v35  ;;  %v6729_v37 = vld [vmem:[#allocation3 + $0x3a8] sm:$0xff]  ;;  %v6737_v35 = vld [vmem:[#allocation3 + $0xd8] sm:$0xff]  ;;  %v6736_v41 = vld [vmem:[#allocation3 + $0x6c0] sm:$0xff] }
 0x817   :  { %2810 = vmatpush.bf16.msra.mxu0 %v6708_v38  ;;  %2823 = vmatpush.bf16.msra.mxu2 %v6716_v39  ;;  %v6745_v38 = vld [vmem:[#allocation3 + $0x670] sm:$0xff]  ;;  %v6720_v39 = vld [vmem:[#allocation3 + $0x318] sm:$0xff] }
 0x818   :  { %2779 = vmatmul.bf16.vlgmr.msrb.gmra.mxu2 %v1645_v43  ;;  %2766 = vmatmul.bf16.vlgmr.msrb.gmra.mxu0 %v1644_v47  ;;  %v6744_v43 = vld [vmem:[#allocation3 + $0x5f0] sm:$0xff] }
 0x819   :  { %v6719_v47 = vld [vmem:[#allocation3 + $0x4b0] sm:$0xff] }
 0x81a   :  { %2785 = vmatpush.bf16.msrb.mxu1 %v6691_v49  ;;  %2798 = vmatpush.bf16.msrb.mxu3 %v6699_v29  ;;  %v6727_v49 = vld [vmem:[#allocation3 + $0x68] sm:$0xff]  ;;  %v6735_v29 = vld [vmem:[#allocation3 + $0x7b0] sm:$0xff] }
 0x81b   :  { %2811 = vmatpush.bf16.msra.mxu0 %v6707_v34  ;;  %2824 = vmatpush.bf16.msra.mxu2 %v6715_v20  ;;  %v6743_v34 = vld [vmem:[#allocation3 + $0x1a0] sm:$0xff]  ;;  %v6718_v20 = vld [vmem:[#allocation3 + $0x7f0] sm:$0xff] }
 0x81e   :  { %2786 = vmatpush.bf16.msrb.mxu1 %v6690_v23  ;;  %2799 = vmatpush.bf16.msrb.mxu3 %v6698_v32  ;;  %v6726_v23 = vld [vmem:[#allocation3 + $0x198] sm:$0xff]  ;;  %v6734_v32 = vld [vmem:[#allocation3 + $0x1e0] sm:$0xff] }
 0x81f   :  { %2812 = vmatpush.bf16.msra.mxu0 %v6706_v12  ;;  %2825 = vmatpush.bf16.msra.mxu2 %v6714_v24  ;;  %v6742_v12 = vld [vmem:[#allocation3 + $0x128] sm:$0xff]  ;;  %v6717_v24 = vld [vmem:[#allocation3 + $0x418] sm:$0xff] }
 0x822   :  { %2787 = vmatpush.bf16.msrb.mxu1 %v6689_v36  ;;  %2800 = vmatpush.bf16.msrb.mxu3 %v6697_v50  ;;  %v6725_v36 = vld [vmem:[#allocation3 + $0x58] sm:$0xff]  ;;  %v6733_v50 = vld [vmem:[#allocation3 + $0x370] sm:$0xff] }
 0x823   :  { %2813 = vmatpush.bf16.msra.mxu0 %v6705_v48  ;;  %2826 = vmatpush.bf16.msra.mxu2 %v6713_v13  ;;  %v6741_v48 = vld [vmem:[#allocation3 + $0x30] sm:$0xff]  ;;  %v1650_v13 = vpack.c.bf16 %v1630_v6, %v1630_v6 }
 0x826   :  { %2788 = vmatpush.bf16.msrb.mxu1 %v6688_v63  ;;  %2801 = vmatpush.bf16.msrb.mxu3 %v6696_v3  ;;  %v1651_v63 = vpack.c.bf16 %v1631_v25, %v1631_v25  ;;  %v1652_v3 = vpack.c.bf16 %v1632_v8, %v1632_v8 }
 0x827   :  { %2814 = vmatpush.bf16.msra.mxu0 %v6704_v10  ;;  %2827 = vmatpush.bf16.msra.mxu2 %v6712_v2  ;;  %v1653_v10 = vpack.c.bf16 %v1633_v27, %v1633_v27 }
 0x82a   :  { %2789 = vmatpush.bf16.msrb.mxu1 %v6687_v4  ;;  %2802 = vmatpush.bf16.msrb.mxu3 %v6695_v14 }
 0x82b   :  { %2815 = vmatpush.bf16.msra.mxu0 %v6703_v52  ;;  %2828 = vmatpush.bf16.msra.mxu2 %v6711_v53 }
 0x82e   :  { %2790 = vmatpush.bf16.msrb.mxu1 %v6686_v55  ;;  %2803 = vmatpush.bf16.msrb.mxu3 %v6694_v58 }
 0x82f   :  { %2816 = vmatpush.bf16.msra.mxu0 %v6702_v59  ;;  %2829 = vmatpush.bf16.msra.mxu2 %v6710_v60 }
 0x832   :  { %2791 = vmatpush.bf16.msrb.mxu1 %v6685_v61  ;;  %2804 = vmatpush.bf16.msrb.mxu3 %v6693_v62 }
 0x833   :  { %2817 = vmatpush.bf16.msra.mxu0 %v6701_v7  ;;  %2830 = vmatpush.bf16.msra.mxu2 %v6709_v9 }
 0x835   :  { %2792 = vmatmul.bf16.vlgmr.msrb.gmra.mxu1 %v1646_v22  ;;  %2805 = vmatmul.bf16.vlgmr.msrb.gmra.mxu3 %v1647_v28 }
 0x836   :  { %2836 = vmatpush.bf16.msra.mxu1 %v6724_v11  ;;  %2849 = vmatpush.bf16.msra.mxu3 %v6732_v15 }
 0x837   :  { %2862 = vmatpush.bf16.msrb.mxu0 %v6740_v17  ;;  %2875 = vmatpush.bf16.msrb.mxu2 %v6748_v18 }
 0x838   :  { %2831 = vmatmul.bf16.vlgmr.msra.gmra.mxu2 %v1649_v30  ;;  %2818 = vmatmul.bf16.vlgmr.msra.gmra.mxu0 %v1648_v31 }
 0x83a   :  { %2837 = vmatpush.bf16.msra.mxu1 %v6723_v33  ;;  %2850 = vmatpush.bf16.msra.mxu3 %v6731_v42 }
 0x83b   :  { %2863 = vmatpush.bf16.msrb.mxu0 %v6739_v45  ;;  %2876 = vmatpush.bf16.msrb.mxu2 %v6747_v51 }
 0x83e   :  { %2838 = vmatpush.bf16.msra.mxu1 %v6722_v54  ;;  %2851 = vmatpush.bf16.msra.mxu3 %v6730_v56 }
 0x83f   :  { %2864 = vmatpush.bf16.msrb.mxu0 %v6738_v44  ;;  %2877 = vmatpush.bf16.msrb.mxu2 %v6746_v46 }
 0x842   :  { %2839 = vmatpush.bf16.msra.mxu1 %v6721_v57  ;;  %2852 = vmatpush.bf16.msra.mxu3 %v6729_v37 }
 0x843   :  { %2865 = vmatpush.bf16.msrb.mxu0 %v6737_v35  ;;  %2878 = vmatpush.bf16.msrb.mxu2 %v6745_v38 }
 0x846   :  { %2840 = vmatpush.bf16.msra.mxu1 %v6720_v39  ;;  %2853 = vmatpush.bf16.msra.mxu3 %v6728_v40 }
 0x847   :  { %2866 = vmatpush.bf16.msrb.mxu0 %v6736_v41  ;;  %2879 = vmatpush.bf16.msrb.mxu2 %v6744_v43 }
 0x84a   :  { %2841 = vmatpush.bf16.msra.mxu1 %v6719_v47  ;;  %2854 = vmatpush.bf16.msra.mxu3 %v6727_v49 }
 0x84b   :  { %2867 = vmatpush.bf16.msrb.mxu0 %v6735_v29  ;;  %2880 = vmatpush.bf16.msrb.mxu2 %v6743_v34 }
 0x84e   :  { %2842 = vmatpush.bf16.msra.mxu1 %v6718_v20  ;;  %2855 = vmatpush.bf16.msra.mxu3 %v6726_v23 }
 0x84f   :  { %2868 = vmatpush.bf16.msrb.mxu0 %v6734_v32  ;;  %2881 = vmatpush.bf16.msrb.mxu2 %v6742_v12 }
 0x852   :  { %2843 = vmatpush.bf16.msra.mxu1 %v6717_v24  ;;  %2856 = vmatpush.bf16.msra.mxu3 %v6725_v36 }
 0x853   :  { %2869 = vmatpush.bf16.msrb.mxu0 %v6733_v50  ;;  %2882 = vmatpush.bf16.msrb.mxu2 %v6741_v48  ;;  %v6750_v48 = vld [vmem:[%s8507_s1 + $0x30] sm:$0xff] }
 0x855   :  { %2844 = vmatmul.bf16.vlgmr.msra.gmra.mxu1 %v1650_v13  ;;  %2857 = vmatmul.bf16.vlgmr.msra.gmra.mxu3 %v1651_v63 }
 0x856   :  { %2870 = vmatmul.bf16.vlgmr.msrb.gmra.mxu0 %v1652_v3  ;;  %2883 = vmatmul.bf16.vlgmr.msrb.gmra.mxu2 %v1653_v10 }
 0x857   :  { %2945 = vmatpush.bf16.msrb.mxu1 %v6750_v48 }
 0x872   :  { %v2689_v6 = vpop.f32.mrf.mxu1 }
 0x873   :  { %v2690_v25 = vadd.f32 %v6953_v1, %v2689_v6 }
 0x875   :  { %v2715_v16 = vpop.f32.mrf.mxu0 }
 0x878   :  { %v2702_v5 = vpop.f32.mrf.mxu3 }
 0x879   :  { %v2703_v2 = vadd.f32 %v2702_v5, %v2690_v25 }
 0x87a   :  { %v2691_v4 = vpop.f32.mrf.mxu1 }
 0x87b   :  { %v2728_v8 = vpop.f32.mrf.mxu2  ;;  %v2716_v19 = vadd.f32 %v2715_v16, %v2703_v2  ;;  %v6954_v2 = vld [vmem:[%s8508_s2 + $0xc] ss:$0 sm:$0xff] }
 0x87d   :  { %v2717_v14 = vpop.f32.mrf.mxu0  ;;  %v2729_v15 = vadd.f32 %v2728_v8, %v2716_v19  ;;  %v6955_v19 = vld [vmem:[%s8508_s2 + $0xd] ss:$0 sm:$0xff] }
 0x880   :  { %v2704_v27 = vpop.f32.mrf.mxu3 }
 0x883   :  { %v2730_v52 = vpop.f32.mrf.mxu2 }
 0x892   :  { %v2741_v53 = vpop.f32.mrf.mxu1 }
 0x893   :  { %v2742_v22 = vadd.f32 %v2741_v53, %v2729_v15  ;;  %v6956_v53 = vld [vmem:[%s8508_s2 + $0xf] ss:$0 sm:$0xff] }
 0x895   :  { %v2767_v55 = vpop.f32.mrf.mxu0 }
 0x898   :  { %v2754_v58 = vpop.f32.mrf.mxu3 }
 0x899   :  { %v2755_v31 = vadd.f32 %v2754_v58, %v2742_v22 }
 0x89a   :  { %v2743_v60 = vpop.f32.mrf.mxu1 }
 0x89b   :  { %v2780_v59 = vpop.f32.mrf.mxu2  ;;  %v2768_v45 = vadd.f32 %v2767_v55, %v2755_v31 }
 0x89d   :  { %v2769_v61 = vpop.f32.mrf.mxu0  ;;  %v2781_v51 = vadd.f32 %v2780_v59, %v2768_v45 }
 0x8a0   :  { %v2756_v62 = vpop.f32.mrf.mxu3 }
 0x8a3   :  { %v2782_v7 = vpop.f32.mrf.mxu2 }
 0x8b2   :  { %v2793_v9 = vpop.f32.mrf.mxu1 }
 0x8b3   :  { %v2794_v54 = vadd.f32 %v2793_v9, %v2781_v51 }
 0x8b5   :  { %v2819_v11 = vpop.f32.mrf.mxu0 }
 0x8b8   :  { %v2806_v17 = vpop.f32.mrf.mxu3 }
 0x8b9   :  { %v2807_v56 = vadd.f32 %v2806_v17, %v2794_v54 }
 0x8ba   :  { %v2795_v28 = vpop.f32.mrf.mxu1 }
 0x8bb   :  { %v2832_v18 = vpop.f32.mrf.mxu2  ;;  %v2820_v44 = vadd.f32 %v2819_v11, %v2807_v56 }
 0x8bd   :  { %v2821_v30 = vpop.f32.mrf.mxu0  ;;  %v2833_v37 = vadd.f32 %v2832_v18, %v2820_v44 }
 0x8c0   :  { %v2808_v33 = vpop.f32.mrf.mxu3 }
 0x8c3   :  { %v2834_v42 = vpop.f32.mrf.mxu2 }
 0x8d2   :  { %v2845_v46 = vpop.f32.mrf.mxu1 }
 0x8d3   :  { %v2871_v57 = vpop.f32.mrf.mxu0  ;;  %v2846_v35 = vadd.f32 %v2845_v46, %v2833_v37 }
 0x8d8   :  { %v2858_v38 = vpop.f32.mrf.mxu3 }
 0x8d9   :  { %v2859_v39 = vadd.f32 %v2858_v38, %v2846_v35  ;;  %v2884_v40 = vpop.f32.mrf.mxu2  ;;  %v3022_v35 = vld [vmem:[%s8507_s1 + $0x38] sm:$0xf] }
 0x8da   :  { %v2847_v41 = vpop.f32.mrf.mxu1  ;;  %v3028_v38 = vsel %vm842_vm8, %v3022_v35, 0 }
 0x8db   :  { %v2872_v43 = vadd.f32 %v2871_v57, %v2859_v39  ;;  %v2873_v47 = vpop.f32.mrf.mxu0 }
 0x8dd   :  { %v2885_v49 = vadd.f32 %v2884_v40, %v2872_v43 }
 0x8df   :  { %v2888_v29 = vadd.f32 %v2885_v49, %v8145_v21  ;;  %v6749_v21 = vld [vmem:[%s8507_s1 + $0x28] sm:$0xff] }
 0x8e0   :  { %v2860_v34 = vpop.f32.mrf.mxu3  ;;  %2946 = vmatpush.bf16.msrb.mxu1 %v6749_v21 }
 0x8e1   :  { %v2886_v20 = vpop.f32.mrf.mxu2  ;;  %v2891_v23 = vsel %vm749_vm1, %v2888_v29, 0.0 }
 0x8e2   :  { %2892 = vadd.xlane.f32.xlu0 %v2891_v23 }
 0x955   :  { %v2893_v32 = vpop.xlane.xlu0 %2892 }
 0x956   :  { %v2894_v12 = vmul.f32 %v2893_v32, %v8134_v0 }
 0x958   :  { %v2895_v24 = vsub.f32 %v2888_v29, %v2894_v12 }
 0x95a   :  { %v2896_v36 = vmul.f32 %v2895_v24, %v2895_v24 }
 0x95c   :  { %v2897_v50 = vsel %vm749_vm1, %v2896_v36, 0.0 }
 0x95d   :  { %2898 = vadd.xlane.f32.xlu0 %v2897_v50 }
 0x9d0   :  { %v2899_v13 = vpop.xlane.xlu0 %2898 }
 0x9d1   :  { %v2900_v63 = vmul.f32 %v2899_v13, %v8134_v0 }
 0x9d3   :  { %v2901_v3 = vadd.f32 1e-05, %v2900_v63 }
 0x9d5   :  { %6964 = vrsqrt.f32 %v2901_v3  ;;  %vm2908_vm14 = vweird.f32 %v2901_v3 }
 0x9db   :  { %v6965_v10 = vpop.eup %6964 }
 0x9dc   :  { %v2903_v1 = vmul.f32 %v6965_v10, %v2901_v3  ;;  %vm2909_vm13 = vweird.f32 %v6965_v10 }
 0x9dd   :  { %vm2910_vm15 = vmor %vm2908_vm14, %vm2909_vm13 }
 0x9de   :  { %v2904_v6 = vmul.f32 %v6965_v10, %v2903_v1 }
 0x9e0   :  { %v2905_v16 = vmul.f32 0.5, %v2904_v6 }
 0x9e2   :  { %v2906_v25 = vsub.f32 1.5, %v2905_v16 }
 0x9e4   :  { %v2907_v5 = vmul.f32 %v6965_v10, %v2906_v25 }
 0x9e6   :  { %v2911_v8 = vsel %vm2910_vm15, %v6965_v10, %v2907_v5 }
 0x9e7   :  { %v2912_v4 = vmul.f32 %v2911_v8, %v2895_v24 }
 0x9e9   :  { %v2914_v14 = vmul.f32 %v6954_v2, %v2912_v4 }
 0x9eb   :  { %v8305_v27 = vadd.f32 %v6955_v19, %v2914_v14 }
 0x9ed   :  { %v2917_v52 = vpack.c.bf16 %v8305_v27, %v8305_v27 }
 0x9ef   :  { %5891 = vmatmul.msk.bf16.vlgmr.msrb.gmra.mxu1 %vm749_vm1, %v2917_v52 }
 0xa6c   :  { %v2948_v55 = vpop.f32.mrf.mxu1 }
 0xa6d   :  { %v8313_v58 = vadd.f32 %v6956_v53, %v2948_v55 }
 0xa6f   :  { %3047 = vrot.lane.b32.xlu0 %v8313_v58, %s7021_s7  ;;  %2996 = vrot.lane.b32.xlu2 %v8313_v58, %s7023_s9  ;;  %s7029_s7 = smov [#allocation5]  }
 0xa70   :  { %2954 = vrot.lane.b32.xlu1 %v8313_v58, %s7018_s28 }
 0xa74   :  { %v2950_v59 = vpop.f32.mrf.mxu1 }
 0xa77   :  { %3139 = vrot.lane.b32.xlu0 %v8313_v58, %s7020_s30  ;;  %3045 = vrot.lane.b32.xlu2 %v8313_v58, %s7017_s27 }
 0xa7f   :  { %3231 = vrot.lane.b32.xlu0 %v8313_v58, %s7019_s29  ;;  %3137 = vrot.lane.b32.xlu2 %v8313_v58, %s7016_s26 }
 0xac9   :  { %v2997_v60 = vpop.permute.xlu2 %2996 }
 0xaca   :  { %3017 = vmatpush.msra.mxu0 %v2997_v60 }
 0xad1   :  { %v3046_v31 = vpop.permute.xlu2 %3045 }
 0xad9   :  { %v3138_v33 = vpop.permute.xlu2 %3137 }
 0xae1   :  { %v3048_v61 = vpop.permute.xlu0 %3047 }
 0xae2   :  { %v2955_v62 = vpop.permute.xlu1 %2954  ;;  %5896 = vmatpush.xpose.msk.msrb.mxu0 %vm770_vm2, %v3048_v61 }
 0xae3   :  { %5892 = vmatpush.xpose.msk.msrb.mxu3 %vm770_vm2, %v2955_v62 }
 0xae6   :  { %5893 = vmatmul.msk.f32.vlgmr.msrb.gmra.mxu3 %vm770_vm2, %v8313_v58 }
 0xae7   :  { %3037 = vmatpush.bf16.msra.mxu3 %v3028_v38 }
 0xae9   :  { %v3140_v44 = vpop.permute.xlu0 %3139 }
 0xaf1   :  { %v3232_v57 = vpop.permute.xlu0 %3231 }
 0xb69   :  { %v2977_v7 = vpop.f32.mrf.mxu3 }
 0xb6a   :  { %v2980_v9 = vmul.f32 0.35355338, %v2977_v7 }
 0xb6c   :  { %v2981_v11 = vsel %vm8075_vm7, %v2980_v9, -1e+30 }
 0xb6d   :  { %v2982_v15 = vsel %vm770_vm2, %v2981_v11, -inf }
 0xb6e   :  { %2983 = vmax.xlane.f32.xlu1 %v2982_v15 }
 0xbe1   :  { %v2984_v17 = vpop.xlane.xlu1 %2983 }
 0xbe2   :  { %v2985_v18 = vsub.f32 %v2981_v11, %v2984_v17 }
 0xbe4   :  { %v2986_v22 = vmul.f32 1.442695, %v2985_v18 }
 0xbe6   :  { %6966 = vpow2.f32 %v2986_v22 }
 0xbec   :  { %v6967_v28 = vpop.eup %6966 }
 0xbed   :  { %v2988_v30 = vsel %vm770_vm2, %v6967_v28, 0.0 }
 0xbee   :  { %2989 = vadd.xlane.f32.xlu2 %v2988_v30 }
 0xc06   :  { %3229 = vrot.lane.b32.xlu2 %v8313_v58, %s7022_s8  ;;  %s5165_s8 = sshll.u32 %s7029_s7, 4  ;;  %s5166_s8 = int_to_ptr.vmem [resolvable:$true] %s5165_s8 }
 0xc61   :  { %v2990_v42 = vpop.xlane.xlu2 %2989 }
 0xc62   :  { %6968 = vrcp.f32 %v2990_v42 }
 0xc68   :  { %v6969_v45 = vpop.eup %6968 }
 0xc69   :  { %v2992_v51 = vmul.f32 %v6969_v45, %v2990_v42  ;;  %v3230_v37 = vpop.permute.xlu2 %3229 }
 0xc6b   :  { %v2993_v54 = vsub.f32 2.0, %v2992_v51 }
 0xc6d   :  { %v2994_v56 = vmul.f32 %v6969_v45, %v2993_v54  ;;  %v3115_v45 = vld [vmem:[%s8507_s1 + $0x3c] sm:$0xf]  ;;  %v3207_v54 = vld [vmem:[%s8507_s1 + $0x40] sm:$0xf] }
 0xc6e   :  { %v3121_v51 = vsel %vm842_vm8, %v3115_v45, 0 }
 0xc6f   :  { %v2995_v46 = vmul.f32 %v6967_v28, %v2994_v56  ;;  %3130 = vmatpush.bf16.msra.mxu1 %v3121_v51  ;;  %v3213_v56 = vsel %vm842_vm8, %v3207_v54, 0  ;;  %v6770_v54 = vld [vmem:[#allocation2 + $0x19c] sm:$0xf] }
 0xc70   :  { %3222 = vmatpush.bf16.msrb.mxu3 %v3213_v56  ;;  %v6002_v56 = vld [vmem:[#allocation2 + $0x1d8] sm:$0xf0] }
 0xc71   :  { %5894 = vmatmul.msk.f32.vlgmr.msra.gmra.mxu0 %vm770_vm2, %v2995_v46 }
 0xc72   :  { %5900 = vmatpush.xpose.msk.msra.mxu0 %vm770_vm2, %v3140_v44  ;;  %v3299_v44 = vld [vmem:[%s8507_s1 + $0x44] sm:$0xf] }
 0xc73   :  { %v3305_v46 = vsel %vm842_vm8, %v3299_v44, 0  ;;  %v5928_v44 = vld [vmem:[#allocation2 + $0x110] sm:$0xf] }
 0xc74   :  { %3314 = vmatpush.bf16.msrb.mxu1 %v3305_v46 }
 0xc79   :  { %5897 = vmatmul.msk.f32.vlgmr.msrb.gmra.mxu0 %vm770_vm2, %v3046_v31 }
 0xc7a   :  { %5904 = vmatpush.xpose.msk.msrb.mxu0 %vm770_vm2, %v3232_v57 }
 0xc81   :  { %5901 = vmatmul.msk.f32.vlgmr.msra.gmra.mxu0 %vm770_vm2, %v3138_v33 }
 0xc89   :  { %5905 = vmatmul.msk.f32.vlgmr.msrb.gmra.mxu0 %vm770_vm2, %v3230_v37 }
 0xcee   :  { %v3019_v39 = vpop.f32.mrf.mxu0 }
 0xcef   :  { %v3023_v40 = vpack.c.bf16 %v3019_v39, %v3019_v39 }
 0xcf1   :  { %5895 = vmatmul.msk.bf16.vlgmr.msra.gmra.mxu3 %vm770_vm2, %v3023_v40 }
 0xcf6   :  { %v3070_v41 = vpop.f32.mrf.mxu0 }
 0xcf7   :  { %v3073_v43 = vmul.f32 0.35355338, %v3070_v41 }
 0xcf9   :  { %v3074_v47 = vsel %vm8075_vm7, %v3073_v43, -1e+30 }
 0xcfa   :  { %v3075_v49 = vsel %vm770_vm2, %v3074_v47, -inf }
 0xcfb   :  { %3076 = vmax.xlane.f32.xlu1 %v3075_v49 }
 0xcfe   :  { %v3162_v29 = vpop.f32.mrf.mxu0 }
 0xcff   :  { %v3165_v34 = vmul.f32 0.35355338, %v3162_v29 }
 0xd01   :  { %v3166_v20 = vsel %vm8075_vm7, %v3165_v34, -1e+30 }
 0xd02   :  { %v3167_v23 = vsel %vm770_vm2, %v3166_v20, -inf }
 0xd03   :  { %3168 = vmax.xlane.f32.xlu0 %v3167_v23 }
 0xd06   :  { %v3254_v32 = vpop.f32.mrf.mxu0 }
 0xd07   :  { %v3257_v12 = vmul.f32 0.35355338, %v3254_v32 }
 0xd09   :  { %v3258_v24 = vsel %vm8075_vm7, %v3257_v12, -1e+30  ;;  %vm5158_vm7 = vcmask 35840  }
 0xd0a   :  { %v3259_v36 = vsel %vm770_vm2, %v3258_v24, -inf }
 0xd0b   :  { %3260 = vmax.xlane.f32.xlu2 %v3259_v36 }
 0xd14   :  { %3089 = vrot.lane.b32.xlu1 %v8313_v58, %s7026_s11  ;;  %s5167_s11 = sshll.u32 %s8512_s6, 4  ;;  %s5168_s11 = int_to_ptr.hbm [resolvable:$true] %s5167_s11 }
 0xd23   :  { %3181 = vrot.lane.b32.xlu2 %v8313_v58, %s7027_s13 }
 0xd6e   :  { %v3077_v50 = vpop.xlane.xlu1 %3076 }
 0xd6f   :  { %v3078_v48 = vsub.f32 %v3074_v47, %v3077_v50  ;;  %v6957_v47 = vld [vmem:[%s8508_s2 + $0x10] ss:$0 sm:$0xff] }
 0xd71   :  { %v3079_v21 = vmul.f32 1.442695, %v3078_v48 }
 0xd73   :  { %6970 = vpow2.f32 %v3079_v21 }
 0xd74   :  { %v8363_v13 = vpop.f32.mrf.mxu3 }
 0xd75   :  { %v3044_v49 = vadd.f32 %v6957_v47, %v8363_v13 }
 0xd76   :  { %v3169_v63 = vpop.xlane.xlu0 %3168 }
 0xd77   :  { %v3170_v3 = vsub.f32 %v3166_v20, %v3169_v63 }
 0xd79   :  { %v6971_v10 = vpop.eup %6970  ;;  %v3171_v26 = vmul.f32 1.442695, %v3170_v3 }
 0xd7a   :  { %v3081_v1 = vsel %vm770_vm2, %v6971_v10, 0.0 }
 0xd7b   :  { %6972 = vpow2.f32 %v3171_v26  ;;  %3082 = vadd.xlane.f32.xlu1 %v3081_v1  ;;  %v6775_v26 = vld [vmem:[#allocation2 + $0x1bc] sm:$0xf0]  ;;  %v6767_v1 = vld [vmem:[#allocation2 + $0x184] sm:$0xf] }
 0xd7c   :  { %v3041_v6 = vpop.f32.mrf.mxu3 }
 0xd7d   :  { %v5978_v6 = vld [vmem:[#allocation2 + $0x1c0] sm:$0xf0] }
 0xd7e   :  { %v3261_v16 = vpop.xlane.xlu2 %3260 }
 0xd7f   :  { %v3262_v25 = vsub.f32 %v3258_v24, %v3261_v16  ;;  %v5984_v16 = vld [vmem:[#allocation2 + $0x188] sm:$0xf] }
 0xd81   :  { %v6973_v5 = vpop.eup %6972  ;;  %v3263_v2 = vmul.f32 1.442695, %v3262_v25  ;;  %v6776_v25 = vld [vmem:[#allocation2 + $0x1c4] sm:$0xf0] }
 0xd82   :  { %v3173_v8 = vsel %vm770_vm2, %v6973_v5, 0.0 }
 0xd83   :  { %6974 = vpow2.f32 %v3263_v2  ;;  %3174 = vadd.xlane.f32.xlu1 %v3173_v8  ;;  %v5985_v2 = vor.u32 %v6776_v25, %v5984_v16  ;;  %v6768_v8 = vld [vmem:[#allocation2 + $0x18c] sm:$0xf]  ;;  %v6780_v25 = vld [vmem:[#allocation2 + $0x1e4] sm:$0xf0] }
 0xd85   :  { %3616 = vmatpush.bf16.msra.mxu3 %v5985_v2  ;;  %v6018_v2 = vld [vmem:[#allocation2 + $0x1e8] sm:$0xf0] }
 0xd86   :  { %v3090_v4 = vpop.permute.xlu1 %3089  ;;  %v3182_v19 = vpop.permute.xlu2 %3181 }
 0xd87   :  { %3110 = vmatpush.msra.mxu2 %v3090_v4  ;;  %v5986_v4 = vld [vmem:[#allocation2 + $0x1c8] sm:$0xf0] }
 0xd89   :  { %3202 = vmatpush.msrb.mxu2 %v3182_v19  ;;  %v6975_v14 = vpop.eup %6974  ;;  %v5989_v19 = vor.u32 %v6768_v8, %v5986_v4 }
 0xd8a   :  { %v3265_v52 = vsel %vm770_vm2, %v6975_v14, 0.0 }
 0xd8b   :  { %3266 = vadd.xlane.f32.xlu0 %v3265_v52  ;;  %v6759_v52 = vld [vmem:[#allocation2 + $0x13c] sm:$0xf0] }
 0xd9c   :  { %3273 = vrot.lane.b32.xlu1 %v8313_v58, %s7025_s10 }
 0xdee   :  { %v3083_v53 = vpop.xlane.xlu1 %3082 }
 0xdef   :  { %6976 = vrcp.f32 %v3083_v53 }
 0xdf5   :  { %v6977_v55 = vpop.eup %6976 }
 0xdf6   :  { %v3085_v59 = vmul.f32 %v6977_v55, %v3083_v53  ;;  %v3175_v60 = vpop.xlane.xlu1 %3174  ;;  %v6751_v53 = vld [vmem:[#allocation2 + $0x104] sm:$0xf] }
 0xdf7   :  { %6978 = vrcp.f32 %v3175_v60 }
 0xdf8   :  { %v3086_v61 = vsub.f32 2.0, %v3085_v59  ;;  %v5914_v59 = vld [vmem:[#allocation2 + $0x140] sm:$0xf0] }
 0xdfa   :  { %v3087_v62 = vmul.f32 %v6977_v55, %v3086_v61  ;;  %v6760_v61 = vld [vmem:[#allocation2 + $0x144] sm:$0xf0] }
 0xdfc   :  { %v3088_v7 = vmul.f32 %v6971_v10, %v3087_v62  ;;  %v5976_v10 = vld [vmem:[#allocation2 + $0x180] sm:$0xf]  ;;  %v5917_v62 = vor.u32 %v6751_v53, %v5914_v59  ;;  %v5946_v59 = vld [vmem:[#allocation2 + $0x160] sm:$0xf0] }
 0xdfd   :  { %v6979_v9 = vpop.eup %6978 }
 0xdfe   :  { %v3177_v11 = vmul.f32 %v6979_v9, %v3175_v60  ;;  %5898 = vmatmul.msk.f32.vlgmr.msra.gmra.mxu2 %vm770_vm2, %v3088_v7  ;;  %v3267_v15 = vpop.xlane.xlu0 %3266  ;;  %v5920_v60 = vld [vmem:[#allocation2 + $0x108] sm:$0xf] }
 0xdff   :  { %6980 = vrcp.f32 %v3267_v15  ;;  %v5921_v7 = vor.u32 %v6760_v61, %v5920_v60  ;;  %v5952_v60 = vld [vmem:[#allocation2 + $0x128] sm:$0xf] }
 0xe00   :  { %v3178_v17 = vsub.f32 2.0, %v3177_v11  ;;  %v5922_v11 = vld [vmem:[#allocation2 + $0x148] sm:$0xf0]  ;;  %v6764_v61 = vld [vmem:[#allocation2 + $0x164] sm:$0xf0] }
 0xe01   :  { %3617 = vmatpush.bf16.msra.mxu3 %v5921_v7  ;;  %v5954_v7 = vld [vmem:[#allocation2 + $0x168] sm:$0xf0] }
 0xe02   :  { %v3179_v18 = vmul.f32 %v6979_v9, %v3178_v17  ;;  %v6752_v9 = vld [vmem:[#allocation2 + $0x10c] sm:$0xf] }
 0xe04   :  { %v3180_v22 = vmul.f32 %v6973_v5, %v3179_v18  ;;  %v5981_v5 = vor.u32 %v6767_v1, %v5978_v6  ;;  %v5992_v18 = vld [vmem:[#allocation2 + $0x190] sm:$0xf]  ;;  %v6771_v1 = vld [vmem:[#allocation2 + $0x1a4] sm:$0xf]  ;;  %v6016_v6 = vld [vmem:[#allocation2 + $0x1a8] sm:$0xf] }
 0xe05   :  { %v6981_v28 = vpop.eup %6980 }
 0xe06   :  { %v3269_v58 = vmul.f32 %v6981_v28, %v3267_v15  ;;  %5902 = vmatmul.msk.f32.vlgmr.msrb.gmra.mxu2 %vm770_vm2, %v3180_v22  ;;  %v5925_v15 = vor.u32 %v6752_v9, %v5922_v11  ;;  %v6777_v22 = vld [vmem:[#allocation2 + $0x1cc] sm:$0xf0] }
 0xe08   :  { %v3270_v30 = vsub.f32 2.0, %v3269_v58 }
 0xe0a   :  { %v3271_v31 = vmul.f32 %v6981_v28, %v3270_v30  ;;  %v6769_v28 = vld [vmem:[#allocation2 + $0x194] sm:$0xf]  ;;  %v5993_v30 = vor.u32 %v6777_v22, %v5992_v18  ;;  %v6024_v18 = vld [vmem:[#allocation2 + $0x1b0] sm:$0xf] }
 0xe0b   :  { %v6781_v22 = vld [vmem:[#allocation2 + $0x1ec] sm:$0xf0] }
 0xe0c   :  { %v3272_v33 = vmul.f32 %v6975_v14, %v3271_v31  ;;  %v5912_v14 = vld [vmem:[#allocation2 + $0x100] sm:$0xf]  ;;  %v5994_v31 = vld [vmem:[#allocation2 + $0x1d0] sm:$0xf0] }
 0xe0d   :  { %v5913_v55 = vor.u32 %v6759_v52, %v5912_v14  ;;  %v5997_v45 = vor.u32 %v6769_v28, %v5994_v31  ;;  %v5944_v14 = vld [vmem:[#allocation2 + $0x120] sm:$0xf]  ;;  %v6773_v28 = vld [vmem:[#allocation2 + $0x1b4] sm:$0xf]  ;;  %v6782_v31 = vld [vmem:[#allocation2 + $0x1f4] sm:$0xf0] }
 0xe0e   :  { %v3274_v42 = vpop.permute.xlu1 %3273  ;;  %v6763_v52 = vld [vmem:[#allocation2 + $0x15c] sm:$0xf0] }
 0xe0f   :  { %3294 = vmatpush.msra.mxu2 %v3274_v42  ;;  %v6778_v42 = vld [vmem:[#allocation2 + $0x1d4] sm:$0xf0]  ;;  %v5945_v9 = vor.u32 %v6763_v52, %v5944_v14  ;;  %v6801_v14 = vld [vmem:[#allocation3 + $0x528] sm:$0xff] }
 0xe10   :  { %5906 = vmatmul.msk.f32.vlgmr.msra.gmra.mxu2 %vm770_vm2, %v3272_v33  ;;  %v6000_v33 = vld [vmem:[#allocation2 + $0x198] sm:$0xf]  ;;  %v6784_v52 = vld [vmem:[#allocation3 + $0x5c8] sm:$0xff] }
 0xe11   :  { %3603 = vmatpush.bf16.msrb.mxu2 %v5981_v5  ;;  %v6001_v51 = vor.u32 %v6778_v42, %v6000_v33  ;;  %v6772_v5 = vld [vmem:[#allocation2 + $0x1ac] sm:$0xf]  ;;  %v6774_v33 = vld [vmem:[#allocation2 + $0x1bc] sm:$0xf] }
 0xe12   :  { %v6021_v53 = vor.u32 %v6772_v5, %v6018_v2  ;;  %v6034_v42 = vld [vmem:[#allocation2 + $0x1f8] sm:$0xf0] }
 0xe13   :  { %v6802_v5 = vld [vmem:[#allocation3 + $0x258] sm:$0xff] }
 0xe14   :  { %v6785_v2 = vld [vmem:[#allocation3 + $0x438] sm:$0xff] }
 0xe15   :  { %3604 = vmatpush.bf16.msrb.mxu2 %v5917_v62  ;;  %v6756_v62 = vld [vmem:[#allocation2 + $0x12c] sm:$0xf] }
 0xe19   :  { %3655 = vmatpush.bf16.msra.mxu2 %v5997_v45  ;;  %v6025_v45 = vor.u32 %v6781_v22, %v6024_v18  ;;  %v6829_v18 = vld [vmem:[#allocation3 + $0x28] sm:$0xff] }
 0xe1a   :  { %v6837_v22 = vld [vmem:[#allocation3 + $0x4c8] sm:$0xff] }
 0xe81   :  { %v3112_v57 = vpop.f32.mrf.mxu2 }
 0xe82   :  { %v3116_v37 = vpack.c.bf16 %v3112_v57, %v3112_v57  ;;  %v6005_v57 = vor.u32 %v6770_v54, %v6002_v56  ;;  %v5960_v54 = vld [vmem:[#allocation2 + $0x130] sm:$0xf] }
 0xe83   :  { %v6765_v56 = vld [vmem:[#allocation2 + $0x16c] sm:$0xf0] }
 0xe84   :  { %5899 = vmatmul.msk.bf16.vlgmr.msra.gmra.mxu1 %vm770_vm2, %v3116_v37  ;;  %v6761_v37 = vld [vmem:[#allocation2 + $0x14c] sm:$0xf0] }
 0xe85   :  { %3629 = vmatpush.bf16.msra.mxu1 %v5989_v19 }
 0xe89   :  { %v3204_v35 = vpop.f32.mrf.mxu2  ;;  %3630 = vmatpush.bf16.msra.mxu1 %v5925_v15  ;;  %v5953_v15 = vor.u32 %v6764_v61, %v5952_v60  ;;  %v6822_v60 = vld [vmem:[#allocation3 + $0x200] sm:$0xff]  ;;  %v6846_v61 = vld [vmem:[#allocation3 + $0x408] sm:$0xff] }
 0xe8a   :  { %v3208_v38 = vpack.c.bf16 %v3204_v35, %v3204_v35  ;;  %v6753_v35 = vld [vmem:[#allocation2 + $0x114] sm:$0xf] }
 0xe8c   :  { %5903 = vmatmul.msk.bf16.vlgmr.msrb.gmra.mxu3 %vm770_vm2, %v3208_v38  ;;  %v5929_v38 = vor.u32 %v6761_v37, %v5928_v44  ;;  %v5962_v37 = vld [vmem:[#allocation2 + $0x170] sm:$0xf0] }
 0xe8d   :  { %3668 = vmatpush.bf16.msrb.mxu3 %v6001_v51 }
 0xe93   :  { %v3296_v39 = vpop.f32.mrf.mxu2 }
 0xe94   :  { %v3300_v40 = vpack.c.bf16 %v3296_v39, %v3296_v39  ;;  %v5930_v39 = vld [vmem:[#allocation2 + $0x150] sm:$0xf0] }
 0xe96   :  { %5907 = vmatmul.msk.bf16.vlgmr.msrb.gmra.mxu1 %vm770_vm2, %v3300_v40  ;;  %v5936_v40 = vld [vmem:[#allocation2 + $0x118] sm:$0xf] }
 0xe97   :  { %3681 = vmatpush.bf16.msrb.mxu1 %v6005_v57  ;;  %v6757_v57 = vld [vmem:[#allocation2 + $0x134] sm:$0xf] }
 0xf01   :  { %v3132_v41 = vpop.f32.mrf.mxu1 }
 0xf02   :  { %v3136_v34 = vadd.f32 %v3132_v41, %v3044_v49  ;;  %v6762_v41 = vld [vmem:[#allocation2 + $0x154] sm:$0xf0]  ;;  %v6754_v49 = vld [vmem:[#allocation2 + $0x11c] sm:$0xf] }
 0xf03   :  { %v5937_v47 = vor.u32 %v6762_v41, %v5936_v40  ;;  %v5970_v40 = vld [vmem:[#allocation2 + $0x178] sm:$0xf0]  ;;  %v5961_v41 = vor.u32 %v6765_v56, %v5960_v54  ;;  %v6818_v54 = vld [vmem:[#allocation3 + $0x230] sm:$0xff]  ;;  %v6842_v56 = vld [vmem:[#allocation3 + $0x260] sm:$0xff] }
 0xf05   :  { %3669 = vmatpush.bf16.msrb.mxu3 %v5937_v47 }
 0xf09   :  { %v3134_v43 = vpop.f32.mrf.mxu1 }
 0xf0a   :  { %v5933_v43 = vor.u32 %v6753_v35, %v5930_v39  ;;  %v5968_v35 = vld [vmem:[#allocation2 + $0x138] sm:$0xf]  ;;  %v6758_v39 = vld [vmem:[#allocation2 + $0x13c] sm:$0xf] }
 0xf0c   :  { %3656 = vmatpush.bf16.msra.mxu2 %v5933_v43  ;;  %v5965_v43 = vor.u32 %v6757_v57, %v5962_v37  ;;  %v6826_v57 = vld [vmem:[#allocation3 + $0x510] sm:$0xff] }
 0xf0d   :  { %v6834_v37 = vld [vmem:[#allocation3 + $0x290] sm:$0xff] }
 0xf0f   :  { %v3224_v29 = vpop.f32.mrf.mxu3 }
 0xf10   :  { %v3228_v20 = vadd.f32 %v3224_v29, %v3136_v34  ;;  %v5938_v29 = vld [vmem:[#allocation2 + $0x158] sm:$0xf0] }
 0xf11   :  { %v5941_v34 = vor.u32 %v6754_v49, %v5938_v29  ;;  %v5973_v49 = vor.u32 %v6758_v39, %v5970_v40  ;;  %v6790_v29 = vld [vmem:[#allocation3 + $0x6a0] sm:$0xff]  ;;  %v6825_v39 = vld [vmem:[#allocation3 + $0x1d0] sm:$0xff]  ;;  %v6833_v40 = vld [vmem:[#allocation3 + $0x208] sm:$0xff] }
 0xf13   :  { %v3316_v23 = vpop.f32.mrf.mxu1  ;;  %3682 = vmatpush.bf16.msrb.mxu1 %v5941_v34  ;;  %v6814_v34 = vld [vmem:[#allocation3 + $0x700] sm:$0xff] }
 0xf14   :  { %v3320_v32 = vadd.f32 %v3316_v23, %v3228_v20 }
 0xf16   :  { %v3321_v12 = vadd.f32 %v3320_v32, %v8305_v27  ;;  %v5977_v27 = vor.u32 %v6775_v26, %v5976_v10  ;;  %v6008_v10 = vld [vmem:[#allocation2 + $0x1a0] sm:$0xf] }
 0xf17   :  { %v3226_v24 = vpop.f32.mrf.mxu3  ;;  %v6779_v26 = vld [vmem:[#allocation2 + $0x1dc] sm:$0xf0] }
 0xf18   :  { %v3324_v36 = vsel %vm749_vm1, %v3321_v12, 0.0  ;;  %3590 = vmatpush.bf16.msra.mxu0 %v5977_v27  ;;  %v6010_v27 = vld [vmem:[#allocation2 + $0x1e0] sm:$0xf0]  ;;  %v6009_v4 = vor.u32 %v6779_v26, %v6008_v10  ;;  %v6811_v10 = vld [vmem:[#allocation3 + $0x590] sm:$0xff] }
 0xf19   :  { %3325 = vadd.xlane.f32.xlu0 %v3324_v36  ;;  %v6013_v19 = vor.u32 %v6771_v1, %v6010_v27  ;;  %v6795_v26 = vld [vmem:[#allocation3 + $0x730] sm:$0xff] }
 0xf1a   :  { %v6803_v1 = vld [vmem:[#allocation3 + $0x4d0] sm:$0xff] }
 0xf1b   :  { %v3318_v50 = vpop.f32.mrf.mxu1  ;;  %v6786_v27 = vld [vmem:[#allocation3 + $0x350] sm:$0xff] }
 0xf1c   :  { %3591 = vmatpush.bf16.msra.mxu0 %v5913_v55  ;;  %v6958_v50 = vld [vmem:[%s8508_s2 + $0x11] ss:$0 sm:$0xff]  ;;  %v6755_v55 = vld [vmem:[#allocation2 + $0x124] sm:$0xf] }
 0xf1d   :  { %v5949_v11 = vor.u32 %v6755_v55, %v5946_v59  ;;  %v6800_v55 = vld [vmem:[#allocation3 + $0x4f0] sm:$0xff]  ;;  %v6783_v59 = vld [vmem:[#allocation3 + $0x4a8] sm:$0xff] }
 0xf20   :  { %3642 = vmatpush.bf16.msrb.mxu0 %v5993_v30  ;;  %v6032_v30 = vld [vmem:[#allocation2 + $0x1b8] sm:$0xf] }
 0xf21   :  { %v6033_v44 = vor.u32 %v6782_v31, %v6032_v30  ;;  %v6828_v30 = vld [vmem:[#allocation3 + $0x130] sm:$0xff]  ;;  %v6836_v31 = vld [vmem:[#allocation3 + $0x80] sm:$0xff] }
 0xf24   :  { %3643 = vmatpush.bf16.msrb.mxu0 %v5929_v38  ;;  %v6766_v38 = vld [vmem:[#allocation2 + $0x174] sm:$0xf0] }
 0xf25   :  { %v5969_v47 = vor.u32 %v6766_v38, %v5968_v35  ;;  %v6816_v35 = vld [vmem:[#allocation3 + $0x5a0] sm:$0xff]  ;;  %v6840_v38 = vld [vmem:[#allocation3 + $0x378] sm:$0xff] }
 0xf8c   :  { %v3326_v48 = vpop.xlane.xlu0 %3325 }
 0xf8d   :  { %v3327_v21 = vmul.f32 %v3326_v48, %v8134_v0 }
 0xf8f   :  { %v8395_v63 = vsub.f32 %v3321_v12, %v3327_v21  ;;  %v6959_v21 = vld [vmem:[%s8508_s2 + $0x12] ss:$0 sm:$0xff] }
 0xf91   :  { %v3329_v13 = vmul.f32 %v8395_v63, %v8395_v63 }
 0xf93   :  { %v3330_v3 = vsel %vm749_vm1, %v3329_v13, 0.0 }
 0xf94   :  { %3331 = vadd.xlane.f32.xlu1 %v3330_v3 }
0x1007   :  { %v3332_v17 = vpop.xlane.xlu1 %3331 }
0x1008   :  { %v3333_v58 = vmul.f32 %v3332_v17, %v8134_v0  ;;  %v5957_v17 = vor.u32 %v6756_v62, %v5954_v7  ;;  %v6791_v62 = vld [vmem:[#allocation3 + $0x3c8] sm:$0xff]  ;;  %v6799_v7 = vld [vmem:[#allocation3 + $0x460] sm:$0xff] }
0x100a   :  { %v3334_v46 = vadd.f32 1e-05, %v3333_v58  ;;  %v6026_v58 = vld [vmem:[#allocation2 + $0x1f0] sm:$0xf0] }
0x100b   :  { %v6029_v51 = vor.u32 %v6773_v28, %v6026_v58  ;;  %v6820_v28 = vld [vmem:[#allocation3 + $0x7f8] sm:$0xff]  ;;  %v6844_v58 = vld [vmem:[#allocation3 + $0x288] sm:$0xff] }
0x100c   :  { %6982 = vrsqrt.f32 %v3334_v46  ;;  %vm3341_vm2 = vweird.f32 %v3334_v46 }
0x1012   :  { %v6983_v20 = vpop.eup %6982 }
0x1013   :  { %v3336_v23 = vmul.f32 %v6983_v20, %v3334_v46  ;;  %vm3342_vm0 = vweird.f32 %v6983_v20  ;;  %v6037_v46 = vor.u32 %v6774_v33, %v6034_v42  ;;  %v6819_v33 = vld [vmem:[#allocation3 + $0x560] sm:$0xff]  ;;  %v6843_v42 = vld [vmem:[#allocation3 + $0x728] sm:$0xff] }
0x1014   :  { %vm3343_vm3 = vmor %vm3341_vm2, %vm3342_vm0 }
0x1015   :  { %v3337_v32 = vmul.f32 %v6983_v20, %v3336_v23  ;;  %v6806_v23 = vld [vmem:[#allocation3 + $0x2a0] sm:$0xff] }
0x1017   :  { %v3338_v12 = vmul.f32 0.5, %v3337_v32  ;;  %v6789_v32 = vld [vmem:[#allocation3 + $0x488] sm:$0xff] }
0x1019   :  { %v3339_v24 = vsub.f32 1.5, %v3338_v12  ;;  %v6813_v12 = vld [vmem:[#allocation3 + $0x358] sm:$0xff] }
0x101b   :  { %v3340_v36 = vmul.f32 %v6983_v20, %v3339_v24  ;;  %v6797_v24 = vld [vmem:[#allocation3 + $0x458] sm:$0xff] }
0x101d   :  { %v3344_v48 = vsel %vm3343_vm3, %v6983_v20, %v3340_v36  ;;  %v6798_v20 = vld [vmem:[#allocation3 + $0x1b8] sm:$0xff] }
0x101e   :  { %v3345_v13 = vmul.f32 %v3344_v48, %v8395_v63  ;;  %v6017_v63 = vor.u32 %v6780_v25, %v6016_v6  ;;  %v6805_v36 = vld [vmem:[#allocation3 + $0x78] sm:$0xff]  ;;  %v6812_v48 = vld [vmem:[#allocation3 + $0x660] sm:$0xff]  ;;  %v6810_v6 = vld [vmem:[#allocation3 + $0x530] sm:$0xff] }
0x101f   :  { %v6794_v25 = vld [vmem:[#allocation3 + $0x688] sm:$0xff] }
0x1020   :  { %v3347_v3 = vmul.f32 %v6958_v50, %v3345_v13  ;;  %v6788_v50 = vld [vmem:[#allocation3 + $0xf8] sm:$0xff] }
0x1021   :  { %v6804_v13 = vld [vmem:[#allocation3 + $0x4f8] sm:$0xff] }
0x1022   :  { %v8408_v16 = vadd.f32 %v6959_v21, %v3347_v3  ;;  %v6796_v21 = vld [vmem:[#allocation3 + $0x658] sm:$0xff]  ;;  %v6787_v3 = vld [vmem:[#allocation3 + $0x2c8] sm:$0xff] }
0x1024   :  { %v8412_v8 = vpack.c.bf16 %v8408_v16, %v8408_v16 }
0x1026   :  { %6038 = vmatmul.msk.bf16.vlgmr.msra.gmra.mxu0 %vm749_vm1, %v8412_v8  ;;  %6039 = vmatmul.msk.bf16.vlgmr.msrb.gmra.mxu2 %vm749_vm1, %v8412_v8 }
0x1027   :  { %6040 = vmatmul.msk.bf16.vlgmr.msra.gmra.mxu3 %vm749_vm1, %v8412_v8  ;;  %6041 = vmatmul.msk.bf16.vlgmr.msra.gmra.mxu1 %vm749_vm1, %v8412_v8 }
0x1028   :  { %3694 = vmatpush.bf16.msra.mxu0 %v6009_v4  ;;  %3707 = vmatpush.bf16.msrb.mxu2 %v6013_v19  ;;  %v6809_v4 = vld [vmem:[#allocation3 + $0x7a8] sm:$0xff]  ;;  %v6793_v19 = vld [vmem:[#allocation3 + $0x6d0] sm:$0xff] }
0x1029   :  { %3720 = vmatpush.bf16.msra.mxu3 %v6017_v63  ;;  %3733 = vmatpush.bf16.msra.mxu1 %v6021_v53  ;;  %v6808_v63 = vld [vmem:[#allocation3 + $0x778] sm:$0xff]  ;;  %v6792_v53 = vld [vmem:[#allocation3 + $0x1e8] sm:$0xff] }
0x102c   :  { %3695 = vmatpush.bf16.msra.mxu0 %v5945_v9  ;;  %3708 = vmatpush.bf16.msrb.mxu2 %v5949_v11  ;;  %v6830_v9 = vld [vmem:[#allocation3 + $0x760] sm:$0xff]  ;;  %v6838_v11 = vld [vmem:[#allocation3 + $0x3f0] sm:$0xff] }
0x102d   :  { %3721 = vmatpush.bf16.msra.mxu3 %v5953_v15  ;;  %3734 = vmatpush.bf16.msra.mxu1 %v5957_v17  ;;  %v6821_v15 = vld [vmem:[#allocation3 + $0x4e0] sm:$0xff]  ;;  %v6845_v17 = vld [vmem:[#allocation3 + $0x188] sm:$0xff] }
0x1036   :  { %6042 = vmatmul.msk.bf16.vlgmr.msrb.gmra.mxu0 %vm749_vm1, %v8412_v8  ;;  %6043 = vmatmul.msk.bf16.vlgmr.msra.gmra.mxu2 %vm749_vm1, %v8412_v8 }
0x1037   :  { %6044 = vmatmul.msk.bf16.vlgmr.msrb.gmra.mxu3 %vm749_vm1, %v8412_v8  ;;  %6045 = vmatmul.msk.bf16.vlgmr.msrb.gmra.mxu1 %vm749_vm1, %v8412_v8 }
0x1038   :  { %3746 = vmatpush.bf16.msrb.mxu0 %v6025_v45  ;;  %3759 = vmatpush.bf16.msra.mxu2 %v6029_v51  ;;  %v6827_v45 = vld [vmem:[#allocation3 + $0x750] sm:$0xff]  ;;  %v6835_v51 = vld [vmem:[#allocation3 + $0x7a0] sm:$0xff] }
0x1039   :  { %3772 = vmatpush.bf16.msrb.mxu3 %v6033_v44  ;;  %3785 = vmatpush.bf16.msrb.mxu1 %v6037_v46  ;;  %v6817_v44 = vld [vmem:[#allocation3 + $0x3d0] sm:$0xff]  ;;  %v6841_v46 = vld [vmem:[#allocation3 + $0x160] sm:$0xff] }
0x103c   :  { %3747 = vmatpush.bf16.msrb.mxu0 %v5961_v41  ;;  %3760 = vmatpush.bf16.msra.mxu2 %v5965_v43  ;;  %v6815_v41 = vld [vmem:[#allocation3 + $0x340] sm:$0xff]  ;;  %v6839_v43 = vld [vmem:[#allocation3 + $0x798] sm:$0xff] }
0x103d   :  { %3773 = vmatpush.bf16.msrb.mxu3 %v5969_v47  ;;  %3786 = vmatpush.bf16.msrb.mxu1 %v5973_v49  ;;  %v6824_v47 = vld [vmem:[#allocation3 + $0x2a8] sm:$0xff] }
0x103e   :  { %v6832_v49 = vld [vmem:[#allocation3 + $0x228] sm:$0xff] }
0x1046   :  { %6046 = vmatmul.msk.bf16.vlgmr.msra.gmra.mxu0 %vm749_vm1, %v8412_v8  ;;  %6047 = vmatmul.msk.bf16.vlgmr.msrb.gmra.mxu2 %vm749_vm1, %v8412_v8 }
0x1047   :  { %6048 = vmatmul.msk.bf16.vlgmr.msra.gmra.mxu3 %vm749_vm1, %v8412_v8  ;;  %6049 = vmatmul.msk.bf16.vlgmr.msra.gmra.mxu1 %vm749_vm1, %v8412_v8 }
0x1048   :  { %4851 = vmatpush.bf16.msra.mxu0 %v6790_v29  ;;  %4890 = vmatpush.bf16.msra.mxu1 %v6814_v34  ;;  %v6823_v29 = vld [vmem:[#allocation3 + $0x468] sm:$0xff]  ;;  %v6831_v34 = vld [vmem:[#allocation3 + $0x5d0] sm:$0xff] }
0x1049   :  { %4864 = vmatpush.bf16.msrb.mxu2 %v6798_v20  ;;  %4877 = vmatpush.bf16.msra.mxu3 %v6806_v23  ;;  %v8449_v20 = vld [vmem:[%s8509_s3 + $0x10] sm:$0xff] }
0x104a   :  { %v3389_v23 = vperm.slane %v8449_v20, 0 }
0x104c   :  { %4852 = vmatpush.bf16.msra.mxu0 %v6789_v32  ;;  %4891 = vmatpush.bf16.msra.mxu1 %v6813_v12  ;;  %v3392_v32 = vperm.slane %v8449_v20, 3 }
0x104d   :  { %4865 = vmatpush.bf16.msrb.mxu2 %v6797_v24  ;;  %4878 = vmatpush.bf16.msra.mxu3 %v6805_v36 }
0x1050   :  { %4853 = vmatpush.bf16.msra.mxu0 %v6788_v50  ;;  %4892 = vmatpush.bf16.msra.mxu1 %v6812_v48 }
0x1051   :  { %4866 = vmatpush.bf16.msrb.mxu2 %v6796_v21  ;;  %4879 = vmatpush.bf16.msra.mxu3 %v6804_v13  ;;  %v3390_v21 = vperm.slane %v8449_v20, 1 }
0x1054   :  { %4854 = vmatpush.bf16.msra.mxu0 %v6787_v3  ;;  %4893 = vmatpush.bf16.msra.mxu1 %v6811_v10  ;;  %v3391_v3 = vperm.slane %v8449_v20, 2  ;;  %v6854_v10 = vld [vmem:[#allocation3 + $0x780] sm:$0xff] }
0x1055   :  { %4867 = vmatpush.bf16.msrb.mxu2 %v6795_v26  ;;  %4880 = vmatpush.bf16.msra.mxu3 %v6803_v1  ;;  %v6878_v1 = vld [vmem:[#allocation3 + $0x748] sm:$0xff] }
0x1056   :  { %6050 = vmatmul.msk.bf16.vlgmr.msrb.gmra.mxu0 %vm749_vm1, %v8412_v8  ;;  %6051 = vmatmul.msk.bf16.vlgmr.msra.gmra.mxu2 %vm749_vm1, %v8412_v8 }
0x1057   :  { %6052 = vmatmul.msk.bf16.vlgmr.msrb.gmra.mxu3 %vm749_vm1, %v8412_v8  ;;  %6053 = vmatmul.msk.bf16.vlgmr.msrb.gmra.mxu1 %vm749_vm1, %v8412_v8  ;;  %v6807_v8 = vld [vmem:[#allocation3 + $0x10] sm:$0xff] }
0x1058   :  { %4855 = vmatpush.bf16.msra.mxu0 %v6786_v27  ;;  %4894 = vmatpush.bf16.msra.mxu1 %v6810_v6 }
0x1059   :  { %4868 = vmatpush.bf16.msrb.mxu2 %v6794_v25  ;;  %4881 = vmatpush.bf16.msra.mxu3 %v6802_v5 }
0x105c   :  { %4856 = vmatpush.bf16.msra.mxu0 %v6785_v2  ;;  %4895 = vmatpush.bf16.msra.mxu1 %v6809_v4 }
0x105d   :  { %4869 = vmatpush.bf16.msrb.mxu2 %v6793_v19  ;;  %4882 = vmatpush.bf16.msra.mxu3 %v6801_v14  ;;  %v6853_v19 = vld [vmem:[#allocation3 + $0x220] sm:$0xff] }
0x1060   :  { %4857 = vmatpush.bf16.msra.mxu0 %v6784_v52  ;;  %4896 = vmatpush.bf16.msra.mxu1 %v6808_v63  ;;  %v6877_v63 = vld [vmem:[#allocation3 + $0x4a0] sm:$0xff] }
0x1061   :  { %4870 = vmatpush.bf16.msrb.mxu2 %v6792_v53  ;;  %4883 = vmatpush.bf16.msra.mxu3 %v6800_v55  ;;  %v6862_v55 = vld [vmem:[#allocation3 + $0x88] sm:$0xff] }
0x1064   :  { %4858 = vmatpush.bf16.msra.mxu0 %v6783_v59  ;;  %4897 = vmatpush.bf16.msra.mxu1 %v6807_v8  ;;  %v6870_v8 = vld [vmem:[#allocation3 + $0x500] sm:$0xff] }
0x1065   :  { %4871 = vmatpush.bf16.msrb.mxu2 %v6791_v62  ;;  %4884 = vmatpush.bf16.msra.mxu3 %v6799_v7  ;;  %v6876_v62 = vld [vmem:[#allocation3 + $0x210] sm:$0xff]  ;;  %v3393_v7 = vperm.slane %v8449_v20, 4 }
0x1068   :  { %4903 = vmatpush.bf16.msrb.mxu0 %v6822_v60  ;;  %4942 = vmatpush.bf16.msrb.mxu1 %v6846_v61  ;;  %v6852_v61 = vld [vmem:[#allocation3 + $0x548] sm:$0xff] }
0x1069   :  { %4916 = vmatpush.bf16.msra.mxu2 %v6830_v9  ;;  %4929 = vmatpush.bf16.msrb.mxu3 %v6838_v11  ;;  %v3396_v11 = vperm.slane %v8449_v20, 7 }
0x106c   :  { %4904 = vmatpush.bf16.msrb.mxu0 %v6821_v15  ;;  %4943 = vmatpush.bf16.msrb.mxu1 %v6845_v17  ;;  %v6861_v15 = vld [vmem:[#allocation3 + $0x308] sm:$0xff] }
0x106d   :  { %4917 = vmatpush.bf16.msra.mxu2 %v6829_v18  ;;  %4930 = vmatpush.bf16.msrb.mxu3 %v6837_v22  ;;  %v6869_v18 = vld [vmem:[#allocation3 + $0x570] sm:$0xff] }
0x1070   :  { %4905 = vmatpush.bf16.msrb.mxu0 %v6820_v28  ;;  %4944 = vmatpush.bf16.msrb.mxu1 %v6844_v58  ;;  %v6851_v28 = vld [vmem:[#allocation3 + $0x248] sm:$0xff] }
0x1071   :  { %4918 = vmatpush.bf16.msra.mxu2 %v6828_v30  ;;  %4931 = vmatpush.bf16.msrb.mxu3 %v6836_v31  ;;  %v6875_v31 = vld [vmem:[#allocation3 + $0x60] sm:$0xff] }
0x1074   :  { %4906 = vmatpush.bf16.msrb.mxu0 %v6819_v33  ;;  %4945 = vmatpush.bf16.msrb.mxu1 %v6843_v42  ;;  %v6860_v42 = vld [vmem:[#allocation3 + $0x20] sm:$0xff] }
0x1075   :  { %4919 = vmatpush.bf16.msra.mxu2 %v6827_v45  ;;  %4932 = vmatpush.bf16.msrb.mxu3 %v6835_v51  ;;  %v6868_v51 = vld [vmem:[#allocation3 + $0x490] sm:$0xff] }
0x1078   :  { %4907 = vmatpush.bf16.msrb.mxu0 %v6818_v54  ;;  %4946 = vmatpush.bf16.msrb.mxu1 %v6842_v56  ;;  %v3394_v54 = vperm.slane %v8449_v20, 5 }
0x1079   :  { %4920 = vmatpush.bf16.msra.mxu2 %v6826_v57  ;;  %4933 = vmatpush.bf16.msrb.mxu3 %v6834_v37  ;;  %v6874_v37 = vld [vmem:[#allocation3 + $0x360] sm:$0xff] }
0x107c   :  { %4908 = vmatpush.bf16.msrb.mxu0 %v6817_v44  ;;  %4947 = vmatpush.bf16.msrb.mxu1 %v6841_v46  ;;  %v3395_v44 = vperm.slane %v8449_v20, 6  ;;  %v6850_v46 = vld [vmem:[#allocation3 + $0x410] sm:$0xff] }
0x107d   :  { %4921 = vmatpush.bf16.msra.mxu2 %v6825_v39  ;;  %4934 = vmatpush.bf16.msrb.mxu3 %v6833_v40  ;;  %v6859_v39 = vld [vmem:[#allocation3 + $0x7e0] sm:$0xff] }
0x1080   :  { %4909 = vmatpush.bf16.msrb.mxu0 %v6816_v35  ;;  %4948 = vmatpush.bf16.msrb.mxu1 %v6840_v38 }
0x1081   :  { %4922 = vmatpush.bf16.msra.mxu2 %v6824_v47  ;;  %4935 = vmatpush.bf16.msrb.mxu3 %v6832_v49 }
0x1084   :  { %4910 = vmatpush.bf16.msrb.mxu0 %v6815_v41  ;;  %4949 = vmatpush.bf16.msrb.mxu1 %v6839_v43  ;;  %v6867_v43 = vld [vmem:[#allocation3 + $0x180] sm:$0xff] }
0x1085   :  { %4923 = vmatpush.bf16.msra.mxu2 %v6823_v29  ;;  %4936 = vmatpush.bf16.msrb.mxu3 %v6831_v34  ;;  %v6849_v29 = vld [vmem:[#allocation3 + $0x470] sm:$0xff] }
0x10a3   :  { %v3593_v12 = vpop.f32.mrf.mxu0 }
0x10a4   :  { %v3594_v24 = vadd.f32 %v3593_v12, %v3389_v23  ;;  %v3632_v36 = vpop.f32.mrf.mxu1  ;;  %v6873_v23 = vld [vmem:[#allocation3 + $0x7e8] sm:$0xff]  ;;  %v6858_v12 = vld [vmem:[#allocation3 + $0x170] sm:$0xff] }
0x10a5   :  { %v3633_v50 = vadd.f32 %v3632_v36, %v3392_v32 }
0x10a6   :  { %v3792_v48 = vmax.f32 %v3594_v24, 0.0  ;;  %v8462_v24 = vld [vmem:[%s8509_s3 + $0x18] sm:$0xff] }
0x10a7   :  { %v3795_v13 = vmax.f32 %v3633_v50, 0.0  ;;  %v6866_v50 = vld [vmem:[#allocation3 + $0x108] sm:$0xff] }
0x10a8   :  { %v3808_v26 = vpack.c.bf16 %v3792_v48, %v3792_v48 }
0x10a9   :  { %v3811_v27 = vpack.c.bf16 %v3795_v13, %v3795_v13  ;;  %v3606_v6 = vpop.f32.mrf.mxu2  ;;  %v6872_v13 = vld [vmem:[#allocation3 + $0x2f0] sm:$0xff] }
0x10aa   :  { %v3607_v25 = vadd.f32 %v3606_v6, %v3390_v21  ;;  %v3619_v5 = vpop.f32.mrf.mxu3  ;;  %4859 = vmatmul.bf16.vlgmr.msra.gmra.mxu0 %v3808_v26  ;;  %v6848_v21 = vld [vmem:[#allocation3 + $0x98] sm:$0xff]  ;;  %v3400_v26 = vperm.slane %v8462_v24, 3  ;;  %v6865_v6 = vld [vmem:[#allocation3 + $0x300] sm:$0xff] }
0x10ab   :  { %v3620_v2 = vadd.f32 %v3619_v5, %v3391_v3  ;;  %4898 = vmatmul.bf16.vlgmr.msra.gmra.mxu1 %v3811_v27  ;;  %4955 = vmatpush.bf16.msra.mxu0 %v6854_v10  ;;  %v3595_v4 = vpop.f32.mrf.mxu0  ;;  %v3397_v3 = vperm.slane %v8462_v24, 0  ;;  %v6847_v5 = vld [vmem:[#allocation3 + $0x678] sm:$0xff] }
0x10ac   :  { %v3793_v14 = vmax.f32 %v3607_v25, 0.0  ;;  %4994 = vmatpush.bf16.msra.mxu1 %v6878_v1  ;;  %v3634_v52 = vpop.f32.mrf.mxu1  ;;  %v6857_v1 = vld [vmem:[#allocation3 + $0x428] sm:$0xff] }
0x10ad   :  { %v3794_v53 = vmax.f32 %v3620_v2, 0.0 }
0x10ae   :  { %v3809_v59 = vpack.c.bf16 %v3793_v14, %v3793_v14  ;;  %v6886_v14 = vld [vmem:[#allocation3 + $0x328] sm:$0xff] }
0x10af   :  { %v3810_v60 = vpack.c.bf16 %v3794_v53, %v3794_v53  ;;  %4956 = vmatpush.bf16.msra.mxu0 %v6853_v19  ;;  %v6871_v19 = vld [vmem:[#allocation3 + $0xe8] sm:$0xff] }
0x10b0   :  { %4995 = vmatpush.bf16.msra.mxu1 %v6877_v63  ;;  %4872 = vmatmul.bf16.vlgmr.msrb.gmra.mxu2 %v3809_v59  ;;  %v6910_v63 = vld [vmem:[#allocation3 + $0x150] sm:$0xff]  ;;  %v6856_v53 = vld [vmem:[#allocation3 + $0x8] sm:$0xff] }
0x10b1   :  { %4885 = vmatmul.bf16.vlgmr.msra.gmra.mxu3 %v3810_v60  ;;  %4968 = vmatpush.bf16.msrb.mxu2 %v6862_v55  ;;  %v3608_v9 = vpop.f32.mrf.mxu2  ;;  %v6864_v59 = vld [vmem:[#allocation3 + $0x6b0] sm:$0xff] }
0x10b2   :  { %4981 = vmatpush.bf16.msra.mxu3 %v6870_v8  ;;  %v3621_v17 = vpop.f32.mrf.mxu3  ;;  %v3398_v8 = vperm.slane %v8462_v24, 1 }
0x10b3   :  { %4957 = vmatpush.bf16.msra.mxu0 %v6852_v61  ;;  %v3645_v22 = vpop.f32.mrf.mxu0  ;;  %v3399_v61 = vperm.slane %v8462_v24, 2  ;;  %v6855_v17 = vld [vmem:[#allocation3 + $0x708] sm:$0xff] }
0x10b4   :  { %4996 = vmatpush.bf16.msra.mxu1 %v6876_v62  ;;  %v3646_v58 = vadd.f32 %v3645_v22, %v3393_v7  ;;  %v3684_v30 = vpop.f32.mrf.mxu1  ;;  %v6885_v7 = vld [vmem:[#allocation3 + $0x48] sm:$0xff] }
0x10b5   :  { %v3685_v33 = vadd.f32 %v3684_v30, %v3396_v11  ;;  %4969 = vmatpush.bf16.msrb.mxu2 %v6861_v15  ;;  %v6909_v15 = vld [vmem:[#allocation3 + $0x580] sm:$0xff] }
0x10b6   :  { %v3796_v45 = vmax.f32 %v3646_v58, 0.0  ;;  %4982 = vmatpush.bf16.msra.mxu3 %v6869_v18  ;;  %v6894_v58 = vld [vmem:[#allocation3 + $0x1f0] sm:$0xff] }
0x10b7   :  { %v3799_v56 = vmax.f32 %v3685_v33, 0.0  ;;  %4958 = vmatpush.bf16.msra.mxu0 %v6851_v28  ;;  %v6863_v28 = vld [vmem:[#allocation3 + $0x6e8] sm:$0xff]  ;;  %v6902_v33 = vld [vmem:[#allocation3 + $0x190] sm:$0xff] }
0x10b8   :  { %v3812_v57 = vpack.c.bf16 %v3796_v45, %v3796_v45  ;;  %4997 = vmatpush.bf16.msra.mxu1 %v6875_v31 }
0x10b9   :  { %v3815_v35 = vpack.c.bf16 %v3799_v56, %v3799_v56  ;;  %4970 = vmatpush.bf16.msrb.mxu2 %v6860_v42  ;;  %v3658_v38 = vpop.f32.mrf.mxu2  ;;  %v6908_v56 = vld [vmem:[#allocation3 + $0x5e0] sm:$0xff] }
0x10ba   :  { %4983 = vmatpush.bf16.msra.mxu3 %v6868_v51  ;;  %v3659_v40 = vadd.f32 %v3658_v38, %v3394_v54  ;;  %v3671_v41 = vpop.f32.mrf.mxu3  ;;  %4911 = vmatmul.bf16.vlgmr.msrb.gmra.mxu0 %v3812_v57  ;;  %v6884_v51 = vld [vmem:[#allocation3 + $0xa0] sm:$0xff] }
0x10bb   :  { %v3672_v47 = vadd.f32 %v3671_v41, %v3395_v44  ;;  %4950 = vmatmul.bf16.vlgmr.msrb.gmra.mxu1 %v3815_v35  ;;  %4959 = vmatpush.bf16.msra.mxu0 %v6850_v46  ;;  %v3647_v49 = vpop.f32.mrf.mxu0  ;;  %v6893_v46 = vld [vmem:[#allocation3 + $0x298] sm:$0xff]  ;;  %v6883_v35 = vld [vmem:[#allocation3 + $0xc8] sm:$0xff] }
0x10bc   :  { %v3797_v34 = vmax.f32 %v3659_v40, 0.0  ;;  %4998 = vmatpush.bf16.msra.mxu1 %v6874_v37  ;;  %v3686_v20 = vpop.f32.mrf.mxu1  ;;  %v6901_v37 = vld [vmem:[#allocation3 + $0x7d0] sm:$0xff]  ;;  %v6892_v41 = vld [vmem:[#allocation3 + $0x4b8] sm:$0xff] }
0x10bd   :  { %v3798_v32 = vmax.f32 %v3672_v47, 0.0  ;;  %4971 = vmatpush.bf16.msrb.mxu2 %v6859_v39  ;;  %v6907_v39 = vld [vmem:[#allocation3 + $0x1b0] sm:$0xff]  ;;  %v6900_v47 = vld [vmem:[#allocation3 + $0x718] sm:$0xff] }
0x10be   :  { %v3813_v36 = vpack.c.bf16 %v3797_v34, %v3797_v34  ;;  %4984 = vmatpush.bf16.msra.mxu3 %v6867_v43  ;;  %v6906_v34 = vld [vmem:[#allocation3 + $0x238] sm:$0xff] }
0x10bf   :  { %v3814_v48 = vpack.c.bf16 %v3798_v32, %v3798_v32  ;;  %4960 = vmatpush.bf16.msra.mxu0 %v6849_v29  ;;  %v6882_v29 = vld [vmem:[#allocation3 + $0x2d8] sm:$0xff]  ;;  %v6881_v32 = vld [vmem:[#allocation3 + $0x270] sm:$0xff] }
0x10c0   :  { %4999 = vmatpush.bf16.msra.mxu1 %v6873_v23  ;;  %4924 = vmatmul.bf16.vlgmr.msra.gmra.mxu2 %v3813_v36  ;;  %v6891_v20 = vld [vmem:[#allocation3 + $0x638] sm:$0xff] }
0x10c1   :  { %4937 = vmatmul.bf16.vlgmr.msrb.gmra.mxu3 %v3814_v48  ;;  %4972 = vmatpush.bf16.msrb.mxu2 %v6858_v12  ;;  %v3660_v10 = vpop.f32.mrf.mxu2  ;;  %v6899_v23 = vld [vmem:[#allocation3 + $0x3d8] sm:$0xff]  ;;  %v3401_v12 = vperm.slane %v8462_v24, 4  ;;  %v3404_v48 = vperm.slane %v8462_v24, 7 }
0x10c2   :  { %4985 = vmatpush.bf16.msra.mxu3 %v6866_v50  ;;  %v3673_v27 = vpop.f32.mrf.mxu3  ;;  %v6905_v50 = vld [vmem:[#allocation3 + $0x2b8] sm:$0xff]  ;;  %v6898_v10 = vld [vmem:[#allocation3 + $0x480] sm:$0xff] }
0x10c3   :  { %4961 = vmatpush.bf16.msra.mxu0 %v6848_v21  ;;  %v3697_v25 = vpop.f32.mrf.mxu0 }
0x10c4   :  { %5000 = vmatpush.bf16.msra.mxu1 %v6872_v13  ;;  %v3698_v2 = vadd.f32 %v3697_v25, %v3397_v3  ;;  %v3736_v4 = vpop.f32.mrf.mxu1  ;;  %v6890_v13 = vld [vmem:[#allocation3 + $0x608] sm:$0xff] }
0x10c5   :  { %v3737_v52 = vadd.f32 %v3736_v4, %v3400_v26  ;;  %4973 = vmatpush.bf16.msrb.mxu2 %v6857_v1  ;;  %v6880_v1 = vld [vmem:[#allocation3 + $0x668] sm:$0xff]  ;;  %v6897_v4 = vld [vmem:[#allocation3 + $0x650] sm:$0xff] }
0x10c6   :  { %v3800_v55 = vmax.f32 %v3698_v2, 0.0  ;;  %4986 = vmatpush.bf16.msra.mxu3 %v6865_v6  ;;  %v6904_v6 = vld [vmem:[#allocation3 + $0xa8] sm:$0xff]  ;;  %v3402_v2 = vperm.slane %v8462_v24, 5 }
0x10c7   :  { %v3803_v60 = vmax.f32 %v3737_v52, 0.0  ;;  %4962 = vmatpush.bf16.msra.mxu0 %v6847_v5  ;;  %v6889_v5 = vld [vmem:[#allocation3 + $0x578] sm:$0xff] }
0x10c8   :  { %v3816_v62 = vpack.c.bf16 %v3800_v55, %v3800_v55  ;;  %5001 = vmatpush.bf16.msra.mxu1 %v6871_v19  ;;  %v3403_v19 = vperm.slane %v8462_v24, 6  ;;  %v6887_v24 = vld [vmem:[#allocation3 + $0x7c8] sm:$0xff] }
0x10c9   :  { %v3819_v9 = vpack.c.bf16 %v3803_v60, %v3803_v60  ;;  %4974 = vmatpush.bf16.msrb.mxu2 %v6856_v53  ;;  %v3710_v11 = vpop.f32.mrf.mxu2  ;;  %v6903_v53 = vld [vmem:[#allocation3 + $0x710] sm:$0xff] }
0x10ca   :  { %4987 = vmatpush.bf16.msra.mxu3 %v6864_v59  ;;  %v3711_v18 = vadd.f32 %v3710_v11, %v3398_v8  ;;  %v3723_v22 = vpop.f32.mrf.mxu3  ;;  %4963 = vmatmul.bf16.vlgmr.msra.gmra.mxu0 %v3816_v62  ;;  %v6888_v8 = vld [vmem:[#allocation3 + $0x430] sm:$0xff] }
0x10cb   :  { %5007 = vmatpush.bf16.msrb.mxu0 %v6886_v14  ;;  %v3724_v30 = vadd.f32 %v3723_v22, %v3399_v61  ;;  %5002 = vmatmul.bf16.vlgmr.msra.gmra.mxu1 %v3819_v9  ;;  %v3699_v31 = vpop.f32.mrf.mxu0  ;;  %v6879_v14 = vld [vmem:[#allocation3 + $0x168] sm:$0xff]  ;;  %v6896_v61 = vld [vmem:[#allocation3 + $0x2d0] sm:$0xff] }
0x10cc   :  { %5046 = vmatpush.bf16.msrb.mxu1 %v6910_v63  ;;  %v3801_v42 = vmax.f32 %v3711_v18, 0.0  ;;  %v3738_v45 = vpop.f32.mrf.mxu1 }
0x10cd   :  { %v3802_v54 = vmax.f32 %v3724_v30, 0.0  ;;  %4975 = vmatpush.bf16.msrb.mxu2 %v6855_v17 }
0x10ce   :  { %v3817_v44 = vpack.c.bf16 %v3801_v42, %v3801_v42  ;;  %4988 = vmatpush.bf16.msra.mxu3 %v6863_v28 }
0x10cf   :  { %5008 = vmatpush.bf16.msrb.mxu0 %v6885_v7  ;;  %v3818_v57 = vpack.c.bf16 %v3802_v54, %v3802_v54 }
0x10d0   :  { %5047 = vmatpush.bf16.msrb.mxu1 %v6909_v15  ;;  %4976 = vmatmul.bf16.vlgmr.msrb.gmra.mxu2 %v3817_v44  ;;  %v6895_v15 = vld [vmem:[#allocation3] sm:$0xff] }
0x10d1   :  { %5020 = vmatpush.bf16.msra.mxu2 %v6894_v58  ;;  %4989 = vmatmul.bf16.vlgmr.msra.gmra.mxu3 %v3818_v57  ;;  %v3712_v38 = vpop.f32.mrf.mxu2  ;;  %v6960_v57 = vld [vmem:[%s8508_s2 + $0x15] ss:$0 sm:$0xff] }
0x10d2   :  { %5033 = vmatpush.bf16.msrb.mxu3 %v6902_v33  ;;  %v3725_v40 = vpop.f32.mrf.mxu3 }
0x10d3   :  { %5009 = vmatpush.bf16.msrb.mxu0 %v6884_v51  ;;  %v3749_v43 = vpop.f32.mrf.mxu0 }
0x10d4   :  { %5048 = vmatpush.bf16.msrb.mxu1 %v6908_v56  ;;  %v3788_v49 = vpop.f32.mrf.mxu1  ;;  %v3750_v27 = vadd.f32 %v3749_v43, %v3401_v12 }
0x10d5   :  { %5021 = vmatpush.bf16.msra.mxu2 %v6893_v46  ;;  %v3789_v25 = vadd.f32 %v3788_v49, %v3404_v48 }
0x10d6   :  { %5034 = vmatpush.bf16.msrb.mxu3 %v6901_v37  ;;  %v3804_v52 = vmax.f32 %v3750_v27, 0.0 }
0x10d7   :  { %5010 = vmatpush.bf16.msrb.mxu0 %v6883_v35  ;;  %v3807_v55 = vmax.f32 %v3789_v25, 0.0 }
0x10d8   :  { %5049 = vmatpush.bf16.msrb.mxu1 %v6907_v39  ;;  %v3820_v7 = vpack.c.bf16 %v3804_v52, %v3804_v52 }
0x10d9   :  { %5022 = vmatpush.bf16.msra.mxu2 %v6892_v41  ;;  %v3762_v36 = vpop.f32.mrf.mxu2  ;;  %v3823_v9 = vpack.c.bf16 %v3807_v55, %v3807_v55 }
0x10da   :  { %5035 = vmatpush.bf16.msrb.mxu3 %v6900_v47  ;;  %v3775_v21 = vpop.f32.mrf.mxu3  ;;  %v3763_v60 = vadd.f32 %v3762_v36, %v3402_v2 }
0x10db   :  { %5011 = vmatpush.bf16.msrb.mxu0 %v6882_v29  ;;  %v3751_v3 = vpop.f32.mrf.mxu0  ;;  %v3776_v62 = vadd.f32 %v3775_v21, %v3403_v19 }
0x10dc   :  { %5050 = vmatpush.bf16.msrb.mxu1 %v6906_v34  ;;  %v3790_v26 = vpop.f32.mrf.mxu1  ;;  %v3805_v11 = vmax.f32 %v3763_v60, 0.0 }
0x10dd   :  { %5023 = vmatpush.bf16.msra.mxu2 %v6891_v20  ;;  %v3806_v17 = vmax.f32 %v3776_v62, 0.0 }
0x10de   :  { %5036 = vmatpush.bf16.msrb.mxu3 %v6899_v23  ;;  %v3821_v18 = vpack.c.bf16 %v3805_v11, %v3805_v11  ;;  %v6911_v11 = vld [vmem:[%s8507_s1 + $0x48] sm:$0xff] }
0x10df   :  { %5012 = vmatpush.bf16.msrb.mxu0 %v6881_v32  ;;  %v3822_v22 = vpack.c.bf16 %v3806_v17, %v3806_v17 }
0x10e0   :  { %5051 = vmatpush.bf16.msrb.mxu1 %v6905_v50 }
0x10e1   :  { %5024 = vmatpush.bf16.msra.mxu2 %v6890_v13  ;;  %v3764_v63 = vpop.f32.mrf.mxu2 }
0x10e2   :  { %5037 = vmatpush.bf16.msrb.mxu3 %v6898_v10  ;;  %v3777_v59 = vpop.f32.mrf.mxu3 }
0x10e3   :  { %5013 = vmatpush.bf16.msrb.mxu0 %v6880_v1 }
0x10e4   :  { %5052 = vmatpush.bf16.msrb.mxu1 %v6904_v6 }
0x10e5   :  { %5025 = vmatpush.bf16.msra.mxu2 %v6889_v5 }
0x10e6   :  { %5038 = vmatpush.bf16.msrb.mxu3 %v6897_v4 }
0x10e7   :  { %5014 = vmatpush.bf16.msrb.mxu0 %v6879_v14 }
0x10e8   :  { %5053 = vmatpush.bf16.msrb.mxu1 %v6903_v53 }
0x10e9   :  { %5026 = vmatpush.bf16.msra.mxu2 %v6888_v8 }
0x10ea   :  { %5039 = vmatpush.bf16.msrb.mxu3 %v6896_v61  ;;  %5015 = vmatmul.bf16.vlgmr.msrb.gmra.mxu0 %v3820_v7 }
0x10eb   :  { %5054 = vmatmul.bf16.vlgmr.msrb.gmra.mxu1 %v3823_v9 }
0x10ed   :  { %5027 = vmatpush.bf16.msra.mxu2 %v6887_v24  ;;  %v6912_v24 = vld [vmem:[%s8507_s1 + $0x50] sm:$0xff] }
0x10ee   :  { %5040 = vmatpush.bf16.msrb.mxu3 %v6895_v15  ;;  %v6913_v15 = vld [vmem:[%s8507_s1 + $0x58] sm:$0xff] }
0x10f0   :  { %5028 = vmatmul.bf16.vlgmr.msra.gmra.mxu2 %v3821_v18 }
0x10f1   :  { %5041 = vmatmul.bf16.vlgmr.msrb.gmra.mxu3 %v3822_v22  ;;  %5148 = vmatpush.bf16.msrb.mxu2 %v6912_v24 }
0x10f5   :  { %5149 = vmatpush.bf16.msrb.mxu2 %v6911_v11 }
0x1127   :  { %v4860_v28 = vpop.f32.mrf.mxu0 }
0x1128   :  { %v4899_v58 = vpop.f32.mrf.mxu1  ;;  %v4861_v38 = vadd.f32 %v6960_v57, %v4860_v28 }
0x112f   :  { %v4862_v30 = vpop.f32.mrf.mxu0 }
0x1130   :  { %v4901_v31 = vpop.f32.mrf.mxu1 }
0x1133   :  { %v4873_v33 = vpop.f32.mrf.mxu2 }
0x1134   :  { %v4886_v42 = vpop.f32.mrf.mxu3  ;;  %v4874_v41 = vadd.f32 %v4873_v33, %v4861_v38 }
0x1136   :  { %v4887_v49 = vadd.f32 %v4886_v42, %v4874_v41 }
0x1137   :  { %v4912_v45 = vpop.f32.mrf.mxu0 }
0x1138   :  { %v4951_v51 = vpop.f32.mrf.mxu1  ;;  %v4900_v20 = vadd.f32 %v4899_v58, %v4887_v49 }
0x113a   :  { %v4913_v12 = vadd.f32 %v4912_v45, %v4900_v20  ;;  %v6961_v45 = vld [vmem:[%s8508_s2 + $0x13] ss:$0 sm:$0xff] }
0x113b   :  { %v4875_v54 = vpop.f32.mrf.mxu2 }
0x113c   :  { %v4888_v56 = vpop.f32.mrf.mxu3 }
0x113f   :  { %v4914_v44 = vpop.f32.mrf.mxu0 }
0x1140   :  { %v4953_v46 = vpop.f32.mrf.mxu1 }
0x1143   :  { %v4925_v37 = vpop.f32.mrf.mxu2 }
0x1144   :  { %v4938_v35 = vpop.f32.mrf.mxu3  ;;  %v4926_v36 = vadd.f32 %v4925_v37, %v4913_v12 }
0x1146   :  { %v4939_v50 = vadd.f32 %v4938_v35, %v4926_v36  ;;  %v6963_v35 = vld [vmem:[%s8508_s2 + $0x16] ss:$0 sm:$0xff] }
0x1147   :  { %v4964_v39 = vpop.f32.mrf.mxu0 }
0x1148   :  { %v5003_v40 = vpop.f32.mrf.mxu1  ;;  %v4952_v13 = vadd.f32 %v4951_v51, %v4939_v50 }
0x114a   :  { %v4965_v3 = vadd.f32 %v4964_v39, %v4952_v13 }
0x114b   :  { %v4927_v43 = vpop.f32.mrf.mxu2 }
0x114c   :  { %v4940_v47 = vpop.f32.mrf.mxu3 }
0x114f   :  { %v4966_v29 = vpop.f32.mrf.mxu0 }
0x1150   :  { %v5005_v34 = vpop.f32.mrf.mxu1 }
0x1153   :  { %v4977_v23 = vpop.f32.mrf.mxu2 }
0x1154   :  { %v4990_v32 = vpop.f32.mrf.mxu3  ;;  %v4978_v26 = vadd.f32 %v4977_v23, %v4965_v3 }
0x1156   :  { %v4991_v27 = vadd.f32 %v4990_v32, %v4978_v26 }
0x1158   :  { %v5004_v25 = vadd.f32 %v5003_v40, %v4991_v27 }
0x115b   :  { %v4979_v48 = vpop.f32.mrf.mxu2 }
0x115c   :  { %v4992_v21 = vpop.f32.mrf.mxu3 }
0x1167   :  { %v5016_v10 = vpop.f32.mrf.mxu0 }
0x1168   :  { %v5055_v1 = vpop.f32.mrf.mxu1  ;;  %v5017_v2 = vadd.f32 %v5016_v10, %v5004_v25 }
0x116f   :  { %v5018_v6 = vpop.f32.mrf.mxu0 }
0x1170   :  { %v5057_v5 = vpop.f32.mrf.mxu1 }
0x1173   :  { %v5029_v4 = vpop.f32.mrf.mxu2 }
0x1174   :  { %v5030_v19 = vadd.f32 %v5029_v4, %v5017_v2  ;;  %v5042_v14 = vpop.f32.mrf.mxu3 }
0x1176   :  { %v5043_v52 = vadd.f32 %v5042_v14, %v5030_v19 }
0x1178   :  { %v5056_v63 = vadd.f32 %v5055_v1, %v5043_v52 }
0x117a   :  { %v5059_v53 = vadd.f32 %v5056_v63, %v8408_v16  ;;  %v6914_v16 = vld [vmem:[%s8507_s1 + $0x60] sm:$0xff] }
0x117b   :  { %v5031_v55 = vpop.f32.mrf.mxu2  ;;  %5120 = vmatpush.bf16.msra.mxu0 %v6914_v16 }
0x117c   :  { %v5044_v59 = vpop.f32.mrf.mxu3  ;;  %v5062_v8 = vsel %vm749_vm1, %v5059_v53, 0.0 }
0x117d   :  { %5063 = vadd.xlane.f32.xlu0 %v5062_v8 }
0x117f   :  { %5121 = vmatpush.bf16.msra.mxu0 %v6913_v15 }
0x11f0   :  { %v5064_v60 = vpop.xlane.xlu0 %5063 }
0x11f1   :  { %v5065_v61 = vmul.f32 %v5064_v60, %v8134_v0 }
0x11f3   :  { %v5066_v62 = vsub.f32 %v5059_v53, %v5065_v61 }
0x11f5   :  { %v5067_v7 = vmul.f32 %v5066_v62, %v5066_v62 }
0x11f7   :  { %v5068_v9 = vsel %vm749_vm1, %v5067_v7, 0.0 }
0x11f8   :  { %5069 = vadd.xlane.f32.xlu0 %v5068_v9 }
0x126b   :  { %v5070_v17 = vpop.xlane.xlu0 %5069 }
0x126c   :  { %v5071_v18 = vmul.f32 %v5070_v17, %v8134_v0  ;;  %v6962_v0 = vld [vmem:[%s8508_s2 + $0x14] ss:$0 sm:$0xff] }
0x126e   :  { %v5072_v22 = vadd.f32 1e-05, %v5071_v18 }
0x1270   :  { %6984 = vrsqrt.f32 %v5072_v22  ;;  %vm5079_vm5 = vweird.f32 %v5072_v22 }
0x1276   :  { %v6985_v28 = vpop.eup %6984 }
0x1277   :  { %v5074_v58 = vmul.f32 %v6985_v28, %v5072_v22  ;;  %vm5080_vm4 = vweird.f32 %v6985_v28 }
0x1278   :  { %vm5081_vm6 = vmor %vm5079_vm5, %vm5080_vm4 }
0x1279   :  { %v5075_v30 = vmul.f32 %v6985_v28, %v5074_v58 }
0x127b   :  { %v5076_v31 = vmul.f32 0.5, %v5075_v30 }
0x127d   :  { %v5077_v33 = vsub.f32 1.5, %v5076_v31 }
0x127f   :  { %v5078_v42 = vmul.f32 %v6985_v28, %v5077_v33 }
0x1281   :  { %v5082_v51 = vsel %vm5081_vm6, %v6985_v28, %v5078_v42 }
0x1282   :  { %v5083_v54 = vmul.f32 %v5082_v51, %v5066_v62 }
0x1284   :  { %v5085_v56 = vmul.f32 %v6961_v45, %v5083_v54 }
0x1286   :  { %v5087_v44 = vadd.f32 %v6962_v0, %v5085_v56 }
0x1288   :  { %v5088_v46 = vpack.c.bf16 %v5087_v44, %v5087_v44 }
0x128a   :  { %6583 = vmatmul.msk.bf16.vlgmr.msrb.gmra.mxu2 %vm749_vm1, %v5088_v46  ;;  %v5098_v57 = vrot.slane %v5088_v46, 2 }
0x128c   :  { %6574 = vmatmul.msk.bf16.vlgmr.msra.gmra.mxu0 %vm749_vm1, %v5098_v57 }
0x1309   :  { %v5123_v37 = vpop.f32.mrf.mxu0 }
0x130d   :  { %v5151_v38 = vpop.f32.mrf.mxu2 }
0x130e   :  { %v5152_v39 = vadd.f32 %v5151_v38, %v5123_v37 }
0x1310   :  { %v5157_v40 = vadd.f32 %v6963_v35, %v5152_v39 }
0x1311   :  { %v5125_v41 = vpop.f32.mrf.mxu0 }
0x1312   :  { %5159 = vst.msk [vmem:[#allocation5] sm:$0xf] %vm5158_vm7, %v5157_v40 }
0x1313   :  { %5170 = dma.vmem_to_hbm [thread:$0]  %s5166_s8, 64, %s5168_s11, [#allocation6]  }
0x1315   :  { %v5153_v43 = vpop.f32.mrf.mxu2 }
0x1316   :  { %7014 = dma.done.wait [#allocation6], 64  }
0x1317   :  { %7015 = vsyncadd [#allocation6], 4294967232 }
0x1318   :  { %5175 = vsyncpa [#allocation6], 1 }
0x1319   :  { %5176 = vsyncmov [#allocation4] }
0x131c   :  { %s5177_s2 = vpop.sfrf %5176 }
0x131d   :  { %p6584_p0 = scmp.ne.s32.totalorder %s5177_s2, 0 }
0x131f   :  { %5181 = shalt.err (%p6584_p0)  }
0x1320   :  { %5183 = vsyncmov [#allocation4 + $0x1] }
0x1323   :  { %s5184_s13 = vpop.sfrf %5183 }
0x1324   :  { %p6585_p1 = scmp.ne.s32.totalorder %s5184_s13, 0 }
0x1326   :  { %5188 = shalt.err (%p6585_p1)  }

</bundles_post_ra>
